<compile_context>
chip_gen: v7x
topology: tpu7x:2x2x1
jax: 0.10.0
libtpu: 0.0.40
codegen_flags: <defaults>
</compile_context>

<pallas_src>
import random
from functools import partial

import jax
import jax.numpy as jnp
from jax import lax
from jax.experimental import pallas as pl
from jax.experimental.pallas import tpu as pltpu

LN_EPS = 1e-5


def _layernorm(x, gamma, beta):
    # Two *independent* reductions (both can issue on the XLU back-to-back),
    # var = E[x^2] - mean^2, clamped >= 0 before rsqrt (f32 round-off safety).
    n = x.shape[-1]
    inv_n = 1.0 / n
    s1 = jnp.sum(x, axis=-1, keepdims=True)
    s2 = jnp.sum(x * x, axis=-1, keepdims=True)
    mean = s1 * inv_n
    var = jnp.maximum(s2 * inv_n - mean * mean, 0.0)
    return (x - mean) * lax.rsqrt(var + LN_EPS) * gamma + beta


def _argmax_onehot(logits, iota_bv, vocab):
    # First-occurrence argmax as a one-hot (matches torch.argmax tie-break).
    maxv = jnp.max(logits, axis=-1, keepdims=True)
    idsm = jnp.min(jnp.where(logits == maxv, iota_bv, vocab),
                   axis=-1, keepdims=True)
    return (iota_bv == idsm).astype(jnp.float32)


def autoencoder_kernel(
    # ---- inputs ----
    tf_ref,        # (T,)      i32  SMEM  teacher-forcing flags per step
    enc_ids_ref,   # (T*B, 1)  i32  VMEM  encoder token ids (time-major flat)
    len_ref,       # (B, 1)    i32  VMEM  sequence lengths
    tgt_ids_ref,   # (T, B, 1) i32  VMEM  target token ids (time-major)
    e_emb_ref,     # (V, E)
    e_g_ref, e_b_ref,      # (1, E)
    e_wih_ref,     # (E, 4H)
    e_whh_ref,     # (H, 4H)
    e_bias_ref,    # (1, 4H)   b_ih + b_hh
    d_emb_ref,     # (V, E)
    d_g_ref, d_b_ref,      # (1, E)
    d_wih_ref,     # (E, 4H)
    d_whh_ref,     # (H, 4H)
    d_bias_ref,    # (1, 4H)   b_ih + b_hh
    d_wlin_ref,    # (H, V)
    d_blin_ref,    # (1, V)
    # ---- outputs ----
    out_ref,       # (B, T*V) f32  lane-dense logits; step 0 stays zero
    # ---- scratch ----
    xw_s,          # (T*B, 4H) f32 staged encoder x @ W_ih + bias
):
    T = tf_ref.shape[0]
    B = len_ref.shape[0]
    H = e_whh_ref.shape[0]
    V = d_wlin_ref.shape[1]
    f32 = jnp.float32

    # ---------- hoisted small loop-invariant loads (weights fed to the MXU
    # are intentionally NOT hoisted; they are re-loaded at each use site to
    # keep vreg pressure low across the unrolled recurrences) ----------
    lens = len_ref[...]
    e_g, e_b = e_g_ref[...], e_b_ref[...]
    e_bias = e_bias_ref[...]
    d_emb = d_emb_ref[...]
    d_g, d_b = d_g_ref[...], d_b_ref[...]
    d_bias = d_bias_ref[...]
    d_blin = d_blin_ref[...]

    # ============================ encoder ============================
    # Non-recurrent path for all T steps at once:
    # one-hot -> embedding matmul -> LayerNorm -> x @ W_ih + (b_ih + b_hh),
    # staged into VMEM scratch; the recurrence re-loads per-step slices.
    ids_all = enc_ids_ref[...]                                       # (T*B, 1)
    iota_tb_v = lax.broadcasted_iota(jnp.int32, (T * B, V), 1)
    oh_all = (iota_tb_v == ids_all).astype(f32)                      # (T*B, V)
    x_all = jnp.dot(oh_all, e_emb_ref[...], preferred_element_type=f32)
    x_all = _layernorm(x_all, e_g, e_b)
    xw_s[...] = (jnp.dot(x_all, e_wih_ref[...], preferred_element_type=f32)
                 + e_bias)                                           # (T*B, 4H)

    h = jnp.zeros((B, H), f32)
    c = jnp.zeros((B, H), f32)
    # Fully-unrolled recurrence; only h @ W_hh sits on the serial chain.
    for t in range(T):
        xw_t = xw_s[pl.ds(t * B, B), :]                              # (B, 4H) vld
        gates = xw_t + jnp.dot(h, e_whh_ref[...],
                               preferred_element_type=f32)           # (B, 4H)
        sg = jax.nn.sigmoid(gates)      # full-vreg EUP pass
        th = jnp.tanh(gates)            # full-vreg EUP pass
        i_g = sg[:, 0:H]
        f_g = sg[:, H:2 * H]
        g_g = th[:, 2 * H:3 * H]
        o_g = sg[:, 3 * H:4 * H]
        c_new = f_g * c + i_g * g_g
        h_new = o_g * jnp.tanh(c_new)
        # pack_padded_sequence equivalent: freeze states past each seq's end
        mask = t < lens                                              # (B, 1)
        h = jnp.where(mask, h_new, h)
        c = jnp.where(mask, c_new, c)

    # ============================ decoder ============================
    iota_bv = lax.broadcasted_iota(jnp.int32, (B, V), 1)
    tok = (iota_bv == tgt_ids_ref[0]).astype(f32)                    # targets[:, 0]
    step_logits = [jnp.zeros((B, V), f32)]                           # preds[:, 0, :] = 0

    for t in range(1, T):
        # h-path matmul: h is known at step start, can issue immediately and
        # drain while the x-path (emb matmul -> LayerNorm) is still running.
        hg = jnp.dot(h, d_whh_ref[...], preferred_element_type=f32)  # (B, 4H)

        x = jnp.dot(tok, d_emb, preferred_element_type=f32)          # (B, E)
        x = _layernorm(x, d_g, d_b)
        xg = jnp.dot(x, d_wih_ref[...], preferred_element_type=f32)  # (B, 4H)

        gates = hg + xg + d_bias
        sg = jax.nn.sigmoid(gates)
        th = jnp.tanh(gates)
        i_g = sg[:, 0:H]
        f_g = sg[:, H:2 * H]
        g_g = th[:, 2 * H:3 * H]
        o_g = sg[:, 3 * H:4 * H]
        c = f_g * c + i_g * g_g
        h = o_g * jnp.tanh(c)

        # Residual (res_co=True, E == total_hiddens -> plain add), then Linear.
        res = x + h
        logits = (jnp.dot(res, d_wlin_ref[...], preferred_element_type=f32)
                  + d_blin)                                          # (B, V)
        step_logits.append(logits)

        if t < T - 1:  # feedback token on the last step is never used
            tfv = tf_ref[t]
            tgt_next = tgt_ids_ref[t]                                # (B, 1)
            # Value-returning cond keeps tok in vregs and still skips the
            # argmax XLU reductions on teacher-forced steps.
            tok = lax.cond(
                tfv == 1,
                lambda tgt=tgt_next: (iota_bv == tgt).astype(f32),
                lambda lg=logits: _argmax_onehot(lg, iota_bv, V),
            )

    # Single lane-dense (B, T*V) = (2, 128) writeback.
    out_ref[...] = jnp.concatenate(step_logits, axis=-1)


@partial(jax.jit, static_argnames=("vocab_size",))
def autoencoder_forward(inputs_sequence, inputs_length, targets_sequence,
                        tf_flags, enc_params, dec_params, vocab_size):
    B, T = inputs_sequence.shape
    V = vocab_size
    H = enc_params["whh_t"].shape[0]

    # glue: ids only (one-hots are built in-kernel), time-major layouts
    enc_ids = jnp.transpose(inputs_sequence).reshape(T * B, 1).astype(jnp.int32)
    tgt_ids = jnp.transpose(targets_sequence).reshape(T, B, 1).astype(jnp.int32)
    lengths = inputs_length.astype(jnp.int32).reshape(B, 1)

    vmem = pl.BlockSpec(memory_space=pltpu.MemorySpace.VMEM)
    smem = pl.BlockSpec(memory_space=pltpu.MemorySpace.SMEM)

    out = pl.pallas_call(
        autoencoder_kernel,
        out_shape=jax.ShapeDtypeStruct((B, T * V), jnp.float32),
        in_specs=[smem] + [vmem] * 17,
        out_specs=vmem,
        scratch_shapes=[pltpu.VMEM((T * B, 4 * H), jnp.float32)],
    )(tf_flags.astype(jnp.int32), enc_ids, lengths, tgt_ids,
      enc_params["emb"], enc_params["ln_g"], enc_params["ln_b"],
      enc_params["wih_t"], enc_params["whh_t"], enc_params["bias"],
      dec_params["emb"], dec_params["ln_g"], dec_params["ln_b"],
      dec_params["wih_t"], dec_params["whh_t"], dec_params["bias"],
      dec_params["wlin_t"], dec_params["blin"])
    return out.reshape(B, T, V)                                      # (B, T, V)


if __name__ == "__main__":
    B, T, V, E, H = 2, 8, 16, 32, 32   # embedding_dim == hidden_units -> no proj

    key = jax.random.PRNGKey(0)
    keys = jax.random.split(key, 12)

    def u(k, shape, scale=0.1):
        return jax.random.uniform(k, shape, jnp.float32, -scale, scale)

    enc_params = dict(
        emb=u(keys[0], (V, E), 1.0),
        ln_g=jnp.ones((1, E), jnp.float32),
        ln_b=jnp.zeros((1, E), jnp.float32),
        wih_t=u(keys[1], (E, 4 * H)),
        whh_t=u(keys[2], (H, 4 * H)),
        bias=u(keys[3], (1, 4 * H)),      # b_ih + b_hh combined
    )
    dec_params = dict(
        emb=u(keys[4], (V, E), 1.0),
        ln_g=jnp.ones((1, E), jnp.float32),
        ln_b=jnp.zeros((1, E), jnp.float32),
        wih_t=u(keys[5], (E, 4 * H)),
        whh_t=u(keys[6], (H, 4 * H)),
        bias=u(keys[7], (1, 4 * H)),      # b_ih + b_hh combined
        wlin_t=u(keys[8], (H, V)),
        blin=u(keys[9], (1, V)),
    )

    inputs_sequence = jax.random.randint(keys[10], (B, T), 0, V, jnp.int32)
    targets_sequence = jax.random.randint(keys[11], (B, T), 0, V, jnp.int32)
    inputs_length = jnp.array([T, T - 3], jnp.int32)

    # teacher-forcing decisions (PyTorch uses Python `random` per step)
    random.seed(0)
    teacher_forcing_ratio = 0.4
    tf_flags = jnp.array(
        [0] + [1 if random.random() < teacher_forcing_ratio else 0
               for _ in range(1, T)], jnp.int32)

    preds = autoencoder_forward(inputs_sequence, inputs_length,
                                targets_sequence, tf_flags,
                                enc_params, dec_params, V)
    preds = jax.block_until_ready(preds)
    assert preds.shape == (B, T, V)
    assert bool(jnp.all(preds[:, 0, :] == 0.0))
    assert bool(jnp.all(jnp.isfinite(preds)))
    print("KERNEL_OK")
</pallas_src>

<mosaic_0001>
module attributes {stable_mosaic.version = 11 : i64} {
  func.func @autoencoder_kernel(%arg0: memref<8xi32, #tpu.memory_space<smem>>, %arg1: memref<16x1xi32, #tpu.memory_space<vmem>>, %arg2: memref<2x1xi32, #tpu.memory_space<vmem>>, %arg3: memref<8x2x1xi32, #tpu.memory_space<vmem>>, %arg4: memref<16x32xf32, #tpu.memory_space<vmem>>, %arg5: memref<1x32xf32, #tpu.memory_space<vmem>>, %arg6: memref<1x32xf32, #tpu.memory_space<vmem>>, %arg7: memref<32x128xf32, #tpu.memory_space<vmem>>, %arg8: memref<32x128xf32, #tpu.memory_space<vmem>>, %arg9: memref<1x128xf32, #tpu.memory_space<vmem>>, %arg10: memref<16x32xf32, #tpu.memory_space<vmem>>, %arg11: memref<1x32xf32, #tpu.memory_space<vmem>>, %arg12: memref<1x32xf32, #tpu.memory_space<vmem>>, %arg13: memref<32x128xf32, #tpu.memory_space<vmem>>, %arg14: memref<32x128xf32, #tpu.memory_space<vmem>>, %arg15: memref<1x128xf32, #tpu.memory_space<vmem>>, %arg16: memref<32x16xf32, #tpu.memory_space<vmem>>, %arg17: memref<1x16xf32, #tpu.memory_space<vmem>>, %arg18: memref<2x128xf32, #tpu.memory_space<vmem>>, %arg19: memref<16x128xf32, #tpu.memory_space<vmem>>) attributes {dimension_semantics = [], scalar_prefetch = 0 : i64, scratch_operands = 1 : i64, tpu.core_type = #tpu.core_type<tc>} {
    %c0 = arith.constant 0 : index
    %c0_0 = arith.constant 0 : index
    %0 = vector.load %arg2[%c0, %c0_0] : memref<2x1xi32, #tpu.memory_space<vmem>>, vector<2x1xi32>
    %c0_1 = arith.constant 0 : index
    %c0_2 = arith.constant 0 : index
    %1 = vector.load %arg5[%c0_1, %c0_2] : memref<1x32xf32, #tpu.memory_space<vmem>>, vector<1x32xf32>
    %c0_3 = arith.constant 0 : index
    %c0_4 = arith.constant 0 : index
    %2 = vector.load %arg6[%c0_3, %c0_4] : memref<1x32xf32, #tpu.memory_space<vmem>>, vector<1x32xf32>
    %c0_5 = arith.constant 0 : index
    %c0_6 = arith.constant 0 : index
    %3 = vector.load %arg9[%c0_5, %c0_6] : memref<1x128xf32, #tpu.memory_space<vmem>>, vector<1x128xf32>
    %c0_7 = arith.constant 0 : index
    %c0_8 = arith.constant 0 : index
    %4 = vector.load %arg10[%c0_7, %c0_8] : memref<16x32xf32, #tpu.memory_space<vmem>>, vector<16x32xf32>
    %c0_9 = arith.constant 0 : index
    %c0_10 = arith.constant 0 : index
    %5 = vector.load %arg11[%c0_9, %c0_10] : memref<1x32xf32, #tpu.memory_space<vmem>>, vector<1x32xf32>
    %c0_11 = arith.constant 0 : index
    %c0_12 = arith.constant 0 : index
    %6 = vector.load %arg12[%c0_11, %c0_12] : memref<1x32xf32, #tpu.memory_space<vmem>>, vector<1x32xf32>
    %c0_13 = arith.constant 0 : index
    %c0_14 = arith.constant 0 : index
    %7 = vector.load %arg15[%c0_13, %c0_14] : memref<1x128xf32, #tpu.memory_space<vmem>>, vector<1x128xf32>
    %c0_15 = arith.constant 0 : index
    %c0_16 = arith.constant 0 : index
    %8 = vector.load %arg17[%c0_15, %c0_16] : memref<1x16xf32, #tpu.memory_space<vmem>>, vector<1x16xf32>
    %c0_17 = arith.constant 0 : index
    %c0_18 = arith.constant 0 : index
    %9 = vector.load %arg1[%c0_17, %c0_18] : memref<16x1xi32, #tpu.memory_space<vmem>>, vector<16x1xi32>
    %10 = tpu.iota {dimensions = array<i32: 1>} : vector<16x16xi32>
    %11 = vector.broadcast %9 : vector<16x1xi32> to vector<16x16xi32>
    %12 = arith.cmpi eq, %10, %11 : vector<16x16xi32>
    %13 = arith.extui %12 : vector<16x16xi1> to vector<16x16xi32>
    %14 = arith.sitofp %13 : vector<16x16xi32> to vector<16x16xf32>
    %c0_19 = arith.constant 0 : index
    %c0_20 = arith.constant 0 : index
    %15 = vector.load %arg4[%c0_19, %c0_20] : memref<16x32xf32, #tpu.memory_space<vmem>>, vector<16x32xf32>
    %cst = arith.constant dense<0.000000e+00> : vector<16x32xf32>
    %16 = tpu.matmul %14, %15, %cst {dimension_numbers = #tpu.dot_dimension_numbers<[1], [0], [0], [1], [0, 0, 1, 1], [], []>} : vector<16x16xf32>, vector<16x32xf32>, vector<16x32xf32> -> vector<16x32xf32>
    %cst_21 = arith.constant dense<0.000000e+00> : vector<16xf32>
    %17 = vector.multi_reduction <add>, %16, %cst_21 [1] : vector<16x32xf32> to vector<16xf32>
    %18 = vector.shape_cast %17 : vector<16xf32> to vector<16x1xf32>
    %19 = arith.mulf %16, %16 : vector<16x32xf32>
    %cst_22 = arith.constant dense<0.000000e+00> : vector<16xf32>
    %20 = vector.multi_reduction <add>, %19, %cst_22 [1] : vector<16x32xf32> to vector<16xf32>
    %21 = vector.shape_cast %20 : vector<16xf32> to vector<16x1xf32>
    %cst_23 = arith.constant 3.125000e-02 : f32
    %22 = vector.broadcast %cst_23 : f32 to vector<16x1xf32>
    %23 = arith.mulf %18, %22 : vector<16x1xf32>
    %cst_24 = arith.constant 3.125000e-02 : f32
    %24 = vector.broadcast %cst_24 : f32 to vector<16x1xf32>
    %25 = arith.mulf %21, %24 : vector<16x1xf32>
    %26 = arith.mulf %23, %23 : vector<16x1xf32>
    %27 = arith.subf %25, %26 : vector<16x1xf32>
    %cst_25 = arith.constant 0.000000e+00 : f32
    %28 = vector.broadcast %cst_25 : f32 to vector<16x1xf32>
    %29 = arith.maximumf %27, %28 : vector<16x1xf32>
    %30 = vector.broadcast %23 : vector<16x1xf32> to vector<16x32xf32>
    %31 = arith.subf %16, %30 : vector<16x32xf32>
    %cst_26 = arith.constant 9.99999974E-6 : f32
    %32 = vector.broadcast %cst_26 : f32 to vector<16x1xf32>
    %33 = arith.addf %29, %32 : vector<16x1xf32>
    %34 = math.rsqrt %33 : vector<16x1xf32>
    %35 = vector.broadcast %34 : vector<16x1xf32> to vector<16x32xf32>
    %36 = arith.mulf %31, %35 : vector<16x32xf32>
    %37 = vector.broadcast %1 : vector<1x32xf32> to vector<16x32xf32>
    %38 = arith.mulf %36, %37 : vector<16x32xf32>
    %39 = vector.broadcast %2 : vector<1x32xf32> to vector<16x32xf32>
    %40 = arith.addf %38, %39 : vector<16x32xf32>
    %c0_27 = arith.constant 0 : index
    %c0_28 = arith.constant 0 : index
    %41 = vector.load %arg7[%c0_27, %c0_28] : memref<32x128xf32, #tpu.memory_space<vmem>>, vector<32x128xf32>
    %cst_29 = arith.constant dense<0.000000e+00> : vector<16x128xf32>
    %42 = tpu.matmul %40, %41, %cst_29 {dimension_numbers = #tpu.dot_dimension_numbers<[1], [0], [0], [1], [0, 0, 1, 1], [], []>} : vector<16x32xf32>, vector<32x128xf32>, vector<16x128xf32> -> vector<16x128xf32>
    %43 = vector.broadcast %3 : vector<1x128xf32> to vector<16x128xf32>
    %44 = arith.addf %42, %43 : vector<16x128xf32>
    %c0_30 = arith.constant 0 : index
    %c0_31 = arith.constant 0 : index
    %45 = vector.load %arg19[%c0_30, %c0_31] : memref<16x128xf32, #tpu.memory_space<vmem>>, vector<16x128xf32>
    tpu.vector_store %arg19[%c0_30, %c0_31], %44 {strides = array<i32>} : memref<16x128xf32, #tpu.memory_space<vmem>>, vector<16x128xf32>,
    %cst_32 = arith.constant 0.000000e+00 : f32
    %46 = vector.broadcast %cst_32 : f32 to vector<2x32xf32>
    %cst_33 = arith.constant 0.000000e+00 : f32
    %47 = vector.broadcast %cst_33 : f32 to vector<2x32xf32>
    %c0_34 = arith.constant 0 : index
    %c0_35 = arith.constant 0 : index
    %48 = vector.load %arg19[%c0_34, %c0_35] : memref<16x128xf32, #tpu.memory_space<vmem>>, vector<2x128xf32>
    %c0_36 = arith.constant 0 : index
    %c0_37 = arith.constant 0 : index
    %49 = vector.load %arg8[%c0_36, %c0_37] : memref<32x128xf32, #tpu.memory_space<vmem>>, vector<32x128xf32>
    %cst_38 = arith.constant dense<0.000000e+00> : vector<2x128xf32>
    %50 = tpu.matmul %46, %49, %cst_38 {dimension_numbers = #tpu.dot_dimension_numbers<[1], [0], [0], [1], [0, 0, 1, 1], [], []>} : vector<2x32xf32>, vector<32x128xf32>, vector<2x128xf32> -> vector<2x128xf32>
    %51 = arith.addf %48, %50 : vector<2x128xf32>
    %52 = arith.negf %51 : vector<2x128xf32>
    %53 = math.exp %52 : vector<2x128xf32>
    %cst_39 = arith.constant 1.000000e+00 : f32
    %54 = vector.broadcast %cst_39 : f32 to vector<2x128xf32>
    %55 = arith.addf %54, %53 : vector<2x128xf32>
    %56 = arith.divf %54, %55 : vector<2x128xf32>
    %57 = math.tanh %51 : vector<2x128xf32>
    %58 = vector.extract_strided_slice %56 {offsets = [0, 0], sizes = [2, 32], strides = [1, 1]} : vector<2x128xf32> to vector<2x32xf32>
    %59 = vector.extract_strided_slice %56 {offsets = [0, 32], sizes = [2, 32], strides = [1, 1]} : vector<2x128xf32> to vector<2x32xf32>
    %60 = vector.extract_strided_slice %57 {offsets = [0, 64], sizes = [2, 32], strides = [1, 1]} : vector<2x128xf32> to vector<2x32xf32>
    %61 = vector.extract_strided_slice %56 {offsets = [0, 96], sizes = [2, 32], strides = [1, 1]} : vector<2x128xf32> to vector<2x32xf32>
    %62 = arith.mulf %59, %47 : vector<2x32xf32>
    %63 = arith.mulf %58, %60 : vector<2x32xf32>
    %64 = arith.addf %62, %63 : vector<2x32xf32>
    %65 = math.tanh %64 : vector<2x32xf32>
    %66 = arith.mulf %61, %65 : vector<2x32xf32>
    %c0_i32 = arith.constant 0 : i32
    %67 = vector.broadcast %c0_i32 : i32 to vector<2x1xi32>
    %68 = arith.cmpi sgt, %0, %67 : vector<2x1xi32>
    %69 = vector.shape_cast %68 : vector<2x1xi1> to vector<2x1xi1>
    %70 = vector.broadcast %69 : vector<2x1xi1> to vector<2x32xi1>
    %71 = arith.select %70, %66, %46 : vector<2x32xi1>, vector<2x32xf32>
    %72 = vector.shape_cast %68 : vector<2x1xi1> to vector<2x1xi1>
    %73 = vector.broadcast %72 : vector<2x1xi1> to vector<2x32xi1>
    %74 = arith.select %73, %64, %47 : vector<2x32xi1>, vector<2x32xf32>
    %c2 = arith.constant 2 : index
    %c0_40 = arith.constant 0 : index
    %75 = vector.load %arg19[%c2, %c0_40] : memref<16x128xf32, #tpu.memory_space<vmem>>, vector<2x128xf32>
    %c0_41 = arith.constant 0 : index
    %c0_42 = arith.constant 0 : index
    %76 = vector.load %arg8[%c0_41, %c0_42] : memref<32x128xf32, #tpu.memory_space<vmem>>, vector<32x128xf32>
    %cst_43 = arith.constant dense<0.000000e+00> : vector<2x128xf32>
    %77 = tpu.matmul %71, %76, %cst_43 {dimension_numbers = #tpu.dot_dimension_numbers<[1], [0], [0], [1], [0, 0, 1, 1], [], []>} : vector<2x32xf32>, vector<32x128xf32>, vector<2x128xf32> -> vector<2x128xf32>
    %78 = arith.addf %75, %77 : vector<2x128xf32>
    %79 = arith.negf %78 : vector<2x128xf32>
    %80 = math.exp %79 : vector<2x128xf32>
    %cst_44 = arith.constant 1.000000e+00 : f32
    %81 = vector.broadcast %cst_44 : f32 to vector<2x128xf32>
    %82 = arith.addf %81, %80 : vector<2x128xf32>
    %83 = arith.divf %81, %82 : vector<2x128xf32>
    %84 = math.tanh %78 : vector<2x128xf32>
    %85 = vector.extract_strided_slice %83 {offsets = [0, 0], sizes = [2, 32], strides = [1, 1]} : vector<2x128xf32> to vector<2x32xf32>
    %86 = vector.extract_strided_slice %83 {offsets = [0, 32], sizes = [2, 32], strides = [1, 1]} : vector<2x128xf32> to vector<2x32xf32>
    %87 = vector.extract_strided_slice %84 {offsets = [0, 64], sizes = [2, 32], strides = [1, 1]} : vector<2x128xf32> to vector<2x32xf32>
    %88 = vector.extract_strided_slice %83 {offsets = [0, 96], sizes = [2, 32], strides = [1, 1]} : vector<2x128xf32> to vector<2x32xf32>
    %89 = arith.mulf %86, %74 : vector<2x32xf32>
    %90 = arith.mulf %85, %87 : vector<2x32xf32>
    %91 = arith.addf %89, %90 : vector<2x32xf32>
    %92 = math.tanh %91 : vector<2x32xf32>
    %93 = arith.mulf %88, %92 : vector<2x32xf32>
    %c1_i32 = arith.constant 1 : i32
    %94 = vector.broadcast %c1_i32 : i32 to vector<2x1xi32>
    %95 = arith.cmpi sgt, %0, %94 : vector<2x1xi32>
    %96 = vector.shape_cast %95 : vector<2x1xi1> to vector<2x1xi1>
    %97 = vector.broadcast %96 : vector<2x1xi1> to vector<2x32xi1>
    %98 = arith.select %97, %93, %71 : vector<2x32xi1>, vector<2x32xf32>
    %99 = vector.shape_cast %95 : vector<2x1xi1> to vector<2x1xi1>
    %100 = vector.broadcast %99 : vector<2x1xi1> to vector<2x32xi1>
    %101 = arith.select %100, %91, %74 : vector<2x32xi1>, vector<2x32xf32>
    %c4 = arith.constant 4 : index
    %c0_45 = arith.constant 0 : index
    %102 = vector.load %arg19[%c4, %c0_45] : memref<16x128xf32, #tpu.memory_space<vmem>>, vector<2x128xf32>
    %c0_46 = arith.constant 0 : index
    %c0_47 = arith.constant 0 : index
    %103 = vector.load %arg8[%c0_46, %c0_47] : memref<32x128xf32, #tpu.memory_space<vmem>>, vector<32x128xf32>
    %cst_48 = arith.constant dense<0.000000e+00> : vector<2x128xf32>
    %104 = tpu.matmul %98, %103, %cst_48 {dimension_numbers = #tpu.dot_dimension_numbers<[1], [0], [0], [1], [0, 0, 1, 1], [], []>} : vector<2x32xf32>, vector<32x128xf32>, vector<2x128xf32> -> vector<2x128xf32>
    %105 = arith.addf %102, %104 : vector<2x128xf32>
    %106 = arith.negf %105 : vector<2x128xf32>
    %107 = math.exp %106 : vector<2x128xf32>
    %cst_49 = arith.constant 1.000000e+00 : f32
    %108 = vector.broadcast %cst_49 : f32 to vector<2x128xf32>
    %109 = arith.addf %108, %107 : vector<2x128xf32>
    %110 = arith.divf %108, %109 : vector<2x128xf32>
    %111 = math.tanh %105 : vector<2x128xf32>
    %112 = vector.extract_strided_slice %110 {offsets = [0, 0], sizes = [2, 32], strides = [1, 1]} : vector<2x128xf32> to vector<2x32xf32>
    %113 = vector.extract_strided_slice %110 {offsets = [0, 32], sizes = [2, 32], strides = [1, 1]} : vector<2x128xf32> to vector<2x32xf32>
    %114 = vector.extract_strided_slice %111 {offsets = [0, 64], sizes = [2, 32], strides = [1, 1]} : vector<2x128xf32> to vector<2x32xf32>
    %115 = vector.extract_strided_slice %110 {offsets = [0, 96], sizes = [2, 32], strides = [1, 1]} : vector<2x128xf32> to vector<2x32xf32>
    %116 = arith.mulf %113, %101 : vector<2x32xf32>
    %117 = arith.mulf %112, %114 : vector<2x32xf32>
    %118 = arith.addf %116, %117 : vector<2x32xf32>
    %119 = math.tanh %118 : vector<2x32xf32>
    %120 = arith.mulf %115, %119 : vector<2x32xf32>
    %c2_i32 = arith.constant 2 : i32
    %121 = vector.broadcast %c2_i32 : i32 to vector<2x1xi32>
    %122 = arith.cmpi sgt, %0, %121 : vector<2x1xi32>
    %123 = vector.shape_cast %122 : vector<2x1xi1> to vector<2x1xi1>
    %124 = vector.broadcast %123 : vector<2x1xi1> to vector<2x32xi1>
    %125 = arith.select %124, %120, %98 : vector<2x32xi1>, vector<2x32xf32>
    %126 = vector.shape_cast %122 : vector<2x1xi1> to vector<2x1xi1>
    %127 = vector.broadcast %126 : vector<2x1xi1> to vector<2x32xi1>
    %128 = arith.select %127, %118, %101 : vector<2x32xi1>, vector<2x32xf32>
    %c6 = arith.constant 6 : index
    %c0_50 = arith.constant 0 : index
    %129 = vector.load %arg19[%c6, %c0_50] : memref<16x128xf32, #tpu.memory_space<vmem>>, vector<2x128xf32>
    %c0_51 = arith.constant 0 : index
    %c0_52 = arith.constant 0 : index
    %130 = vector.load %arg8[%c0_51, %c0_52] : memref<32x128xf32, #tpu.memory_space<vmem>>, vector<32x128xf32>
    %cst_53 = arith.constant dense<0.000000e+00> : vector<2x128xf32>
    %131 = tpu.matmul %125, %130, %cst_53 {dimension_numbers = #tpu.dot_dimension_numbers<[1], [0], [0], [1], [0, 0, 1, 1], [], []>} : vector<2x32xf32>, vector<32x128xf32>, vector<2x128xf32> -> vector<2x128xf32>
    %132 = arith.addf %129, %131 : vector<2x128xf32>
    %133 = arith.negf %132 : vector<2x128xf32>
    %134 = math.exp %133 : vector<2x128xf32>
    %cst_54 = arith.constant 1.000000e+00 : f32
    %135 = vector.broadcast %cst_54 : f32 to vector<2x128xf32>
    %136 = arith.addf %135, %134 : vector<2x128xf32>
    %137 = arith.divf %135, %136 : vector<2x128xf32>
    %138 = math.tanh %132 : vector<2x128xf32>
    %139 = vector.extract_strided_slice %137 {offsets = [0, 0], sizes = [2, 32], strides = [1, 1]} : vector<2x128xf32> to vector<2x32xf32>
    %140 = vector.extract_strided_slice %137 {offsets = [0, 32], sizes = [2, 32], strides = [1, 1]} : vector<2x128xf32> to vector<2x32xf32>
    %141 = vector.extract_strided_slice %138 {offsets = [0, 64], sizes = [2, 32], strides = [1, 1]} : vector<2x128xf32> to vector<2x32xf32>
    %142 = vector.extract_strided_slice %137 {offsets = [0, 96], sizes = [2, 32], strides = [1, 1]} : vector<2x128xf32> to vector<2x32xf32>
    %143 = arith.mulf %140, %128 : vector<2x32xf32>
    %144 = arith.mulf %139, %141 : vector<2x32xf32>
    %145 = arith.addf %143, %144 : vector<2x32xf32>
    %146 = math.tanh %145 : vector<2x32xf32>
    %147 = arith.mulf %142, %146 : vector<2x32xf32>
    %c3_i32 = arith.constant 3 : i32
    %148 = vector.broadcast %c3_i32 : i32 to vector<2x1xi32>
    %149 = arith.cmpi sgt, %0, %148 : vector<2x1xi32>
    %150 = vector.shape_cast %149 : vector<2x1xi1> to vector<2x1xi1>
    %151 = vector.broadcast %150 : vector<2x1xi1> to vector<2x32xi1>
    %152 = arith.select %151, %147, %125 : vector<2x32xi1>, vector<2x32xf32>
    %153 = vector.shape_cast %149 : vector<2x1xi1> to vector<2x1xi1>
    %154 = vector.broadcast %153 : vector<2x1xi1> to vector<2x32xi1>
    %155 = arith.select %154, %145, %128 : vector<2x32xi1>, vector<2x32xf32>
    %c8 = arith.constant 8 : index
    %c0_55 = arith.constant 0 : index
    %156 = vector.load %arg19[%c8, %c0_55] : memref<16x128xf32, #tpu.memory_space<vmem>>, vector<2x128xf32>
    %c0_56 = arith.constant 0 : index
    %c0_57 = arith.constant 0 : index
    %157 = vector.load %arg8[%c0_56, %c0_57] : memref<32x128xf32, #tpu.memory_space<vmem>>, vector<32x128xf32>
    %cst_58 = arith.constant dense<0.000000e+00> : vector<2x128xf32>
    %158 = tpu.matmul %152, %157, %cst_58 {dimension_numbers = #tpu.dot_dimension_numbers<[1], [0], [0], [1], [0, 0, 1, 1], [], []>} : vector<2x32xf32>, vector<32x128xf32>, vector<2x128xf32> -> vector<2x128xf32>
    %159 = arith.addf %156, %158 : vector<2x128xf32>
    %160 = arith.negf %159 : vector<2x128xf32>
    %161 = math.exp %160 : vector<2x128xf32>
    %cst_59 = arith.constant 1.000000e+00 : f32
    %162 = vector.broadcast %cst_59 : f32 to vector<2x128xf32>
    %163 = arith.addf %162, %161 : vector<2x128xf32>
    %164 = arith.divf %162, %163 : vector<2x128xf32>
    %165 = math.tanh %159 : vector<2x128xf32>
    %166 = vector.extract_strided_slice %164 {offsets = [0, 0], sizes = [2, 32], strides = [1, 1]} : vector<2x128xf32> to vector<2x32xf32>
    %167 = vector.extract_strided_slice %164 {offsets = [0, 32], sizes = [2, 32], strides = [1, 1]} : vector<2x128xf32> to vector<2x32xf32>
    %168 = vector.extract_strided_slice %165 {offsets = [0, 64], sizes = [2, 32], strides = [1, 1]} : vector<2x128xf32> to vector<2x32xf32>
    %169 = vector.extract_strided_slice %164 {offsets = [0, 96], sizes = [2, 32], strides = [1, 1]} : vector<2x128xf32> to vector<2x32xf32>
    %170 = arith.mulf %167, %155 : vector<2x32xf32>
    %171 = arith.mulf %166, %168 : vector<2x32xf32>
    %172 = arith.addf %170, %171 : vector<2x32xf32>
    %173 = math.tanh %172 : vector<2x32xf32>
    %174 = arith.mulf %169, %173 : vector<2x32xf32>
    %c4_i32 = arith.constant 4 : i32
    %175 = vector.broadcast %c4_i32 : i32 to vector<2x1xi32>
    %176 = arith.cmpi sgt, %0, %175 : vector<2x1xi32>
    %177 = vector.shape_cast %176 : vector<2x1xi1> to vector<2x1xi1>
    %178 = vector.broadcast %177 : vector<2x1xi1> to vector<2x32xi1>
    %179 = arith.select %178, %174, %152 : vector<2x32xi1>, vector<2x32xf32>
    %180 = vector.shape_cast %176 : vector<2x1xi1> to vector<2x1xi1>
    %181 = vector.broadcast %180 : vector<2x1xi1> to vector<2x32xi1>
    %182 = arith.select %181, %172, %155 : vector<2x32xi1>, vector<2x32xf32>
    %c10 = arith.constant 10 : index
    %c0_60 = arith.constant 0 : index
    %183 = vector.load %arg19[%c10, %c0_60] : memref<16x128xf32, #tpu.memory_space<vmem>>, vector<2x128xf32>
    %c0_61 = arith.constant 0 : index
    %c0_62 = arith.constant 0 : index
    %184 = vector.load %arg8[%c0_61, %c0_62] : memref<32x128xf32, #tpu.memory_space<vmem>>, vector<32x128xf32>
    %cst_63 = arith.constant dense<0.000000e+00> : vector<2x128xf32>
    %185 = tpu.matmul %179, %184, %cst_63 {dimension_numbers = #tpu.dot_dimension_numbers<[1], [0], [0], [1], [0, 0, 1, 1], [], []>} : vector<2x32xf32>, vector<32x128xf32>, vector<2x128xf32> -> vector<2x128xf32>
    %186 = arith.addf %183, %185 : vector<2x128xf32>
    %187 = arith.negf %186 : vector<2x128xf32>
    %188 = math.exp %187 : vector<2x128xf32>
    %cst_64 = arith.constant 1.000000e+00 : f32
    %189 = vector.broadcast %cst_64 : f32 to vector<2x128xf32>
    %190 = arith.addf %189, %188 : vector<2x128xf32>
    %191 = arith.divf %189, %190 : vector<2x128xf32>
    %192 = math.tanh %186 : vector<2x128xf32>
    %193 = vector.extract_strided_slice %191 {offsets = [0, 0], sizes = [2, 32], strides = [1, 1]} : vector<2x128xf32> to vector<2x32xf32>
    %194 = vector.extract_strided_slice %191 {offsets = [0, 32], sizes = [2, 32], strides = [1, 1]} : vector<2x128xf32> to vector<2x32xf32>
    %195 = vector.extract_strided_slice %192 {offsets = [0, 64], sizes = [2, 32], strides = [1, 1]} : vector<2x128xf32> to vector<2x32xf32>
    %196 = vector.extract_strided_slice %191 {offsets = [0, 96], sizes = [2, 32], strides = [1, 1]} : vector<2x128xf32> to vector<2x32xf32>
    %197 = arith.mulf %194, %182 : vector<2x32xf32>
    %198 = arith.mulf %193, %195 : vector<2x32xf32>
    %199 = arith.addf %197, %198 : vector<2x32xf32>
    %200 = math.tanh %199 : vector<2x32xf32>
    %201 = arith.mulf %196, %200 : vector<2x32xf32>
    %c5_i32 = arith.constant 5 : i32
    %202 = vector.broadcast %c5_i32 : i32 to vector<2x1xi32>
    %203 = arith.cmpi sgt, %0, %202 : vector<2x1xi32>
    %204 = vector.shape_cast %203 : vector<2x1xi1> to vector<2x1xi1>
    %205 = vector.broadcast %204 : vector<2x1xi1> to vector<2x32xi1>
    %206 = arith.select %205, %201, %179 : vector<2x32xi1>, vector<2x32xf32>
    %207 = vector.shape_cast %203 : vector<2x1xi1> to vector<2x1xi1>
    %208 = vector.broadcast %207 : vector<2x1xi1> to vector<2x32xi1>
    %209 = arith.select %208, %199, %182 : vector<2x32xi1>, vector<2x32xf32>
    %c12 = arith.constant 12 : index
    %c0_65 = arith.constant 0 : index
    %210 = vector.load %arg19[%c12, %c0_65] : memref<16x128xf32, #tpu.memory_space<vmem>>, vector<2x128xf32>
    %c0_66 = arith.constant 0 : index
    %c0_67 = arith.constant 0 : index
    %211 = vector.load %arg8[%c0_66, %c0_67] : memref<32x128xf32, #tpu.memory_space<vmem>>, vector<32x128xf32>
    %cst_68 = arith.constant dense<0.000000e+00> : vector<2x128xf32>
    %212 = tpu.matmul %206, %211, %cst_68 {dimension_numbers = #tpu.dot_dimension_numbers<[1], [0], [0], [1], [0, 0, 1, 1], [], []>} : vector<2x32xf32>, vector<32x128xf32>, vector<2x128xf32> -> vector<2x128xf32>
    %213 = arith.addf %210, %212 : vector<2x128xf32>
    %214 = arith.negf %213 : vector<2x128xf32>
    %215 = math.exp %214 : vector<2x128xf32>
    %cst_69 = arith.constant 1.000000e+00 : f32
    %216 = vector.broadcast %cst_69 : f32 to vector<2x128xf32>
    %217 = arith.addf %216, %215 : vector<2x128xf32>
    %218 = arith.divf %216, %217 : vector<2x128xf32>
    %219 = math.tanh %213 : vector<2x128xf32>
    %220 = vector.extract_strided_slice %218 {offsets = [0, 0], sizes = [2, 32], strides = [1, 1]} : vector<2x128xf32> to vector<2x32xf32>
    %221 = vector.extract_strided_slice %218 {offsets = [0, 32], sizes = [2, 32], strides = [1, 1]} : vector<2x128xf32> to vector<2x32xf32>
    %222 = vector.extract_strided_slice %219 {offsets = [0, 64], sizes = [2, 32], strides = [1, 1]} : vector<2x128xf32> to vector<2x32xf32>
    %223 = vector.extract_strided_slice %218 {offsets = [0, 96], sizes = [2, 32], strides = [1, 1]} : vector<2x128xf32> to vector<2x32xf32>
    %224 = arith.mulf %221, %209 : vector<2x32xf32>
    %225 = arith.mulf %220, %222 : vector<2x32xf32>
    %226 = arith.addf %224, %225 : vector<2x32xf32>
    %227 = math.tanh %226 : vector<2x32xf32>
    %228 = arith.mulf %223, %227 : vector<2x32xf32>
    %c6_i32 = arith.constant 6 : i32
    %229 = vector.broadcast %c6_i32 : i32 to vector<2x1xi32>
    %230 = arith.cmpi sgt, %0, %229 : vector<2x1xi32>
    %231 = vector.shape_cast %230 : vector<2x1xi1> to vector<2x1xi1>
    %232 = vector.broadcast %231 : vector<2x1xi1> to vector<2x32xi1>
    %233 = arith.select %232, %228, %206 : vector<2x32xi1>, vector<2x32xf32>
    %234 = vector.shape_cast %230 : vector<2x1xi1> to vector<2x1xi1>
    %235 = vector.broadcast %234 : vector<2x1xi1> to vector<2x32xi1>
    %236 = arith.select %235, %226, %209 : vector<2x32xi1>, vector<2x32xf32>
    %c14 = arith.constant 14 : index
    %c0_70 = arith.constant 0 : index
    %237 = vector.load %arg19[%c14, %c0_70] : memref<16x128xf32, #tpu.memory_space<vmem>>, vector<2x128xf32>
    %c0_71 = arith.constant 0 : index
    %c0_72 = arith.constant 0 : index
    %238 = vector.load %arg8[%c0_71, %c0_72] : memref<32x128xf32, #tpu.memory_space<vmem>>, vector<32x128xf32>
    %cst_73 = arith.constant dense<0.000000e+00> : vector<2x128xf32>
    %239 = tpu.matmul %233, %238, %cst_73 {dimension_numbers = #tpu.dot_dimension_numbers<[1], [0], [0], [1], [0, 0, 1, 1], [], []>} : vector<2x32xf32>, vector<32x128xf32>, vector<2x128xf32> -> vector<2x128xf32>
    %240 = arith.addf %237, %239 : vector<2x128xf32>
    %241 = arith.negf %240 : vector<2x128xf32>
    %242 = math.exp %241 : vector<2x128xf32>
    %cst_74 = arith.constant 1.000000e+00 : f32
    %243 = vector.broadcast %cst_74 : f32 to vector<2x128xf32>
    %244 = arith.addf %243, %242 : vector<2x128xf32>
    %245 = arith.divf %243, %244 : vector<2x128xf32>
    %246 = math.tanh %240 : vector<2x128xf32>
    %247 = vector.extract_strided_slice %245 {offsets = [0, 0], sizes = [2, 32], strides = [1, 1]} : vector<2x128xf32> to vector<2x32xf32>
    %248 = vector.extract_strided_slice %245 {offsets = [0, 32], sizes = [2, 32], strides = [1, 1]} : vector<2x128xf32> to vector<2x32xf32>
    %249 = vector.extract_strided_slice %246 {offsets = [0, 64], sizes = [2, 32], strides = [1, 1]} : vector<2x128xf32> to vector<2x32xf32>
    %250 = vector.extract_strided_slice %245 {offsets = [0, 96], sizes = [2, 32], strides = [1, 1]} : vector<2x128xf32> to vector<2x32xf32>
    %251 = arith.mulf %248, %236 : vector<2x32xf32>
    %252 = arith.mulf %247, %249 : vector<2x32xf32>
    %253 = arith.addf %251, %252 : vector<2x32xf32>
    %254 = math.tanh %253 : vector<2x32xf32>
    %255 = arith.mulf %250, %254 : vector<2x32xf32>
    %c7_i32 = arith.constant 7 : i32
    %256 = vector.broadcast %c7_i32 : i32 to vector<2x1xi32>
    %257 = arith.cmpi sgt, %0, %256 : vector<2x1xi32>
    %258 = vector.shape_cast %257 : vector<2x1xi1> to vector<2x1xi1>
    %259 = vector.broadcast %258 : vector<2x1xi1> to vector<2x32xi1>
    %260 = arith.select %259, %255, %233 : vector<2x32xi1>, vector<2x32xf32>
    %261 = vector.shape_cast %257 : vector<2x1xi1> to vector<2x1xi1>
    %262 = vector.broadcast %261 : vector<2x1xi1> to vector<2x32xi1>
    %263 = arith.select %262, %253, %236 : vector<2x32xi1>, vector<2x32xf32>
    %264 = tpu.iota {dimensions = array<i32: 1>} : vector<2x16xi32>
    %c0_75 = arith.constant 0 : index
    %c0_76 = arith.constant 0 : index
    %c0_77 = arith.constant 0 : index
    %265 = vector.load %arg3[%c0_75, %c0_76, %c0_77] : memref<8x2x1xi32, #tpu.memory_space<vmem>>, vector<1x2x1xi32>
    %266 = vector.shape_cast %265 : vector<1x2x1xi32> to vector<2x1xi32>
    %267 = vector.broadcast %266 : vector<2x1xi32> to vector<2x16xi32>
    %268 = arith.cmpi eq, %264, %267 : vector<2x16xi32>
    %269 = arith.extui %268 : vector<2x16xi1> to vector<2x16xi32>
    %270 = arith.sitofp %269 : vector<2x16xi32> to vector<2x16xf32>
    %cst_78 = arith.constant 0.000000e+00 : f32
    %271 = vector.broadcast %cst_78 : f32 to vector<2x16xf32>
    %c0_79 = arith.constant 0 : index
    %c0_80 = arith.constant 0 : index
    %272 = vector.load %arg14[%c0_79, %c0_80] : memref<32x128xf32, #tpu.memory_space<vmem>>, vector<32x128xf32>
    %cst_81 = arith.constant dense<0.000000e+00> : vector<2x128xf32>
    %273 = tpu.matmul %260, %272, %cst_81 {dimension_numbers = #tpu.dot_dimension_numbers<[1], [0], [0], [1], [0, 0, 1, 1], [], []>} : vector<2x32xf32>, vector<32x128xf32>, vector<2x128xf32> -> vector<2x128xf32>
    %cst_82 = arith.constant dense<0.000000e+00> : vector<2x32xf32>
    %274 = tpu.matmul %270, %4, %cst_82 {dimension_numbers = #tpu.dot_dimension_numbers<[1], [0], [0], [1], [0, 0, 1, 1], [], []>} : vector<2x16xf32>, vector<16x32xf32>, vector<2x32xf32> -> vector<2x32xf32>
    %cst_83 = arith.constant dense<0.000000e+00> : vector<2xf32>
    %275 = vector.multi_reduction <add>, %274, %cst_83 [1] : vector<2x32xf32> to vector<2xf32>
    %276 = vector.shape_cast %275 : vector<2xf32> to vector<2x1xf32>
    %277 = arith.mulf %274, %274 : vector<2x32xf32>
    %cst_84 = arith.constant dense<0.000000e+00> : vector<2xf32>
    %278 = vector.multi_reduction <add>, %277, %cst_84 [1] : vector<2x32xf32> to vector<2xf32>
    %279 = vector.shape_cast %278 : vector<2xf32> to vector<2x1xf32>
    %cst_85 = arith.constant 3.125000e-02 : f32
    %280 = vector.broadcast %cst_85 : f32 to vector<2x1xf32>
    %281 = arith.mulf %276, %280 : vector<2x1xf32>
    %cst_86 = arith.constant 3.125000e-02 : f32
    %282 = vector.broadcast %cst_86 : f32 to vector<2x1xf32>
    %283 = arith.mulf %279, %282 : vector<2x1xf32>
    %284 = arith.mulf %281, %281 : vector<2x1xf32>
    %285 = arith.subf %283, %284 : vector<2x1xf32>
    %cst_87 = arith.constant 0.000000e+00 : f32
    %286 = vector.broadcast %cst_87 : f32 to vector<2x1xf32>
    %287 = arith.maximumf %285, %286 : vector<2x1xf32>
    %288 = vector.broadcast %281 : vector<2x1xf32> to vector<2x32xf32>
    %289 = arith.subf %274, %288 : vector<2x32xf32>
    %cst_88 = arith.constant 9.99999974E-6 : f32
    %290 = vector.broadcast %cst_88 : f32 to vector<2x1xf32>
    %291 = arith.addf %287, %290 : vector<2x1xf32>
    %292 = math.rsqrt %291 : vector<2x1xf32>
    %293 = vector.broadcast %292 : vector<2x1xf32> to vector<2x32xf32>
    %294 = arith.mulf %289, %293 : vector<2x32xf32>
    %295 = vector.broadcast %5 : vector<1x32xf32> to vector<2x32xf32>
    %296 = arith.mulf %294, %295 : vector<2x32xf32>
    %297 = vector.broadcast %6 : vector<1x32xf32> to vector<2x32xf32>
    %298 = arith.addf %296, %297 : vector<2x32xf32>
    %c0_89 = arith.constant 0 : index
    %c0_90 = arith.constant 0 : index
    %299 = vector.load %arg13[%c0_89, %c0_90] : memref<32x128xf32, #tpu.memory_space<vmem>>, vector<32x128xf32>
    %cst_91 = arith.constant dense<0.000000e+00> : vector<2x128xf32>
    %300 = tpu.matmul %298, %299, %cst_91 {dimension_numbers = #tpu.dot_dimension_numbers<[1], [0], [0], [1], [0, 0, 1, 1], [], []>} : vector<2x32xf32>, vector<32x128xf32>, vector<2x128xf32> -> vector<2x128xf32>
    %301 = arith.addf %273, %300 : vector<2x128xf32>
    %302 = vector.broadcast %7 : vector<1x128xf32> to vector<2x128xf32>
    %303 = arith.addf %301, %302 : vector<2x128xf32>
    %304 = arith.negf %303 : vector<2x128xf32>
    %305 = math.exp %304 : vector<2x128xf32>
    %cst_92 = arith.constant 1.000000e+00 : f32
    %306 = vector.broadcast %cst_92 : f32 to vector<2x128xf32>
    %307 = arith.addf %306, %305 : vector<2x128xf32>
    %308 = arith.divf %306, %307 : vector<2x128xf32>
    %309 = math.tanh %303 : vector<2x128xf32>
    %310 = vector.extract_strided_slice %308 {offsets = [0, 0], sizes = [2, 32], strides = [1, 1]} : vector<2x128xf32> to vector<2x32xf32>
    %311 = vector.extract_strided_slice %308 {offsets = [0, 32], sizes = [2, 32], strides = [1, 1]} : vector<2x128xf32> to vector<2x32xf32>
    %312 = vector.extract_strided_slice %309 {offsets = [0, 64], sizes = [2, 32], strides = [1, 1]} : vector<2x128xf32> to vector<2x32xf32>
    %313 = vector.extract_strided_slice %308 {offsets = [0, 96], sizes = [2, 32], strides = [1, 1]} : vector<2x128xf32> to vector<2x32xf32>
    %314 = arith.mulf %311, %263 : vector<2x32xf32>
    %315 = arith.mulf %310, %312 : vector<2x32xf32>
    %316 = arith.addf %314, %315 : vector<2x32xf32>
    %317 = math.tanh %316 : vector<2x32xf32>
    %318 = arith.mulf %313, %317 : vector<2x32xf32>
    %319 = arith.addf %298, %318 : vector<2x32xf32>
    %c0_93 = arith.constant 0 : index
    %c0_94 = arith.constant 0 : index
    %320 = vector.load %arg16[%c0_93, %c0_94] : memref<32x16xf32, #tpu.memory_space<vmem>>, vector<32x16xf32>
    %cst_95 = arith.constant dense<0.000000e+00> : vector<2x16xf32>
    %321 = tpu.matmul %319, %320, %cst_95 {dimension_numbers = #tpu.dot_dimension_numbers<[1], [0], [0], [1], [0, 0, 1, 1], [], []>} : vector<2x32xf32>, vector<32x16xf32>, vector<2x16xf32> -> vector<2x16xf32>
    %322 = vector.broadcast %8 : vector<1x16xf32> to vector<2x16xf32>
    %323 = arith.addf %321, %322 : vector<2x16xf32>
    %c1 = arith.constant 1 : index
    %324 = memref.load %arg0[%c1] : memref<8xi32, #tpu.memory_space<smem>>
    %c1_96 = arith.constant 1 : index
    %c0_97 = arith.constant 0 : index
    %c0_98 = arith.constant 0 : index
    %325 = vector.load %arg3[%c1_96, %c0_97, %c0_98] : memref<8x2x1xi32, #tpu.memory_space<vmem>>, vector<1x2x1xi32>
    %326 = vector.shape_cast %325 : vector<1x2x1xi32> to vector<2x1xi32>
    %c1_i32_99 = arith.constant 1 : i32
    %327 = arith.cmpi eq, %324, %c1_i32_99 : i32
    %328 = arith.extui %327 : i1 to i32
    %c0_i32_100 = arith.constant 0 : i32
    %329 = arith.cmpi ne, %328, %c0_i32_100 : i32
    %330 = scf.if %329 -> (vector<2x16xf32>) {
      %680 = vector.broadcast %326 : vector<2x1xi32> to vector<2x16xi32>
      %681 = arith.cmpi eq, %264, %680 : vector<2x16xi32>
      %682 = arith.extui %681 : vector<2x16xi1> to vector<2x16xi32>
      %683 = arith.sitofp %682 : vector<2x16xi32> to vector<2x16xf32>
      scf.yield %683 : vector<2x16xf32>
    } else {
      %cst_233 = arith.constant dense<0xFF800000> : vector<2xf32>
      %680 = vector.multi_reduction <maximumf>, %323, %cst_233 [1] : vector<2x16xf32> to vector<2xf32>
      %681 = vector.shape_cast %680 : vector<2xf32> to vector<2x1xf32>
      %682 = vector.broadcast %681 : vector<2x1xf32> to vector<2x16xf32>
      %683 = arith.cmpf oeq, %323, %682 : vector<2x16xf32>
      %c16_i32 = arith.constant 16 : i32
      %684 = vector.broadcast %c16_i32 : i32 to vector<2x16xi32>
      %685 = arith.select %683, %264, %684 : vector<2x16xi1>, vector<2x16xi32>
      %cst_234 = arith.constant dense<2147483647> : vector<2xi32>
      %686 = vector.multi_reduction <minsi>, %685, %cst_234 [1] : vector<2x16xi32> to vector<2xi32>
      %687 = vector.shape_cast %686 : vector<2xi32> to vector<2x1xi32>
      %688 = vector.broadcast %687 : vector<2x1xi32> to vector<2x16xi32>
      %689 = arith.cmpi eq, %264, %688 : vector<2x16xi32>
      %690 = arith.extui %689 : vector<2x16xi1> to vector<2x16xi32>
      %691 = arith.sitofp %690 : vector<2x16xi32> to vector<2x16xf32>
      scf.yield %691 : vector<2x16xf32>
    }
    %c0_101 = arith.constant 0 : index
    %c0_102 = arith.constant 0 : index
    %331 = vector.load %arg14[%c0_101, %c0_102] : memref<32x128xf32, #tpu.memory_space<vmem>>, vector<32x128xf32>
    %cst_103 = arith.constant dense<0.000000e+00> : vector<2x128xf32>
    %332 = tpu.matmul %318, %331, %cst_103 {dimension_numbers = #tpu.dot_dimension_numbers<[1], [0], [0], [1], [0, 0, 1, 1], [], []>} : vector<2x32xf32>, vector<32x128xf32>, vector<2x128xf32> -> vector<2x128xf32>
    %cst_104 = arith.constant dense<0.000000e+00> : vector<2x32xf32>
    %333 = tpu.matmul %330, %4, %cst_104 {dimension_numbers = #tpu.dot_dimension_numbers<[1], [0], [0], [1], [0, 0, 1, 1], [], []>} : vector<2x16xf32>, vector<16x32xf32>, vector<2x32xf32> -> vector<2x32xf32>
    %cst_105 = arith.constant dense<0.000000e+00> : vector<2xf32>
    %334 = vector.multi_reduction <add>, %333, %cst_105 [1] : vector<2x32xf32> to vector<2xf32>
    %335 = vector.shape_cast %334 : vector<2xf32> to vector<2x1xf32>
    %336 = arith.mulf %333, %333 : vector<2x32xf32>
    %cst_106 = arith.constant dense<0.000000e+00> : vector<2xf32>
    %337 = vector.multi_reduction <add>, %336, %cst_106 [1] : vector<2x32xf32> to vector<2xf32>
    %338 = vector.shape_cast %337 : vector<2xf32> to vector<2x1xf32>
    %cst_107 = arith.constant 3.125000e-02 : f32
    %339 = vector.broadcast %cst_107 : f32 to vector<2x1xf32>
    %340 = arith.mulf %335, %339 : vector<2x1xf32>
    %cst_108 = arith.constant 3.125000e-02 : f32
    %341 = vector.broadcast %cst_108 : f32 to vector<2x1xf32>
    %342 = arith.mulf %338, %341 : vector<2x1xf32>
    %343 = arith.mulf %340, %340 : vector<2x1xf32>
    %344 = arith.subf %342, %343 : vector<2x1xf32>
    %cst_109 = arith.constant 0.000000e+00 : f32
    %345 = vector.broadcast %cst_109 : f32 to vector<2x1xf32>
    %346 = arith.maximumf %344, %345 : vector<2x1xf32>
    %347 = vector.broadcast %340 : vector<2x1xf32> to vector<2x32xf32>
    %348 = arith.subf %333, %347 : vector<2x32xf32>
    %cst_110 = arith.constant 9.99999974E-6 : f32
    %349 = vector.broadcast %cst_110 : f32 to vector<2x1xf32>
    %350 = arith.addf %346, %349 : vector<2x1xf32>
    %351 = math.rsqrt %350 : vector<2x1xf32>
    %352 = vector.broadcast %351 : vector<2x1xf32> to vector<2x32xf32>
    %353 = arith.mulf %348, %352 : vector<2x32xf32>
    %354 = vector.broadcast %5 : vector<1x32xf32> to vector<2x32xf32>
    %355 = arith.mulf %353, %354 : vector<2x32xf32>
    %356 = vector.broadcast %6 : vector<1x32xf32> to vector<2x32xf32>
    %357 = arith.addf %355, %356 : vector<2x32xf32>
    %c0_111 = arith.constant 0 : index
    %c0_112 = arith.constant 0 : index
    %358 = vector.load %arg13[%c0_111, %c0_112] : memref<32x128xf32, #tpu.memory_space<vmem>>, vector<32x128xf32>
    %cst_113 = arith.constant dense<0.000000e+00> : vector<2x128xf32>
    %359 = tpu.matmul %357, %358, %cst_113 {dimension_numbers = #tpu.dot_dimension_numbers<[1], [0], [0], [1], [0, 0, 1, 1], [], []>} : vector<2x32xf32>, vector<32x128xf32>, vector<2x128xf32> -> vector<2x128xf32>
    %360 = arith.addf %332, %359 : vector<2x128xf32>
    %361 = vector.broadcast %7 : vector<1x128xf32> to vector<2x128xf32>
    %362 = arith.addf %360, %361 : vector<2x128xf32>
    %363 = arith.negf %362 : vector<2x128xf32>
    %364 = math.exp %363 : vector<2x128xf32>
    %cst_114 = arith.constant 1.000000e+00 : f32
    %365 = vector.broadcast %cst_114 : f32 to vector<2x128xf32>
    %366 = arith.addf %365, %364 : vector<2x128xf32>
    %367 = arith.divf %365, %366 : vector<2x128xf32>
    %368 = math.tanh %362 : vector<2x128xf32>
    %369 = vector.extract_strided_slice %367 {offsets = [0, 0], sizes = [2, 32], strides = [1, 1]} : vector<2x128xf32> to vector<2x32xf32>
    %370 = vector.extract_strided_slice %367 {offsets = [0, 32], sizes = [2, 32], strides = [1, 1]} : vector<2x128xf32> to vector<2x32xf32>
    %371 = vector.extract_strided_slice %368 {offsets = [0, 64], sizes = [2, 32], strides = [1, 1]} : vector<2x128xf32> to vector<2x32xf32>
    %372 = vector.extract_strided_slice %367 {offsets = [0, 96], sizes = [2, 32], strides = [1, 1]} : vector<2x128xf32> to vector<2x32xf32>
    %373 = arith.mulf %370, %316 : vector<2x32xf32>
    %374 = arith.mulf %369, %371 : vector<2x32xf32>
    %375 = arith.addf %373, %374 : vector<2x32xf32>
    %376 = math.tanh %375 : vector<2x32xf32>
    %377 = arith.mulf %372, %376 : vector<2x32xf32>
    %378 = arith.addf %357, %377 : vector<2x32xf32>
    %c0_115 = arith.constant 0 : index
    %c0_116 = arith.constant 0 : index
    %379 = vector.load %arg16[%c0_115, %c0_116] : memref<32x16xf32, #tpu.memory_space<vmem>>, vector<32x16xf32>
    %cst_117 = arith.constant dense<0.000000e+00> : vector<2x16xf32>
    %380 = tpu.matmul %378, %379, %cst_117 {dimension_numbers = #tpu.dot_dimension_numbers<[1], [0], [0], [1], [0, 0, 1, 1], [], []>} : vector<2x32xf32>, vector<32x16xf32>, vector<2x16xf32> -> vector<2x16xf32>
    %381 = vector.broadcast %8 : vector<1x16xf32> to vector<2x16xf32>
    %382 = arith.addf %380, %381 : vector<2x16xf32>
    %c2_118 = arith.constant 2 : index
    %383 = memref.load %arg0[%c2_118] : memref<8xi32, #tpu.memory_space<smem>>
    %c2_119 = arith.constant 2 : index
    %c0_120 = arith.constant 0 : index
    %c0_121 = arith.constant 0 : index
    %384 = vector.load %arg3[%c2_119, %c0_120, %c0_121] : memref<8x2x1xi32, #tpu.memory_space<vmem>>, vector<1x2x1xi32>
    %385 = vector.shape_cast %384 : vector<1x2x1xi32> to vector<2x1xi32>
    %c1_i32_122 = arith.constant 1 : i32
    %386 = arith.cmpi eq, %383, %c1_i32_122 : i32
    %387 = arith.extui %386 : i1 to i32
    %c0_i32_123 = arith.constant 0 : i32
    %388 = arith.cmpi ne, %387, %c0_i32_123 : i32
    %389 = scf.if %388 -> (vector<2x16xf32>) {
      %680 = vector.broadcast %385 : vector<2x1xi32> to vector<2x16xi32>
      %681 = arith.cmpi eq, %264, %680 : vector<2x16xi32>
      %682 = arith.extui %681 : vector<2x16xi1> to vector<2x16xi32>
      %683 = arith.sitofp %682 : vector<2x16xi32> to vector<2x16xf32>
      scf.yield %683 : vector<2x16xf32>
    } else {
      %cst_233 = arith.constant dense<0xFF800000> : vector<2xf32>
      %680 = vector.multi_reduction <maximumf>, %382, %cst_233 [1] : vector<2x16xf32> to vector<2xf32>
      %681 = vector.shape_cast %680 : vector<2xf32> to vector<2x1xf32>
      %682 = vector.broadcast %681 : vector<2x1xf32> to vector<2x16xf32>
      %683 = arith.cmpf oeq, %382, %682 : vector<2x16xf32>
      %c16_i32 = arith.constant 16 : i32
      %684 = vector.broadcast %c16_i32 : i32 to vector<2x16xi32>
      %685 = arith.select %683, %264, %684 : vector<2x16xi1>, vector<2x16xi32>
      %cst_234 = arith.constant dense<2147483647> : vector<2xi32>
      %686 = vector.multi_reduction <minsi>, %685, %cst_234 [1] : vector<2x16xi32> to vector<2xi32>
      %687 = vector.shape_cast %686 : vector<2xi32> to vector<2x1xi32>
      %688 = vector.broadcast %687 : vector<2x1xi32> to vector<2x16xi32>
      %689 = arith.cmpi eq, %264, %688 : vector<2x16xi32>
      %690 = arith.extui %689 : vector<2x16xi1> to vector<2x16xi32>
      %691 = arith.sitofp %690 : vector<2x16xi32> to vector<2x16xf32>
      scf.yield %691 : vector<2x16xf32>
    }
    %c0_124 = arith.constant 0 : index
    %c0_125 = arith.constant 0 : index
    %390 = vector.load %arg14[%c0_124, %c0_125] : memref<32x128xf32, #tpu.memory_space<vmem>>, vector<32x128xf32>
    %cst_126 = arith.constant dense<0.000000e+00> : vector<2x128xf32>
    %391 = tpu.matmul %377, %390, %cst_126 {dimension_numbers = #tpu.dot_dimension_numbers<[1], [0], [0], [1], [0, 0, 1, 1], [], []>} : vector<2x32xf32>, vector<32x128xf32>, vector<2x128xf32> -> vector<2x128xf32>
    %cst_127 = arith.constant dense<0.000000e+00> : vector<2x32xf32>
    %392 = tpu.matmul %389, %4, %cst_127 {dimension_numbers = #tpu.dot_dimension_numbers<[1], [0], [0], [1], [0, 0, 1, 1], [], []>} : vector<2x16xf32>, vector<16x32xf32>, vector<2x32xf32> -> vector<2x32xf32>
    %cst_128 = arith.constant dense<0.000000e+00> : vector<2xf32>
    %393 = vector.multi_reduction <add>, %392, %cst_128 [1] : vector<2x32xf32> to vector<2xf32>
    %394 = vector.shape_cast %393 : vector<2xf32> to vector<2x1xf32>
    %395 = arith.mulf %392, %392 : vector<2x32xf32>
    %cst_129 = arith.constant dense<0.000000e+00> : vector<2xf32>
    %396 = vector.multi_reduction <add>, %395, %cst_129 [1] : vector<2x32xf32> to vector<2xf32>
    %397 = vector.shape_cast %396 : vector<2xf32> to vector<2x1xf32>
    %cst_130 = arith.constant 3.125000e-02 : f32
    %398 = vector.broadcast %cst_130 : f32 to vector<2x1xf32>
    %399 = arith.mulf %394, %398 : vector<2x1xf32>
    %cst_131 = arith.constant 3.125000e-02 : f32
    %400 = vector.broadcast %cst_131 : f32 to vector<2x1xf32>
    %401 = arith.mulf %397, %400 : vector<2x1xf32>
    %402 = arith.mulf %399, %399 : vector<2x1xf32>
    %403 = arith.subf %401, %402 : vector<2x1xf32>
    %cst_132 = arith.constant 0.000000e+00 : f32
    %404 = vector.broadcast %cst_132 : f32 to vector<2x1xf32>
    %405 = arith.maximumf %403, %404 : vector<2x1xf32>
    %406 = vector.broadcast %399 : vector<2x1xf32> to vector<2x32xf32>
    %407 = arith.subf %392, %406 : vector<2x32xf32>
    %cst_133 = arith.constant 9.99999974E-6 : f32
    %408 = vector.broadcast %cst_133 : f32 to vector<2x1xf32>
    %409 = arith.addf %405, %408 : vector<2x1xf32>
    %410 = math.rsqrt %409 : vector<2x1xf32>
    %411 = vector.broadcast %410 : vector<2x1xf32> to vector<2x32xf32>
    %412 = arith.mulf %407, %411 : vector<2x32xf32>
    %413 = vector.broadcast %5 : vector<1x32xf32> to vector<2x32xf32>
    %414 = arith.mulf %412, %413 : vector<2x32xf32>
    %415 = vector.broadcast %6 : vector<1x32xf32> to vector<2x32xf32>
    %416 = arith.addf %414, %415 : vector<2x32xf32>
    %c0_134 = arith.constant 0 : index
    %c0_135 = arith.constant 0 : index
    %417 = vector.load %arg13[%c0_134, %c0_135] : memref<32x128xf32, #tpu.memory_space<vmem>>, vector<32x128xf32>
    %cst_136 = arith.constant dense<0.000000e+00> : vector<2x128xf32>
    %418 = tpu.matmul %416, %417, %cst_136 {dimension_numbers = #tpu.dot_dimension_numbers<[1], [0], [0], [1], [0, 0, 1, 1], [], []>} : vector<2x32xf32>, vector<32x128xf32>, vector<2x128xf32> -> vector<2x128xf32>
    %419 = arith.addf %391, %418 : vector<2x128xf32>
    %420 = vector.broadcast %7 : vector<1x128xf32> to vector<2x128xf32>
    %421 = arith.addf %419, %420 : vector<2x128xf32>
    %422 = arith.negf %421 : vector<2x128xf32>
    %423 = math.exp %422 : vector<2x128xf32>
    %cst_137 = arith.constant 1.000000e+00 : f32
    %424 = vector.broadcast %cst_137 : f32 to vector<2x128xf32>
    %425 = arith.addf %424, %423 : vector<2x128xf32>
    %426 = arith.divf %424, %425 : vector<2x128xf32>
    %427 = math.tanh %421 : vector<2x128xf32>
    %428 = vector.extract_strided_slice %426 {offsets = [0, 0], sizes = [2, 32], strides = [1, 1]} : vector<2x128xf32> to vector<2x32xf32>
    %429 = vector.extract_strided_slice %426 {offsets = [0, 32], sizes = [2, 32], strides = [1, 1]} : vector<2x128xf32> to vector<2x32xf32>
    %430 = vector.extract_strided_slice %427 {offsets = [0, 64], sizes = [2, 32], strides = [1, 1]} : vector<2x128xf32> to vector<2x32xf32>
    %431 = vector.extract_strided_slice %426 {offsets = [0, 96], sizes = [2, 32], strides = [1, 1]} : vector<2x128xf32> to vector<2x32xf32>
    %432 = arith.mulf %429, %375 : vector<2x32xf32>
    %433 = arith.mulf %428, %430 : vector<2x32xf32>
    %434 = arith.addf %432, %433 : vector<2x32xf32>
    %435 = math.tanh %434 : vector<2x32xf32>
    %436 = arith.mulf %431, %435 : vector<2x32xf32>
    %437 = arith.addf %416, %436 : vector<2x32xf32>
    %c0_138 = arith.constant 0 : index
    %c0_139 = arith.constant 0 : index
    %438 = vector.load %arg16[%c0_138, %c0_139] : memref<32x16xf32, #tpu.memory_space<vmem>>, vector<32x16xf32>
    %cst_140 = arith.constant dense<0.000000e+00> : vector<2x16xf32>
    %439 = tpu.matmul %437, %438, %cst_140 {dimension_numbers = #tpu.dot_dimension_numbers<[1], [0], [0], [1], [0, 0, 1, 1], [], []>} : vector<2x32xf32>, vector<32x16xf32>, vector<2x16xf32> -> vector<2x16xf32>
    %440 = vector.broadcast %8 : vector<1x16xf32> to vector<2x16xf32>
    %441 = arith.addf %439, %440 : vector<2x16xf32>
    %c3 = arith.constant 3 : index
    %442 = memref.load %arg0[%c3] : memref<8xi32, #tpu.memory_space<smem>>
    %c3_141 = arith.constant 3 : index
    %c0_142 = arith.constant 0 : index
    %c0_143 = arith.constant 0 : index
    %443 = vector.load %arg3[%c3_141, %c0_142, %c0_143] : memref<8x2x1xi32, #tpu.memory_space<vmem>>, vector<1x2x1xi32>
    %444 = vector.shape_cast %443 : vector<1x2x1xi32> to vector<2x1xi32>
    %c1_i32_144 = arith.constant 1 : i32
    %445 = arith.cmpi eq, %442, %c1_i32_144 : i32
    %446 = arith.extui %445 : i1 to i32
    %c0_i32_145 = arith.constant 0 : i32
    %447 = arith.cmpi ne, %446, %c0_i32_145 : i32
    %448 = scf.if %447 -> (vector<2x16xf32>) {
      %680 = vector.broadcast %444 : vector<2x1xi32> to vector<2x16xi32>
      %681 = arith.cmpi eq, %264, %680 : vector<2x16xi32>
      %682 = arith.extui %681 : vector<2x16xi1> to vector<2x16xi32>
      %683 = arith.sitofp %682 : vector<2x16xi32> to vector<2x16xf32>
      scf.yield %683 : vector<2x16xf32>
    } else {
      %cst_233 = arith.constant dense<0xFF800000> : vector<2xf32>
      %680 = vector.multi_reduction <maximumf>, %441, %cst_233 [1] : vector<2x16xf32> to vector<2xf32>
      %681 = vector.shape_cast %680 : vector<2xf32> to vector<2x1xf32>
      %682 = vector.broadcast %681 : vector<2x1xf32> to vector<2x16xf32>
      %683 = arith.cmpf oeq, %441, %682 : vector<2x16xf32>
      %c16_i32 = arith.constant 16 : i32
      %684 = vector.broadcast %c16_i32 : i32 to vector<2x16xi32>
      %685 = arith.select %683, %264, %684 : vector<2x16xi1>, vector<2x16xi32>
      %cst_234 = arith.constant dense<2147483647> : vector<2xi32>
      %686 = vector.multi_reduction <minsi>, %685, %cst_234 [1] : vector<2x16xi32> to vector<2xi32>
      %687 = vector.shape_cast %686 : vector<2xi32> to vector<2x1xi32>
      %688 = vector.broadcast %687 : vector<2x1xi32> to vector<2x16xi32>
      %689 = arith.cmpi eq, %264, %688 : vector<2x16xi32>
      %690 = arith.extui %689 : vector<2x16xi1> to vector<2x16xi32>
      %691 = arith.sitofp %690 : vector<2x16xi32> to vector<2x16xf32>
      scf.yield %691 : vector<2x16xf32>
    }
    %c0_146 = arith.constant 0 : index
    %c0_147 = arith.constant 0 : index
    %449 = vector.load %arg14[%c0_146, %c0_147] : memref<32x128xf32, #tpu.memory_space<vmem>>, vector<32x128xf32>
    %cst_148 = arith.constant dense<0.000000e+00> : vector<2x128xf32>
    %450 = tpu.matmul %436, %449, %cst_148 {dimension_numbers = #tpu.dot_dimension_numbers<[1], [0], [0], [1], [0, 0, 1, 1], [], []>} : vector<2x32xf32>, vector<32x128xf32>, vector<2x128xf32> -> vector<2x128xf32>
    %cst_149 = arith.constant dense<0.000000e+00> : vector<2x32xf32>
    %451 = tpu.matmul %448, %4, %cst_149 {dimension_numbers = #tpu.dot_dimension_numbers<[1], [0], [0], [1], [0, 0, 1, 1], [], []>} : vector<2x16xf32>, vector<16x32xf32>, vector<2x32xf32> -> vector<2x32xf32>
    %cst_150 = arith.constant dense<0.000000e+00> : vector<2xf32>
    %452 = vector.multi_reduction <add>, %451, %cst_150 [1] : vector<2x32xf32> to vector<2xf32>
    %453 = vector.shape_cast %452 : vector<2xf32> to vector<2x1xf32>
    %454 = arith.mulf %451, %451 : vector<2x32xf32>
    %cst_151 = arith.constant dense<0.000000e+00> : vector<2xf32>
    %455 = vector.multi_reduction <add>, %454, %cst_151 [1] : vector<2x32xf32> to vector<2xf32>
    %456 = vector.shape_cast %455 : vector<2xf32> to vector<2x1xf32>
    %cst_152 = arith.constant 3.125000e-02 : f32
    %457 = vector.broadcast %cst_152 : f32 to vector<2x1xf32>
    %458 = arith.mulf %453, %457 : vector<2x1xf32>
    %cst_153 = arith.constant 3.125000e-02 : f32
    %459 = vector.broadcast %cst_153 : f32 to vector<2x1xf32>
    %460 = arith.mulf %456, %459 : vector<2x1xf32>
    %461 = arith.mulf %458, %458 : vector<2x1xf32>
    %462 = arith.subf %460, %461 : vector<2x1xf32>
    %cst_154 = arith.constant 0.000000e+00 : f32
    %463 = vector.broadcast %cst_154 : f32 to vector<2x1xf32>
    %464 = arith.maximumf %462, %463 : vector<2x1xf32>
    %465 = vector.broadcast %458 : vector<2x1xf32> to vector<2x32xf32>
    %466 = arith.subf %451, %465 : vector<2x32xf32>
    %cst_155 = arith.constant 9.99999974E-6 : f32
    %467 = vector.broadcast %cst_155 : f32 to vector<2x1xf32>
    %468 = arith.addf %464, %467 : vector<2x1xf32>
    %469 = math.rsqrt %468 : vector<2x1xf32>
    %470 = vector.broadcast %469 : vector<2x1xf32> to vector<2x32xf32>
    %471 = arith.mulf %466, %470 : vector<2x32xf32>
    %472 = vector.broadcast %5 : vector<1x32xf32> to vector<2x32xf32>
    %473 = arith.mulf %471, %472 : vector<2x32xf32>
    %474 = vector.broadcast %6 : vector<1x32xf32> to vector<2x32xf32>
    %475 = arith.addf %473, %474 : vector<2x32xf32>
    %c0_156 = arith.constant 0 : index
    %c0_157 = arith.constant 0 : index
    %476 = vector.load %arg13[%c0_156, %c0_157] : memref<32x128xf32, #tpu.memory_space<vmem>>, vector<32x128xf32>
    %cst_158 = arith.constant dense<0.000000e+00> : vector<2x128xf32>
    %477 = tpu.matmul %475, %476, %cst_158 {dimension_numbers = #tpu.dot_dimension_numbers<[1], [0], [0], [1], [0, 0, 1, 1], [], []>} : vector<2x32xf32>, vector<32x128xf32>, vector<2x128xf32> -> vector<2x128xf32>
    %478 = arith.addf %450, %477 : vector<2x128xf32>
    %479 = vector.broadcast %7 : vector<1x128xf32> to vector<2x128xf32>
    %480 = arith.addf %478, %479 : vector<2x128xf32>
    %481 = arith.negf %480 : vector<2x128xf32>
    %482 = math.exp %481 : vector<2x128xf32>
    %cst_159 = arith.constant 1.000000e+00 : f32
    %483 = vector.broadcast %cst_159 : f32 to vector<2x128xf32>
    %484 = arith.addf %483, %482 : vector<2x128xf32>
    %485 = arith.divf %483, %484 : vector<2x128xf32>
    %486 = math.tanh %480 : vector<2x128xf32>
    %487 = vector.extract_strided_slice %485 {offsets = [0, 0], sizes = [2, 32], strides = [1, 1]} : vector<2x128xf32> to vector<2x32xf32>
    %488 = vector.extract_strided_slice %485 {offsets = [0, 32], sizes = [2, 32], strides = [1, 1]} : vector<2x128xf32> to vector<2x32xf32>
    %489 = vector.extract_strided_slice %486 {offsets = [0, 64], sizes = [2, 32], strides = [1, 1]} : vector<2x128xf32> to vector<2x32xf32>
    %490 = vector.extract_strided_slice %485 {offsets = [0, 96], sizes = [2, 32], strides = [1, 1]} : vector<2x128xf32> to vector<2x32xf32>
    %491 = arith.mulf %488, %434 : vector<2x32xf32>
    %492 = arith.mulf %487, %489 : vector<2x32xf32>
    %493 = arith.addf %491, %492 : vector<2x32xf32>
    %494 = math.tanh %493 : vector<2x32xf32>
    %495 = arith.mulf %490, %494 : vector<2x32xf32>
    %496 = arith.addf %475, %495 : vector<2x32xf32>
    %c0_160 = arith.constant 0 : index
    %c0_161 = arith.constant 0 : index
    %497 = vector.load %arg16[%c0_160, %c0_161] : memref<32x16xf32, #tpu.memory_space<vmem>>, vector<32x16xf32>
    %cst_162 = arith.constant dense<0.000000e+00> : vector<2x16xf32>
    %498 = tpu.matmul %496, %497, %cst_162 {dimension_numbers = #tpu.dot_dimension_numbers<[1], [0], [0], [1], [0, 0, 1, 1], [], []>} : vector<2x32xf32>, vector<32x16xf32>, vector<2x16xf32> -> vector<2x16xf32>
    %499 = vector.broadcast %8 : vector<1x16xf32> to vector<2x16xf32>
    %500 = arith.addf %498, %499 : vector<2x16xf32>
    %c4_163 = arith.constant 4 : index
    %501 = memref.load %arg0[%c4_163] : memref<8xi32, #tpu.memory_space<smem>>
    %c4_164 = arith.constant 4 : index
    %c0_165 = arith.constant 0 : index
    %c0_166 = arith.constant 0 : index
    %502 = vector.load %arg3[%c4_164, %c0_165, %c0_166] : memref<8x2x1xi32, #tpu.memory_space<vmem>>, vector<1x2x1xi32>
    %503 = vector.shape_cast %502 : vector<1x2x1xi32> to vector<2x1xi32>
    %c1_i32_167 = arith.constant 1 : i32
    %504 = arith.cmpi eq, %501, %c1_i32_167 : i32
    %505 = arith.extui %504 : i1 to i32
    %c0_i32_168 = arith.constant 0 : i32
    %506 = arith.cmpi ne, %505, %c0_i32_168 : i32
    %507 = scf.if %506 -> (vector<2x16xf32>) {
      %680 = vector.broadcast %503 : vector<2x1xi32> to vector<2x16xi32>
      %681 = arith.cmpi eq, %264, %680 : vector<2x16xi32>
      %682 = arith.extui %681 : vector<2x16xi1> to vector<2x16xi32>
      %683 = arith.sitofp %682 : vector<2x16xi32> to vector<2x16xf32>
      scf.yield %683 : vector<2x16xf32>
    } else {
      %cst_233 = arith.constant dense<0xFF800000> : vector<2xf32>
      %680 = vector.multi_reduction <maximumf>, %500, %cst_233 [1] : vector<2x16xf32> to vector<2xf32>
      %681 = vector.shape_cast %680 : vector<2xf32> to vector<2x1xf32>
      %682 = vector.broadcast %681 : vector<2x1xf32> to vector<2x16xf32>
      %683 = arith.cmpf oeq, %500, %682 : vector<2x16xf32>
      %c16_i32 = arith.constant 16 : i32
      %684 = vector.broadcast %c16_i32 : i32 to vector<2x16xi32>
      %685 = arith.select %683, %264, %684 : vector<2x16xi1>, vector<2x16xi32>
      %cst_234 = arith.constant dense<2147483647> : vector<2xi32>
      %686 = vector.multi_reduction <minsi>, %685, %cst_234 [1] : vector<2x16xi32> to vector<2xi32>
      %687 = vector.shape_cast %686 : vector<2xi32> to vector<2x1xi32>
      %688 = vector.broadcast %687 : vector<2x1xi32> to vector<2x16xi32>
      %689 = arith.cmpi eq, %264, %688 : vector<2x16xi32>
      %690 = arith.extui %689 : vector<2x16xi1> to vector<2x16xi32>
      %691 = arith.sitofp %690 : vector<2x16xi32> to vector<2x16xf32>
      scf.yield %691 : vector<2x16xf32>
    }
    %c0_169 = arith.constant 0 : index
    %c0_170 = arith.constant 0 : index
    %508 = vector.load %arg14[%c0_169, %c0_170] : memref<32x128xf32, #tpu.memory_space<vmem>>, vector<32x128xf32>
    %cst_171 = arith.constant dense<0.000000e+00> : vector<2x128xf32>
    %509 = tpu.matmul %495, %508, %cst_171 {dimension_numbers = #tpu.dot_dimension_numbers<[1], [0], [0], [1], [0, 0, 1, 1], [], []>} : vector<2x32xf32>, vector<32x128xf32>, vector<2x128xf32> -> vector<2x128xf32>
    %cst_172 = arith.constant dense<0.000000e+00> : vector<2x32xf32>
    %510 = tpu.matmul %507, %4, %cst_172 {dimension_numbers = #tpu.dot_dimension_numbers<[1], [0], [0], [1], [0, 0, 1, 1], [], []>} : vector<2x16xf32>, vector<16x32xf32>, vector<2x32xf32> -> vector<2x32xf32>
    %cst_173 = arith.constant dense<0.000000e+00> : vector<2xf32>
    %511 = vector.multi_reduction <add>, %510, %cst_173 [1] : vector<2x32xf32> to vector<2xf32>
    %512 = vector.shape_cast %511 : vector<2xf32> to vector<2x1xf32>
    %513 = arith.mulf %510, %510 : vector<2x32xf32>
    %cst_174 = arith.constant dense<0.000000e+00> : vector<2xf32>
    %514 = vector.multi_reduction <add>, %513, %cst_174 [1] : vector<2x32xf32> to vector<2xf32>
    %515 = vector.shape_cast %514 : vector<2xf32> to vector<2x1xf32>
    %cst_175 = arith.constant 3.125000e-02 : f32
    %516 = vector.broadcast %cst_175 : f32 to vector<2x1xf32>
    %517 = arith.mulf %512, %516 : vector<2x1xf32>
    %cst_176 = arith.constant 3.125000e-02 : f32
    %518 = vector.broadcast %cst_176 : f32 to vector<2x1xf32>
    %519 = arith.mulf %515, %518 : vector<2x1xf32>
    %520 = arith.mulf %517, %517 : vector<2x1xf32>
    %521 = arith.subf %519, %520 : vector<2x1xf32>
    %cst_177 = arith.constant 0.000000e+00 : f32
    %522 = vector.broadcast %cst_177 : f32 to vector<2x1xf32>
    %523 = arith.maximumf %521, %522 : vector<2x1xf32>
    %524 = vector.broadcast %517 : vector<2x1xf32> to vector<2x32xf32>
    %525 = arith.subf %510, %524 : vector<2x32xf32>
    %cst_178 = arith.constant 9.99999974E-6 : f32
    %526 = vector.broadcast %cst_178 : f32 to vector<2x1xf32>
    %527 = arith.addf %523, %526 : vector<2x1xf32>
    %528 = math.rsqrt %527 : vector<2x1xf32>
    %529 = vector.broadcast %528 : vector<2x1xf32> to vector<2x32xf32>
    %530 = arith.mulf %525, %529 : vector<2x32xf32>
    %531 = vector.broadcast %5 : vector<1x32xf32> to vector<2x32xf32>
    %532 = arith.mulf %530, %531 : vector<2x32xf32>
    %533 = vector.broadcast %6 : vector<1x32xf32> to vector<2x32xf32>
    %534 = arith.addf %532, %533 : vector<2x32xf32>
    %c0_179 = arith.constant 0 : index
    %c0_180 = arith.constant 0 : index
    %535 = vector.load %arg13[%c0_179, %c0_180] : memref<32x128xf32, #tpu.memory_space<vmem>>, vector<32x128xf32>
    %cst_181 = arith.constant dense<0.000000e+00> : vector<2x128xf32>
    %536 = tpu.matmul %534, %535, %cst_181 {dimension_numbers = #tpu.dot_dimension_numbers<[1], [0], [0], [1], [0, 0, 1, 1], [], []>} : vector<2x32xf32>, vector<32x128xf32>, vector<2x128xf32> -> vector<2x128xf32>
    %537 = arith.addf %509, %536 : vector<2x128xf32>
    %538 = vector.broadcast %7 : vector<1x128xf32> to vector<2x128xf32>
    %539 = arith.addf %537, %538 : vector<2x128xf32>
    %540 = arith.negf %539 : vector<2x128xf32>
    %541 = math.exp %540 : vector<2x128xf32>
    %cst_182 = arith.constant 1.000000e+00 : f32
    %542 = vector.broadcast %cst_182 : f32 to vector<2x128xf32>
    %543 = arith.addf %542, %541 : vector<2x128xf32>
    %544 = arith.divf %542, %543 : vector<2x128xf32>
    %545 = math.tanh %539 : vector<2x128xf32>
    %546 = vector.extract_strided_slice %544 {offsets = [0, 0], sizes = [2, 32], strides = [1, 1]} : vector<2x128xf32> to vector<2x32xf32>
    %547 = vector.extract_strided_slice %544 {offsets = [0, 32], sizes = [2, 32], strides = [1, 1]} : vector<2x128xf32> to vector<2x32xf32>
    %548 = vector.extract_strided_slice %545 {offsets = [0, 64], sizes = [2, 32], strides = [1, 1]} : vector<2x128xf32> to vector<2x32xf32>
    %549 = vector.extract_strided_slice %544 {offsets = [0, 96], sizes = [2, 32], strides = [1, 1]} : vector<2x128xf32> to vector<2x32xf32>
    %550 = arith.mulf %547, %493 : vector<2x32xf32>
    %551 = arith.mulf %546, %548 : vector<2x32xf32>
    %552 = arith.addf %550, %551 : vector<2x32xf32>
    %553 = math.tanh %552 : vector<2x32xf32>
    %554 = arith.mulf %549, %553 : vector<2x32xf32>
    %555 = arith.addf %534, %554 : vector<2x32xf32>
    %c0_183 = arith.constant 0 : index
    %c0_184 = arith.constant 0 : index
    %556 = vector.load %arg16[%c0_183, %c0_184] : memref<32x16xf32, #tpu.memory_space<vmem>>, vector<32x16xf32>
    %cst_185 = arith.constant dense<0.000000e+00> : vector<2x16xf32>
    %557 = tpu.matmul %555, %556, %cst_185 {dimension_numbers = #tpu.dot_dimension_numbers<[1], [0], [0], [1], [0, 0, 1, 1], [], []>} : vector<2x32xf32>, vector<32x16xf32>, vector<2x16xf32> -> vector<2x16xf32>
    %558 = vector.broadcast %8 : vector<1x16xf32> to vector<2x16xf32>
    %559 = arith.addf %557, %558 : vector<2x16xf32>
    %c5 = arith.constant 5 : index
    %560 = memref.load %arg0[%c5] : memref<8xi32, #tpu.memory_space<smem>>
    %c5_186 = arith.constant 5 : index
    %c0_187 = arith.constant 0 : index
    %c0_188 = arith.constant 0 : index
    %561 = vector.load %arg3[%c5_186, %c0_187, %c0_188] : memref<8x2x1xi32, #tpu.memory_space<vmem>>, vector<1x2x1xi32>
    %562 = vector.shape_cast %561 : vector<1x2x1xi32> to vector<2x1xi32>
    %c1_i32_189 = arith.constant 1 : i32
    %563 = arith.cmpi eq, %560, %c1_i32_189 : i32
    %564 = arith.extui %563 : i1 to i32
    %c0_i32_190 = arith.constant 0 : i32
    %565 = arith.cmpi ne, %564, %c0_i32_190 : i32
    %566 = scf.if %565 -> (vector<2x16xf32>) {
      %680 = vector.broadcast %562 : vector<2x1xi32> to vector<2x16xi32>
      %681 = arith.cmpi eq, %264, %680 : vector<2x16xi32>
      %682 = arith.extui %681 : vector<2x16xi1> to vector<2x16xi32>
      %683 = arith.sitofp %682 : vector<2x16xi32> to vector<2x16xf32>
      scf.yield %683 : vector<2x16xf32>
    } else {
      %cst_233 = arith.constant dense<0xFF800000> : vector<2xf32>
      %680 = vector.multi_reduction <maximumf>, %559, %cst_233 [1] : vector<2x16xf32> to vector<2xf32>
      %681 = vector.shape_cast %680 : vector<2xf32> to vector<2x1xf32>
      %682 = vector.broadcast %681 : vector<2x1xf32> to vector<2x16xf32>
      %683 = arith.cmpf oeq, %559, %682 : vector<2x16xf32>
      %c16_i32 = arith.constant 16 : i32
      %684 = vector.broadcast %c16_i32 : i32 to vector<2x16xi32>
      %685 = arith.select %683, %264, %684 : vector<2x16xi1>, vector<2x16xi32>
      %cst_234 = arith.constant dense<2147483647> : vector<2xi32>
      %686 = vector.multi_reduction <minsi>, %685, %cst_234 [1] : vector<2x16xi32> to vector<2xi32>
      %687 = vector.shape_cast %686 : vector<2xi32> to vector<2x1xi32>
      %688 = vector.broadcast %687 : vector<2x1xi32> to vector<2x16xi32>
      %689 = arith.cmpi eq, %264, %688 : vector<2x16xi32>
      %690 = arith.extui %689 : vector<2x16xi1> to vector<2x16xi32>
      %691 = arith.sitofp %690 : vector<2x16xi32> to vector<2x16xf32>
      scf.yield %691 : vector<2x16xf32>
    }
    %c0_191 = arith.constant 0 : index
    %c0_192 = arith.constant 0 : index
    %567 = vector.load %arg14[%c0_191, %c0_192] : memref<32x128xf32, #tpu.memory_space<vmem>>, vector<32x128xf32>
    %cst_193 = arith.constant dense<0.000000e+00> : vector<2x128xf32>
    %568 = tpu.matmul %554, %567, %cst_193 {dimension_numbers = #tpu.dot_dimension_numbers<[1], [0], [0], [1], [0, 0, 1, 1], [], []>} : vector<2x32xf32>, vector<32x128xf32>, vector<2x128xf32> -> vector<2x128xf32>
    %cst_194 = arith.constant dense<0.000000e+00> : vector<2x32xf32>
    %569 = tpu.matmul %566, %4, %cst_194 {dimension_numbers = #tpu.dot_dimension_numbers<[1], [0], [0], [1], [0, 0, 1, 1], [], []>} : vector<2x16xf32>, vector<16x32xf32>, vector<2x32xf32> -> vector<2x32xf32>
    %cst_195 = arith.constant dense<0.000000e+00> : vector<2xf32>
    %570 = vector.multi_reduction <add>, %569, %cst_195 [1] : vector<2x32xf32> to vector<2xf32>
    %571 = vector.shape_cast %570 : vector<2xf32> to vector<2x1xf32>
    %572 = arith.mulf %569, %569 : vector<2x32xf32>
    %cst_196 = arith.constant dense<0.000000e+00> : vector<2xf32>
    %573 = vector.multi_reduction <add>, %572, %cst_196 [1] : vector<2x32xf32> to vector<2xf32>
    %574 = vector.shape_cast %573 : vector<2xf32> to vector<2x1xf32>
    %cst_197 = arith.constant 3.125000e-02 : f32
    %575 = vector.broadcast %cst_197 : f32 to vector<2x1xf32>
    %576 = arith.mulf %571, %575 : vector<2x1xf32>
    %cst_198 = arith.constant 3.125000e-02 : f32
    %577 = vector.broadcast %cst_198 : f32 to vector<2x1xf32>
    %578 = arith.mulf %574, %577 : vector<2x1xf32>
    %579 = arith.mulf %576, %576 : vector<2x1xf32>
    %580 = arith.subf %578, %579 : vector<2x1xf32>
    %cst_199 = arith.constant 0.000000e+00 : f32
    %581 = vector.broadcast %cst_199 : f32 to vector<2x1xf32>
    %582 = arith.maximumf %580, %581 : vector<2x1xf32>
    %583 = vector.broadcast %576 : vector<2x1xf32> to vector<2x32xf32>
    %584 = arith.subf %569, %583 : vector<2x32xf32>
    %cst_200 = arith.constant 9.99999974E-6 : f32
    %585 = vector.broadcast %cst_200 : f32 to vector<2x1xf32>
    %586 = arith.addf %582, %585 : vector<2x1xf32>
    %587 = math.rsqrt %586 : vector<2x1xf32>
    %588 = vector.broadcast %587 : vector<2x1xf32> to vector<2x32xf32>
    %589 = arith.mulf %584, %588 : vector<2x32xf32>
    %590 = vector.broadcast %5 : vector<1x32xf32> to vector<2x32xf32>
    %591 = arith.mulf %589, %590 : vector<2x32xf32>
    %592 = vector.broadcast %6 : vector<1x32xf32> to vector<2x32xf32>
    %593 = arith.addf %591, %592 : vector<2x32xf32>
    %c0_201 = arith.constant 0 : index
    %c0_202 = arith.constant 0 : index
    %594 = vector.load %arg13[%c0_201, %c0_202] : memref<32x128xf32, #tpu.memory_space<vmem>>, vector<32x128xf32>
    %cst_203 = arith.constant dense<0.000000e+00> : vector<2x128xf32>
    %595 = tpu.matmul %593, %594, %cst_203 {dimension_numbers = #tpu.dot_dimension_numbers<[1], [0], [0], [1], [0, 0, 1, 1], [], []>} : vector<2x32xf32>, vector<32x128xf32>, vector<2x128xf32> -> vector<2x128xf32>
    %596 = arith.addf %568, %595 : vector<2x128xf32>
    %597 = vector.broadcast %7 : vector<1x128xf32> to vector<2x128xf32>
    %598 = arith.addf %596, %597 : vector<2x128xf32>
    %599 = arith.negf %598 : vector<2x128xf32>
    %600 = math.exp %599 : vector<2x128xf32>
    %cst_204 = arith.constant 1.000000e+00 : f32
    %601 = vector.broadcast %cst_204 : f32 to vector<2x128xf32>
    %602 = arith.addf %601, %600 : vector<2x128xf32>
    %603 = arith.divf %601, %602 : vector<2x128xf32>
    %604 = math.tanh %598 : vector<2x128xf32>
    %605 = vector.extract_strided_slice %603 {offsets = [0, 0], sizes = [2, 32], strides = [1, 1]} : vector<2x128xf32> to vector<2x32xf32>
    %606 = vector.extract_strided_slice %603 {offsets = [0, 32], sizes = [2, 32], strides = [1, 1]} : vector<2x128xf32> to vector<2x32xf32>
    %607 = vector.extract_strided_slice %604 {offsets = [0, 64], sizes = [2, 32], strides = [1, 1]} : vector<2x128xf32> to vector<2x32xf32>
    %608 = vector.extract_strided_slice %603 {offsets = [0, 96], sizes = [2, 32], strides = [1, 1]} : vector<2x128xf32> to vector<2x32xf32>
    %609 = arith.mulf %606, %552 : vector<2x32xf32>
    %610 = arith.mulf %605, %607 : vector<2x32xf32>
    %611 = arith.addf %609, %610 : vector<2x32xf32>
    %612 = math.tanh %611 : vector<2x32xf32>
    %613 = arith.mulf %608, %612 : vector<2x32xf32>
    %614 = arith.addf %593, %613 : vector<2x32xf32>
    %c0_205 = arith.constant 0 : index
    %c0_206 = arith.constant 0 : index
    %615 = vector.load %arg16[%c0_205, %c0_206] : memref<32x16xf32, #tpu.memory_space<vmem>>, vector<32x16xf32>
    %cst_207 = arith.constant dense<0.000000e+00> : vector<2x16xf32>
    %616 = tpu.matmul %614, %615, %cst_207 {dimension_numbers = #tpu.dot_dimension_numbers<[1], [0], [0], [1], [0, 0, 1, 1], [], []>} : vector<2x32xf32>, vector<32x16xf32>, vector<2x16xf32> -> vector<2x16xf32>
    %617 = vector.broadcast %8 : vector<1x16xf32> to vector<2x16xf32>
    %618 = arith.addf %616, %617 : vector<2x16xf32>
    %c6_208 = arith.constant 6 : index
    %619 = memref.load %arg0[%c6_208] : memref<8xi32, #tpu.memory_space<smem>>
    %c6_209 = arith.constant 6 : index
    %c0_210 = arith.constant 0 : index
    %c0_211 = arith.constant 0 : index
    %620 = vector.load %arg3[%c6_209, %c0_210, %c0_211] : memref<8x2x1xi32, #tpu.memory_space<vmem>>, vector<1x2x1xi32>
    %621 = vector.shape_cast %620 : vector<1x2x1xi32> to vector<2x1xi32>
    %c1_i32_212 = arith.constant 1 : i32
    %622 = arith.cmpi eq, %619, %c1_i32_212 : i32
    %623 = arith.extui %622 : i1 to i32
    %c0_i32_213 = arith.constant 0 : i32
    %624 = arith.cmpi ne, %623, %c0_i32_213 : i32
    %625 = scf.if %624 -> (vector<2x16xf32>) {
      %680 = vector.broadcast %621 : vector<2x1xi32> to vector<2x16xi32>
      %681 = arith.cmpi eq, %264, %680 : vector<2x16xi32>
      %682 = arith.extui %681 : vector<2x16xi1> to vector<2x16xi32>
      %683 = arith.sitofp %682 : vector<2x16xi32> to vector<2x16xf32>
      scf.yield %683 : vector<2x16xf32>
    } else {
      %cst_233 = arith.constant dense<0xFF800000> : vector<2xf32>
      %680 = vector.multi_reduction <maximumf>, %618, %cst_233 [1] : vector<2x16xf32> to vector<2xf32>
      %681 = vector.shape_cast %680 : vector<2xf32> to vector<2x1xf32>
      %682 = vector.broadcast %681 : vector<2x1xf32> to vector<2x16xf32>
      %683 = arith.cmpf oeq, %618, %682 : vector<2x16xf32>
      %c16_i32 = arith.constant 16 : i32
      %684 = vector.broadcast %c16_i32 : i32 to vector<2x16xi32>
      %685 = arith.select %683, %264, %684 : vector<2x16xi1>, vector<2x16xi32>
      %cst_234 = arith.constant dense<2147483647> : vector<2xi32>
      %686 = vector.multi_reduction <minsi>, %685, %cst_234 [1] : vector<2x16xi32> to vector<2xi32>
      %687 = vector.shape_cast %686 : vector<2xi32> to vector<2x1xi32>
      %688 = vector.broadcast %687 : vector<2x1xi32> to vector<2x16xi32>
      %689 = arith.cmpi eq, %264, %688 : vector<2x16xi32>
      %690 = arith.extui %689 : vector<2x16xi1> to vector<2x16xi32>
      %691 = arith.sitofp %690 : vector<2x16xi32> to vector<2x16xf32>
      scf.yield %691 : vector<2x16xf32>
    }
    %c0_214 = arith.constant 0 : index
    %c0_215 = arith.constant 0 : index
    %626 = vector.load %arg14[%c0_214, %c0_215] : memref<32x128xf32, #tpu.memory_space<vmem>>, vector<32x128xf32>
    %cst_216 = arith.constant dense<0.000000e+00> : vector<2x128xf32>
    %627 = tpu.matmul %613, %626, %cst_216 {dimension_numbers = #tpu.dot_dimension_numbers<[1], [0], [0], [1], [0, 0, 1, 1], [], []>} : vector<2x32xf32>, vector<32x128xf32>, vector<2x128xf32> -> vector<2x128xf32>
    %cst_217 = arith.constant dense<0.000000e+00> : vector<2x32xf32>
    %628 = tpu.matmul %625, %4, %cst_217 {dimension_numbers = #tpu.dot_dimension_numbers<[1], [0], [0], [1], [0, 0, 1, 1], [], []>} : vector<2x16xf32>, vector<16x32xf32>, vector<2x32xf32> -> vector<2x32xf32>
    %cst_218 = arith.constant dense<0.000000e+00> : vector<2xf32>
    %629 = vector.multi_reduction <add>, %628, %cst_218 [1] : vector<2x32xf32> to vector<2xf32>
    %630 = vector.shape_cast %629 : vector<2xf32> to vector<2x1xf32>
    %631 = arith.mulf %628, %628 : vector<2x32xf32>
    %cst_219 = arith.constant dense<0.000000e+00> : vector<2xf32>
    %632 = vector.multi_reduction <add>, %631, %cst_219 [1] : vector<2x32xf32> to vector<2xf32>
    %633 = vector.shape_cast %632 : vector<2xf32> to vector<2x1xf32>
    %cst_220 = arith.constant 3.125000e-02 : f32
    %634 = vector.broadcast %cst_220 : f32 to vector<2x1xf32>
    %635 = arith.mulf %630, %634 : vector<2x1xf32>
    %cst_221 = arith.constant 3.125000e-02 : f32
    %636 = vector.broadcast %cst_221 : f32 to vector<2x1xf32>
    %637 = arith.mulf %633, %636 : vector<2x1xf32>
    %638 = arith.mulf %635, %635 : vector<2x1xf32>
    %639 = arith.subf %637, %638 : vector<2x1xf32>
    %cst_222 = arith.constant 0.000000e+00 : f32
    %640 = vector.broadcast %cst_222 : f32 to vector<2x1xf32>
    %641 = arith.maximumf %639, %640 : vector<2x1xf32>
    %642 = vector.broadcast %635 : vector<2x1xf32> to vector<2x32xf32>
    %643 = arith.subf %628, %642 : vector<2x32xf32>
    %cst_223 = arith.constant 9.99999974E-6 : f32
    %644 = vector.broadcast %cst_223 : f32 to vector<2x1xf32>
    %645 = arith.addf %641, %644 : vector<2x1xf32>
    %646 = math.rsqrt %645 : vector<2x1xf32>
    %647 = vector.broadcast %646 : vector<2x1xf32> to vector<2x32xf32>
    %648 = arith.mulf %643, %647 : vector<2x32xf32>
    %649 = vector.broadcast %5 : vector<1x32xf32> to vector<2x32xf32>
    %650 = arith.mulf %648, %649 : vector<2x32xf32>
    %651 = vector.broadcast %6 : vector<1x32xf32> to vector<2x32xf32>
    %652 = arith.addf %650, %651 : vector<2x32xf32>
    %c0_224 = arith.constant 0 : index
    %c0_225 = arith.constant 0 : index
    %653 = vector.load %arg13[%c0_224, %c0_225] : memref<32x128xf32, #tpu.memory_space<vmem>>, vector<32x128xf32>
    %cst_226 = arith.constant dense<0.000000e+00> : vector<2x128xf32>
    %654 = tpu.matmul %652, %653, %cst_226 {dimension_numbers = #tpu.dot_dimension_numbers<[1], [0], [0], [1], [0, 0, 1, 1], [], []>} : vector<2x32xf32>, vector<32x128xf32>, vector<2x128xf32> -> vector<2x128xf32>
    %655 = arith.addf %627, %654 : vector<2x128xf32>
    %656 = vector.broadcast %7 : vector<1x128xf32> to vector<2x128xf32>
    %657 = arith.addf %655, %656 : vector<2x128xf32>
    %658 = arith.negf %657 : vector<2x128xf32>
    %659 = math.exp %658 : vector<2x128xf32>
    %cst_227 = arith.constant 1.000000e+00 : f32
    %660 = vector.broadcast %cst_227 : f32 to vector<2x128xf32>
    %661 = arith.addf %660, %659 : vector<2x128xf32>
    %662 = arith.divf %660, %661 : vector<2x128xf32>
    %663 = math.tanh %657 : vector<2x128xf32>
    %664 = vector.extract_strided_slice %662 {offsets = [0, 0], sizes = [2, 32], strides = [1, 1]} : vector<2x128xf32> to vector<2x32xf32>
    %665 = vector.extract_strided_slice %662 {offsets = [0, 32], sizes = [2, 32], strides = [1, 1]} : vector<2x128xf32> to vector<2x32xf32>
    %666 = vector.extract_strided_slice %663 {offsets = [0, 64], sizes = [2, 32], strides = [1, 1]} : vector<2x128xf32> to vector<2x32xf32>
    %667 = vector.extract_strided_slice %662 {offsets = [0, 96], sizes = [2, 32], strides = [1, 1]} : vector<2x128xf32> to vector<2x32xf32>
    %668 = arith.mulf %665, %611 : vector<2x32xf32>
    %669 = arith.mulf %664, %666 : vector<2x32xf32>
    %670 = arith.addf %668, %669 : vector<2x32xf32>
    %671 = math.tanh %670 : vector<2x32xf32>
    %672 = arith.mulf %667, %671 : vector<2x32xf32>
    %673 = arith.addf %652, %672 : vector<2x32xf32>
    %c0_228 = arith.constant 0 : index
    %c0_229 = arith.constant 0 : index
    %674 = vector.load %arg16[%c0_228, %c0_229] : memref<32x16xf32, #tpu.memory_space<vmem>>, vector<32x16xf32>
    %cst_230 = arith.constant dense<0.000000e+00> : vector<2x16xf32>
    %675 = tpu.matmul %673, %674, %cst_230 {dimension_numbers = #tpu.dot_dimension_numbers<[1], [0], [0], [1], [0, 0, 1, 1], [], []>} : vector<2x32xf32>, vector<32x16xf32>, vector<2x16xf32> -> vector<2x16xf32>
    %676 = vector.broadcast %8 : vector<1x16xf32> to vector<2x16xf32>
    %677 = arith.addf %675, %676 : vector<2x16xf32>
    %678 = tpu.concatenate %271, %323, %382, %441, %500, %559, %618, %677 in 1 : vector<2x16xf32>, vector<2x16xf32>, vector<2x16xf32>, vector<2x16xf32>, vector<2x16xf32>, vector<2x16xf32>, vector<2x16xf32>, vector<2x16xf32> -> vector<2x128xf32>
    %c0_231 = arith.constant 0 : index
    %c0_232 = arith.constant 0 : index
    %679 = vector.load %arg18[%c0_231, %c0_232] : memref<2x128xf32, #tpu.memory_space<vmem>>, vector<2x128xf32>
    tpu.vector_store %arg18[%c0_231, %c0_232], %678 {strides = array<i32>} : memref<2x128xf32, #tpu.memory_space<vmem>>, vector<2x128xf32>,
    return
  }
}

</mosaic_0001>

<bundles_post_ra>
// kernel: autoencoder_forward.1
= control target key start
LH: loop header
LB: loop body
LE: loop exit
PB: predicated region body
PF: predicated region fallthrough
CT: control target
= control target key end

     0   :  { %s6257_s0 = inlined_call_operand.hbm [shape: s32[8], index: 0, kind: input, shape index: {}]   ;;  %s6258_s1 = inlined_call_operand.vmem [shape: s32[16,1], index: 1, kind: input, shape index: {}]   ;;  %s6259_s2 = inlined_call_operand.vmem [shape: s32[2,1], index: 2, kind: input, shape index: {}]   ;;  %s6260_s3 = inlined_call_operand.vmem [shape: s32[8,2,1], index: 3, kind: input, shape index: {}]   ;;  %s6261_s4 = inlined_call_operand.hbm [shape: f32[16,32], index: 4, kind: input, shape index: {}]   ;;  %s6262_s5 = inlined_call_operand.hbm [shape: f32[1,32], index: 5, kind: input, shape index: {}]   ;;  %s6263_s6 = inlined_call_operand.hbm [shape: f32[1,32], index: 6, kind: input, shape index: {}]   ;;  %s6264_s7 = inlined_call_operand.vmem [shape: f32[32,128], index: 7, kind: input, shape index: {}]   ;;  %s6265_s8 = inlined_call_operand.vmem [shape: f32[32,128], index: 8, kind: input, shape index: {}]   ;;  %s6266_s9 = inlined_call_operand.hbm [shape: f32[1,128], index: 9, kind: input, shape index: {}]   ;;  %s6267_s10 = inlined_call_operand.vmem [shape: f32[16,32], index: 10, kind: input, shape index: {}]   ;;  %s6268_s11 = inlined_call_operand.vmem [shape: f32[1,32], index: 11, kind: input, shape index: {}]   ;;  %s6269_s12 = inlined_call_operand.vmem [shape: f32[1,32], index: 12, kind: input, shape index: {}]   ;;  %s6270_s13 = inlined_call_operand.vmem [shape: f32[32,128], index: 13, kind: input, shape index: {}]   ;;  %s6271_s14 = inlined_call_operand.vmem [shape: f32[32,128], index: 14, kind: input, shape index: {}]   ;;  %s6272_s15 = inlined_call_operand.hbm [shape: f32[1,128], index: 15, kind: input, shape index: {}]   ;;  %s6273_s16 = inlined_call_operand.vmem [shape: f32[32,16], index: 16, kind: input, shape index: {}]   ;;  %s6274_s17 = inlined_call_operand.hbm [shape: f32[1,16], index: 17, kind: input, shape index: {}]   ;;  %s6275_s18 = inlined_call_operand.vmem [shape: f32[2,128], index: 18, kind: output, shape index: {}]  }
   0x1   :  { %6278 = sst [smem:[#allocation20_spill]] %s6257_s0 }
   0x2   :  { %6279 = sst [smem:[#allocation21_spill]] %s6258_s1 }
   0x3   :  { %6280 = sst [smem:[#allocation22_spill]] %s6259_s2 }
   0x4   :  { %23 = vsyncpa [#allocation5], 0 }
   0x5   :  { %24 = vsyncpa [#allocation4], 0 }
   0x6   :  { %25 = vsyncpa [#allocation8], 0 }
   0x7   :  { %26 = vsyncpa [#allocation11], 0 }
   0x8   :  { %27 = vsyncpa [#allocation14], 0  ;;  %s5381_s27 = smov [#allocation7]   ;;  %s5382_s29 = smov [#allocation10]  }
   0x9   :  { %s60_s28 = sshll.u32 %s5381_s27, 4  ;;  %s84_s30 = sshll.u32 %s5382_s29, 4  ;;  %s61_s28 = int_to_ptr.vmem [resolvable:$true] %s60_s28  ;;  %s85_s30 = int_to_ptr.vmem [resolvable:$true] %s84_s30 }
   0xa   :  { %s5133_s1 = scalar_lea.hbm %s6262_s5, 16 }
   0xb   :  { %p5134_p0 = scmp.ne.s32.totalorder %s6262_s5, %s5133_s1  ;;  %p5137_p1 = scmp.lt.u32.totalorder %s5133_s1, %s6262_s5 }
   0xd   :  { %p5139_p2 = pnand %p5137_p1, %p5134_p0 }
   0xf   :  { %5142 = shalt.err (!%p5139_p2)
}
  0x10   :  { %s5143_s23 = scalar_lea.vmem %s61_s28, 16  ;;  %s5147_s24 = scalar_lea.vmem %s61_s28, 32 }
  0x11   :  { %p5144_p3 = scmp.ne.s32.totalorder %s61_s28, %s5143_s23  ;;  %p5148_p4 = scmp.lt.s32.totalorder %s61_s28, %s61_s28 }
  0x12   :  { %p5149_p5 = scmp.lt.s32.totalorder %s5147_s24, %s5143_s23 }
  0x14   :  { %p5150_p6 = por %p5149_p5, %p5148_p4 }
  0x16   :  { %p5151_p7 = pnand %p5150_p6, %p5144_p3 }
  0x18   :  { %5154 = shalt.err (!%p5151_p7)
}
  0x19   :  { %63 = dma.hbm_to_vmem [thread:$0]  %s6262_s5, 16, %s61_s28, [#allocation8]  }
  0x1a   :  { %s5155_s0 = scalar_lea.hbm %s6266_s9, 16 }
  0x1b   :  { %p5156_p8 = scmp.ne.s32.totalorder %s6266_s9, %s5155_s0  ;;  %p5159_p9 = scmp.lt.u32.totalorder %s5155_s0, %s6266_s9 }
  0x1d   :  { %p5161_p10 = pnand %p5159_p9, %p5156_p8 }
  0x1f   :  { %5164 = shalt.err (!%p5161_p10)
}
  0x20   :  { %s5165_s22 = scalar_lea.vmem %s85_s30, 16  ;;  %s5169_s2 = scalar_lea.vmem %s85_s30, 32 }
  0x21   :  { %p5166_p11 = scmp.ne.s32.totalorder %s85_s30, %s5165_s22  ;;  %p5170_p12 = scmp.lt.s32.totalorder %s85_s30, %s85_s30 }
  0x22   :  { %p5171_p13 = scmp.lt.s32.totalorder %s5169_s2, %s5165_s22 }
  0x24   :  { %p5172_p0 = por %p5171_p13, %p5170_p12 }
  0x26   :  { %p5173_p1 = pnand %p5172_p0, %p5166_p11 }
  0x28   :  { %5176 = shalt.err (!%p5173_p1)
}
  0x29   :  { %87 = dma.hbm_to_vmem [thread:$0]  %s6266_s9, 16, %s85_s30, [#allocation11]  }
  0x2a   :  { %s6281_s25 = sld [smem:[#allocation20_spill]] }
  0x30   :  { %s5177_s26 = scalar_lea.hbm %s6281_s25, 16 }
  0x31   :  { %p5178_p2 = scmp.ne.s32.totalorder %s6281_s25, %s5177_s26  ;;  %p5181_p3 = scmp.lt.u32.totalorder %s5177_s26, %s6281_s25 }
  0x33   :  { %p5183_p4 = pnand %p5181_p3, %p5178_p2 }
  0x35   :  { %5186 = shalt.err (!%p5183_p4)
}
  0x36   :  { %s5383_s1 = smov [#allocation3]   ;;  %s5384_s9 = smov [#allocation6]  }
  0x37   :  { %35 = dma.hbm_to_smem %s6281_s25, 16, %s5383_s1, [#allocation5]  }
  0x38   :  { %s47_s30 = sshll.u32 %s5384_s9, 4  ;;  %s5187_s5 = scalar_lea.hbm %s6261_s4, 256  ;;  %s48_s30 = int_to_ptr.vmem [resolvable:$true] %s47_s30 }
  0x39   :  { %p5188_p5 = scmp.ne.s32.totalorder %s6261_s4, %s5187_s5  ;;  %p5191_p6 = scmp.lt.u32.totalorder %s5187_s5, %s6261_s4 }
  0x3b   :  { %p5193_p7 = pnand %p5191_p6, %p5188_p5 }
  0x3d   :  { %5196 = shalt.err (!%p5193_p7)
}
  0x3e   :  { %s5197_s27 = scalar_lea.vmem %s48_s30, 256  ;;  %p5202_p9 = scmp.lt.s32.totalorder %s48_s30, %s48_s30 }
  0x3f   :  { %p5198_p8 = scmp.ne.s32.totalorder %s48_s30, %s5197_s27  ;;  %p5203_p10 = scmp.lt.s32.totalorder %s5197_s27, %s5197_s27 }
  0x41   :  { %p5204_p11 = por %p5203_p10, %p5202_p9 }
  0x43   :  { %p5205_p12 = pnand %p5204_p11, %p5198_p8 }
  0x45   :  { %5208 = shalt.err (!%p5205_p12)
}
  0x46   :  { %s5385_s25 = smov 128   ;;  %s5386_s29 = smov 8  }
  0x47   :  { %53 = dma.hbm_to_vmem [thread:$0]  %s6261_s4, 256, %s48_s30, [#allocation4], %s5385_s25, %s5385_s25, %s5386_s29  }
  0x48   :  { %s5387_s1 = smov [#allocation9]   ;;  %s5388_s21 = smov [#allocation12]  }
  0x49   :  { %s70_s20 = sshll.u32 %s5387_s1, 4  ;;  %s104_s9 = sshll.u32 %s5388_s21, 4  ;;  %s71_s20 = int_to_ptr.vmem [resolvable:$true] %s70_s20  ;;  %s105_s9 = int_to_ptr.vmem [resolvable:$true] %s104_s9 }
  0x4a   :  { %s5209_s5 = scalar_lea.hbm %s6263_s6, 16 }
  0x4b   :  { %p5210_p13 = scmp.ne.s32.totalorder %s6263_s6, %s5209_s5  ;;  %p5213_p0 = scmp.lt.u32.totalorder %s5209_s5, %s6263_s6 }
  0x4d   :  { %p5215_p1 = pnand %p5213_p0, %p5210_p13 }
  0x4f   :  { %5218 = shalt.err (!%p5215_p1)
}
  0x50   :  { %s5219_s4 = scalar_lea.vmem %s71_s20, 16  ;;  %s5223_s30 = scalar_lea.vmem %s71_s20, 32 }
  0x51   :  { %p5220_p2 = scmp.ne.s32.totalorder %s71_s20, %s5219_s4  ;;  %p5224_p3 = scmp.lt.s32.totalorder %s71_s20, %s71_s20 }
  0x52   :  { %p5225_p4 = scmp.lt.s32.totalorder %s5223_s30, %s5219_s4 }
  0x54   :  { %p5226_p5 = por %p5225_p4, %p5224_p3 }
  0x56   :  { %p5227_p6 = pnand %p5226_p5, %p5220_p2 }
  0x58   :  { %5230 = shalt.err (!%p5227_p6)
}
  0x59   :  { %73 = dma.hbm_to_vmem [thread:$0]  %s6263_s6, 16, %s71_s20, [#allocation8]  }
  0x5a   :  { %s5231_s19 = scalar_lea.hbm %s6272_s15, 16 }
  0x5b   :  { %p5232_p7 = scmp.ne.s32.totalorder %s6272_s15, %s5231_s19  ;;  %p5235_p8 = scmp.lt.u32.totalorder %s5231_s19, %s6272_s15 }
  0x5d   :  { %p5237_p9 = pnand %p5235_p8, %p5232_p7 }
  0x5f   :  { %5240 = shalt.err (!%p5237_p9)
}
  0x60   :  { %s5241_s5 = scalar_lea.vmem %s105_s9, 16  ;;  %s5245_s28 = scalar_lea.vmem %s105_s9, 32 }
  0x61   :  { %p5242_p10 = scmp.ne.s32.totalorder %s105_s9, %s5241_s5  ;;  %p5246_p11 = scmp.lt.s32.totalorder %s105_s9, %s105_s9 }
  0x62   :  { %p5247_p12 = scmp.lt.s32.totalorder %s5245_s28, %s5241_s5 }
  0x64   :  { %p5248_p13 = por %p5247_p12, %p5246_p11 }
  0x66   :  { %p5249_p0 = pnand %p5248_p13, %p5242_p10 }
  0x68   :  { %5252 = shalt.err (!%p5249_p0)
}
  0x69   :  { %107 = dma.hbm_to_vmem [thread:$0]  %s6272_s15, 16, %s105_s9, [#allocation11]  }
  0x6a   :  { %s5389_s23 = smov [#allocation13]   ;;  %s5253_s30 = scalar_lea.hbm %s6274_s17, 16 }
  0x6b   :  { %s116_s24 = sshll.u32 %s5389_s23, 4  ;;  %p5254_p1 = scmp.ne.s32.totalorder %s6274_s17, %s5253_s30  ;;  %s117_s24 = int_to_ptr.vmem [resolvable:$true] %s116_s24 }
  0x6c   :  { %p5257_p2 = scmp.lt.u32.totalorder %s5253_s30, %s6274_s17 }
  0x6e   :  { %p5259_p3 = pnand %p5257_p2, %p5254_p1 }
  0x70   :  { %5262 = shalt.err (!%p5259_p3)
}
  0x71   :  { %s5263_s19 = scalar_lea.vmem %s117_s24, 16  ;;  %s5267_s15 = scalar_lea.vmem %s117_s24, 32 }
  0x72   :  { %p5264_p4 = scmp.ne.s32.totalorder %s117_s24, %s5263_s19  ;;  %p5268_p5 = scmp.lt.s32.totalorder %s117_s24, %s117_s24 }
  0x73   :  { %p5269_p6 = scmp.lt.s32.totalorder %s5267_s15, %s5263_s19 }
  0x75   :  { %p5270_p7 = por %p5269_p6, %p5268_p5 }
  0x77   :  { %p5271_p8 = pnand %p5270_p7, %p5264_p4 }
  0x79   :  { %5274 = shalt.err (!%p5271_p8)
}
  0x7a   :  { %119 = dma.hbm_to_vmem [thread:$0]  %s6274_s17, 16, %s117_s24, [#allocation14]  }
  0x7b   :  { %5323 = dma.done.wait [#allocation5], 16  }
  0x7c   :  { %5324 = vsyncadd [#allocation5], 4294967280 }
  0x7d   :  { %5325 = dma.done.wait [#allocation4], 256  }
  0x7e   :  { %5326 = vsyncadd [#allocation4], 4294967040 }
  0x7f   :  { %5327 = dma.done.wait [#allocation8], 32  }
  0x80   :  { %5328 = vsyncadd [#allocation8], 4294967264 }
  0x81   :  { %5329 = dma.done.wait [#allocation11], 32  }
  0x82   :  { %5330 = vsyncadd [#allocation11], 4294967264 }
  0x83   :  { %5331 = dma.done.wait [#allocation14], 16  }
  0x84   :  { %5332 = vsyncadd [#allocation14], 4294967280 }
  0x85   :  { %141 = sfence }
  0x86   :  { %s6282_s2 = sld [smem:[#allocation21_spill]]  ;;  %v5390_v1 = vmov 0   ;;  %v168_v2 = vld [vmem:[#allocation6] sm:$0xff]  ;;  %v169_v3 = vld [vmem:[#allocation6 + $0x8] sm:$0xff]  ;;  %v154_v6 = vlaneseq  ;;  %vm170_vm0 = vcmask 130048   ;;  %v5391_v9 = vmov 0.0  }
  0x87   :  { %4987 = vset.pattern.permute.xlu0 %v5390_v1  ;;  %4988 = vset.pattern.permute.xlu1 %v5390_v1  ;;  %v4646_v4 = vpack.c.bf16 %v169_v3, %v168_v2  ;;  %vm252_vm3 = vcmask 261120   ;;  %v301_v21 = vld [vmem:[%s6264_s7] sm:$0xff]  ;;  %v302_v22 = vld [vmem:[%s6264_s7 + $0x8] sm:$0xff]  ;;  %v303_v24 = vld [vmem:[%s6264_s7 + $0x10] sm:$0xff]  ;;  %v5392_v30 = vmov 0.0|0.0   ;;  %vm5393_vm4 = vmmov 0  }
  0x88   :  { %v5606_v7 = vand.u32 127, %v154_v6  ;;  %v4650_v23 = vpack.c.bf16 %v302_v22, %v301_v21  ;;  %v304_v25 = vld [vmem:[%s6264_s7 + $0x18] sm:$0xff]  ;;  %v395_v27 = vld [vmem:[%s6265_s8] sm:$0xff]  ;;  %v396_v28 = vld [vmem:[%s6265_s8 + $0x8] sm:$0xff]  ;;  %4658 = vmatprep.subr.bf16.mxu0 %v5392_v30  ;;  %4286 = vmatprep.mubr.msk.f32.mxu0 %vm5393_vm4, %v5391_v9  ;;  %s6283_s22 = sld [smem:[#allocation22_spill]] }
  0x89   :  { %4647 = vmatprep.subr.bf16.mxu1 %v4646_v4  ;;  %v4654_v26 = vpack.c.bf16 %v304_v25, %v303_v24  ;;  %v397_v29 = vld [vmem:[%s6265_s8 + $0x10] sm:$0xff]  ;;  %v5650_v31 = vpack.c.bf16 %v396_v28, %v395_v27  ;;  %v398_v32 = vld [vmem:[%s6265_s8 + $0x18] sm:$0xff]  ;;  %v3994_v52 = vld [vmem:[#allocation7] ss:$0 sm:$0xff]  ;;  %s5394_s8 = smov 64  }
  0x8a   :  { %4649 = vmatpush3.bf16.msra.mxu1 %v4646_v4  ;;  %v5659_v33 = vpack.c.bf16 %v398_v32, %v397_v29  ;;  %v3995_v56 = vld [vmem:[#allocation9] ss:$0 sm:$0xff] }
  0x8b   :  { %4651 = vmatprep.subr.bf16.mxu1 %v4650_v23  ;;  %4660 = vmatpush3.bf16.msra.mxu0 %v5650_v31 }
  0x8c   :  { %v152_v0 = vld [vmem:[%s6282_s2] sm:$0xff]  ;;  %v153_v5 = vld [vmem:[%s6282_s2 + $0x8] sm:$0xff]  ;;  %4661 = vmatprep.subr.bf16.mxu0 %v5392_v30  ;;  %s5395_s2 = smov 32  }
  0x8d   :  { %157 = vperm.xlu0 %4987, %v152_v0   ;;  %v3996_v0 = vld [vmem:[#allocation10] ss:$0 sm:$0xff] }
  0x8f   :  { %4663 = vmatpush3.bf16.msra.mxu0 %v5659_v33 }
  0x90   :  { %4670 = vmatprep.subr.bf16.mxu0 %v5392_v30 }
  0x91   :  { %160 = vperm.xlu0 %4987, %v153_v5  }
  0x92   :  { %4287 = vmatmul.mubr.f32.vlgmr.msra.gmra.mrb[0].mxu0 %v5391_v9 }
  0x93   :  { %4672 = vmatpush3.bf16.msra.mxu0 %v5650_v31  ;;  %4308 = vmatprep.mubr.msk.f32.mxu0 %vm5393_vm4, %v5391_v9 }
  0x94   :  { %4673 = vmatprep.subr.bf16.mxu0 %v5392_v30 }
  0x97   :  { %4675 = vmatpush3.bf16.msra.mxu0 %v5659_v33 }
  0x98   :  { %4682 = vmatprep.subr.bf16.mxu0 %v5392_v30 }
 0x10c   :  { %v158_v8 = vpop.permute.xlu0 %157 }
 0x10d   :  { %vm162_vm1 = vcmp.eq.s32.totalorder %v5606_v7, %v158_v8 }
 0x10e   :  { %v3990_v10 = vsel %vm162_vm1, 1.0, %v5391_v9 }
 0x10f   :  { %4264 = vmatprep.mubr.msk.f32.mxu1 %vm170_vm0, %v3990_v10 }
 0x110   :  { %v161_v11 = vpop.permute.xlu0 %160 }
 0x111   :  { %vm163_vm2 = vcmp.eq.s32.totalorder %v5606_v7, %v161_v11 }
 0x112   :  { %v3991_v12 = vsel %vm163_vm2, 1.0, %v5391_v9 }
 0x113   :  { %4265 = vmatmul.mubr.msk.f32.vlgmr.msra.gmra.mrb[0].mxu1 %vm170_vm0, %v3991_v12 }
 0x114   :  { %4653 = vmatpush3.bf16.msra.mxu1 %v4650_v23 }
 0x115   :  { %4655 = vmatprep.subr.bf16.mxu1 %v4654_v26 }
 0x118   :  { %4657 = vmatpush3.bf16.msra.mxu1 %v4654_v26 }
 0x119   :  { %4664 = vmatprep.subr.bf16.mxu1 %v5392_v30 }
 0x165   :  { %v468_v62 = vpop.f32.mrb[0].mxu0 }
 0x166   :  { %v4288_v63 = vpop.f32.mrb[1].mxu0 }
 0x1e6   :  { %v5614_v13 = vpop.f32.mrb[0].mxu1 }
 0x1e7   :  { %v5616_v14 = vpop.f32.mrb[1].mxu1  ;;  %v256_v15 = vsel %vm252_vm3, %v5614_v13, 0.0  ;;  %v260_v19 = vmul.f32 %v5614_v13, %v5614_v13 }
 0x1e8   :  { %257 = vadd.xlane.f32.xlu1 %v256_v15  ;;  %v259_v16 = vmul.f32 %v5616_v14, %v5616_v14  ;;  %v253_v18 = vsel %vm252_vm3, %v5616_v14, 0.0 }
 0x1e9   :  { %v264_v20 = vsel %vm252_vm3, %v260_v19, 0.0 }
 0x1ea   :  { %v261_v17 = vsel %vm252_vm3, %v259_v16, 0.0 }
 0x1eb   :  { %262 = vadd.xlane.f32.xlu0 %v261_v17 }
 0x1ec   :  { %254 = vadd.xlane.f32.xlu1 %v253_v18 }
 0x1f0   :  { %265 = vadd.xlane.f32.xlu1 %v264_v20 }
 0x275   :  { %v258_v34 = vpop.xlane.xlu1 %257 }
 0x276   :  { %v268_v37 = vmul.f32 0.03125, %v258_v34 }
 0x278   :  { %v263_v35 = vpop.xlane.xlu0 %262  ;;  %v272_v42 = vmul.f32 %v268_v37, %v268_v37  ;;  %v278_v53 = vsub.f32 %v5614_v13, %v268_v37 }
 0x279   :  { %v255_v36 = vpop.xlane.xlu1 %254  ;;  %v269_v39 = vmul.f32 0.03125, %v263_v35 }
 0x27a   :  { %v267_v38 = vmul.f32 0.03125, %v255_v36 }
 0x27c   :  { %v271_v40 = vmul.f32 %v267_v38, %v267_v38  ;;  %v277_v50 = vsub.f32 %v5616_v14, %v267_v38  ;;  %v5685_v14 = vld [vmem:[%s6283_s22] sm:$0x3] }
 0x27d   :  { %v266_v41 = vpop.xlane.xlu1 %265  ;;  %vm497_vm5 = vcmp.gt.s32.totalorder %v5685_v14, 0  ;;  %vm606_vm7 = vcmp.gt.s32.totalorder %v5685_v14, 1  ;;  %vm715_vm9 = vcmp.gt.s32.totalorder %v5685_v14, 2  ;;  %vm824_vm11 = vcmp.gt.s32.totalorder %v5685_v14, 3 }
 0x27e   :  { %v273_v43 = vsub.f32 %v269_v39, %v271_v40  ;;  %v270_v44 = vmul.f32 0.03125, %v266_v41  ;;  %v498_v18 = vsel %vm497_vm5, 1, %v5390_v1  ;;  %vm933_vm13 = vcmp.gt.s32.totalorder %v5685_v14, 4 }
 0x27f   :  { %vm1042_vm15 = vcmp.gt.s32.totalorder %v5685_v14, 5  ;;  %vm1151_vm2 = vcmp.gt.s32.totalorder %v5685_v14, 6 }
 0x280   :  { %v275_v45 = vmax.f32 %v273_v43, 0.0  ;;  %v274_v46 = vsub.f32 %v270_v44, %v272_v42  ;;  %v607_v42 = vsel %vm606_vm7, 1, %v5390_v1  ;;  %vm1352_vm7 = vcmask 254976  }
 0x282   :  { %v279_v47 = vadd.f32 1e-05, %v275_v45  ;;  %v276_v48 = vmax.f32 %v274_v46, 0.0 }
 0x284   :  { %4989 = vrsqrt.f32 %v279_v47  ;;  %v280_v49 = vadd.f32 1e-05, %v276_v48 }
 0x286   :  { %4991 = vrsqrt.f32 %v280_v49 }
 0x28e   :  { %v4990_v51 = vpop.eup %4989 }
 0x28f   :  { %v283_v54 = vmul.f32 %v4990_v51, %v277_v50 }
 0x290   :  { %v4992_v55 = vpop.eup %4991 }
 0x291   :  { %v291_v57 = vmul.f32 %v3994_v52, %v283_v54  ;;  %v284_v58 = vmul.f32 %v4992_v55, %v278_v53 }
 0x293   :  { %v292_v59 = vmul.f32 %v3994_v52, %v284_v58  ;;  %v299_v60 = vadd.f32 %v3995_v56, %v291_v57  ;;  %v716_v58 = vsel %vm715_vm9, 1, %v5390_v1 }
 0x295   :  { %v300_v61 = vadd.f32 %v3995_v56, %v292_v59  ;;  %4275 = vmatprep.mubr.msk.f32.mxu1 %vm252_vm3, %v299_v60 }
 0x297   :  { %4276 = vmatmul.mubr.msk.f32.vlgmr.msra.gmra.mrb[2].mxu1 %vm252_vm3, %v300_v61 }
 0x298   :  { %4666 = vmatpush3.bf16.msra.mxu1 %v5650_v31  ;;  %4297 = vmatprep.mubr.msk.f32.mxu1 %vm5393_vm4, %v5391_v9 }
 0x299   :  { %4667 = vmatprep.subr.bf16.mxu1 %v5392_v30 }
 0x29c   :  { %4669 = vmatpush3.bf16.msra.mxu1 %v5659_v33 }
 0x29d   :  { %4676 = vmatprep.subr.bf16.mxu1 %v5392_v30 }
 0x36a   :  { %v4277_v2 = vpop.f32.mrb[2].mxu1 }
 0x36b   :  { %v389_v3 = vadd.f32 %v4277_v2, %v3996_v0  ;;  %v383_v4 = vpop.f32.mrb[3].mxu1 }
 0x36c   :  { %v384_v5 = vadd.f32 %v3996_v0, %v383_v4 }
 0x36d   :  { %393 = vst [vmem:[#allocation2 + $0x8] sm:$0xff] %v389_v3 }
 0x36e   :  { %392 = vst [vmem:[#allocation2] sm:$0xff] %v384_v5 }
 0x375   :  { %v394_v6 = vld [vmem:[#allocation2] sm:$0x3]  ;;  %v505_v28 = vld [vmem:[#allocation2 + $0x2] sm:$0x3]  ;;  %v614_v53 = vld [vmem:[#allocation2 + $0x4] sm:$0x3] }
 0x376   :  { %v472_v8 = vadd.f32 %v468_v62, %v394_v6 }
 0x378   :  { %4993 = vtanh.f32 %v472_v8  ;;  %v3999_v11 = vmul.f32 -1.442695, %v472_v8 }
 0x37a   :  { %4995 = vpow2.f32 %v3999_v11 }
 0x382   :  { %v4994_v10 = vpop.eup %4993 }
 0x383   :  { %482 = vrot.lane.b32.xlu1 %v4994_v10, %s5394_s8 }
 0x384   :  { %v4996_v12 = vpop.eup %4995 }
 0x385   :  { %v476_v13 = vadd.f32 1.0, %v4996_v12 }
 0x387   :  { %4997 = vrcp.f32 %v476_v13 }
 0x391   :  { %v4998_v15 = vpop.eup %4997 }
 0x392   :  { %v480_v19 = vmul.f32 0.0, %v4998_v15 }
 0x3f5   :  { %v483_v16 = vpop.permute.xlu1 %482 }
 0x3f6   :  { %v485_v17 = vmul.f32 %v4998_v15, %v483_v16 }
 0x3f8   :  { %487 = vrot.lane.b32.xlu1 %v485_v17, %s5395_s2 }
 0x3fc   :  { %500 = vperm.xlu1 %4988, %v498_v18  }
 0x46a   :  { %v488_v20 = vpop.permute.xlu1 %487 }
 0x46b   :  { %v490_v21 = vadd.f32 %v488_v20, %v480_v19  ;;  %v825_v20 = vsel %vm824_vm11, 1, %v5390_v1 }
 0x46d   :  { %4999 = vtanh.f32 %v490_v21 }
 0x477   :  { %v5000_v22 = vpop.eup %4999 }
 0x478   :  { %493 = vrot.lane.b32.xlu1 %v5000_v22, %s5394_s8 }
 0x47b   :  { %v501_v23 = vpop.permute.xlu1 %500 }
 0x47c   :  { %vm502_vm6 = vcmp.eq.s32.totalorder %v501_v23, 1 }
 0x47d   :  { %v504_v43 = vsel %vm502_vm6, %v490_v21, 0.0 }
 0x4ea   :  { %v494_v24 = vpop.permute.xlu1 %493 }
 0x4eb   :  { %v496_v25 = vmul.f32 %v4998_v15, %v494_v24  ;;  %v723_v15 = vld [vmem:[#allocation2 + $0x6] sm:$0x3] }
 0x4ed   :  { %v503_v26 = vsel %vm502_vm6, %v496_v25, 0.0 }
 0x4ee   :  { %507 = vrot.lane.b32.xlu0 %v503_v26, %s5395_s2 }
 0x560   :  { %v508_v27 = vpop.permute.xlu0 %507 }
 0x561   :  { %4298 = vmatmul.mubr.msk.f32.vlgmr.msra.gmra.mrb[4].mxu1 %vm252_vm3, %v508_v27 }
 0x562   :  { %4678 = vmatpush3.bf16.msra.mxu1 %v5650_v31  ;;  %4319 = vmatprep.mubr.msk.f32.mxu1 %vm5393_vm4, %v5391_v9 }
 0x563   :  { %4679 = vmatprep.subr.bf16.mxu1 %v5392_v30 }
 0x566   :  { %4681 = vmatpush3.bf16.msra.mxu1 %v5659_v33 }
 0x567   :  { %4688 = vmatprep.subr.bf16.mxu1 %v5392_v30 }
 0x634   :  { %v577_v29 = vpop.f32.mrb[4].mxu1 }
 0x635   :  { %v581_v32 = vadd.f32 %v577_v29, %v505_v28  ;;  %v4299_v34 = vpop.f32.mrb[5].mxu1 }
 0x637   :  { %5001 = vtanh.f32 %v581_v32  ;;  %v4001_v36 = vmul.f32 -1.442695, %v581_v32 }
 0x639   :  { %5003 = vpow2.f32 %v4001_v36 }
 0x641   :  { %v5002_v35 = vpop.eup %5001 }
 0x642   :  { %591 = vrot.lane.b32.xlu1 %v5002_v35, %s5394_s8 }
 0x643   :  { %v5004_v37 = vpop.eup %5003 }
 0x644   :  { %v585_v38 = vadd.f32 1.0, %v5004_v37 }
 0x646   :  { %5005 = vrcp.f32 %v585_v38 }
 0x650   :  { %v5006_v39 = vpop.eup %5005 }
 0x651   :  { %v589_v44 = vmul.f32 %v5006_v39, %v504_v43 }
 0x6b4   :  { %v592_v40 = vpop.permute.xlu1 %591 }
 0x6b5   :  { %v594_v41 = vmul.f32 %v5006_v39, %v592_v40  ;;  %v832_v40 = vld [vmem:[#allocation2 + $0x8] sm:$0x3] }
 0x6b7   :  { %596 = vrot.lane.b32.xlu1 %v594_v41, %s5395_s2 }
 0x6bb   :  { %609 = vperm.xlu1 %4988, %v607_v42  }
 0x729   :  { %v597_v45 = vpop.permute.xlu1 %596 }
 0x72a   :  { %v599_v46 = vadd.f32 %v597_v45, %v589_v44  ;;  %v934_v45 = vsel %vm933_vm13, 1, %v5390_v1 }
 0x72c   :  { %5007 = vtanh.f32 %v599_v46 }
 0x736   :  { %v5008_v47 = vpop.eup %5007 }
 0x737   :  { %602 = vrot.lane.b32.xlu1 %v5008_v47, %s5394_s8 }
 0x73a   :  { %v610_v48 = vpop.permute.xlu1 %609 }
 0x73b   :  { %vm611_vm8 = vcmp.eq.s32.totalorder %v610_v48, 1 }
 0x73c   :  { %v613_v2 = vsel %vm611_vm8, %v599_v46, %v504_v43 }
 0x7a9   :  { %v603_v49 = vpop.permute.xlu1 %602 }
 0x7aa   :  { %v605_v50 = vmul.f32 %v5006_v39, %v603_v49 }
 0x7ac   :  { %v612_v51 = vsel %vm611_vm8, %v605_v50, %v503_v26  ;;  %vm1260_vm8 = vcmp.gt.s32.totalorder %v5685_v14, 7 }
 0x7ad   :  { %616 = vrot.lane.b32.xlu1 %v612_v51, %s5395_s2 }
 0x81f   :  { %v617_v52 = vpop.permute.xlu1 %616 }
 0x820   :  { %4309 = vmatmul.mubr.msk.f32.vlgmr.msra.gmra.mrb[2].mxu0 %vm252_vm3, %v617_v52 }
 0x821   :  { %4684 = vmatpush3.bf16.msra.mxu0 %v5650_v31  ;;  %4330 = vmatprep.mubr.msk.f32.mxu0 %vm5393_vm4, %v5391_v9 }
 0x822   :  { %4685 = vmatprep.subr.bf16.mxu0 %v5392_v30 }
 0x825   :  { %4687 = vmatpush3.bf16.msra.mxu0 %v5659_v33 }
 0x826   :  { %4694 = vmatprep.subr.bf16.mxu0 %v5392_v30 }
 0x8f3   :  { %v686_v54 = vpop.f32.mrb[2].mxu0 }
 0x8f4   :  { %v690_v55 = vadd.f32 %v686_v54, %v614_v53  ;;  %v4310_v56 = vpop.f32.mrb[3].mxu0 }
 0x8f6   :  { %5009 = vtanh.f32 %v690_v55  ;;  %v4003_v59 = vmul.f32 -1.442695, %v690_v55 }
 0x8f8   :  { %5011 = vpow2.f32 %v4003_v59 }
 0x900   :  { %v5010_v57 = vpop.eup %5009 }
 0x901   :  { %700 = vrot.lane.b32.xlu0 %v5010_v57, %s5394_s8 }
 0x902   :  { %v5012_v60 = vpop.eup %5011 }
 0x903   :  { %v694_v61 = vadd.f32 1.0, %v5012_v60 }
 0x905   :  { %718 = vperm.xlu0 %4987, %v716_v58   ;;  %5013 = vrcp.f32 %v694_v61 }
 0x90f   :  { %v5014_v62 = vpop.eup %5013 }
 0x910   :  { %v698_v3 = vmul.f32 %v5014_v62, %v613_v2 }
 0x973   :  { %v701_v63 = vpop.permute.xlu0 %700 }
 0x974   :  { %v703_v0 = vmul.f32 %v5014_v62, %v701_v63 }
 0x976   :  { %705 = vrot.lane.b32.xlu1 %v703_v0, %s5395_s2 }
 0x984   :  { %v719_v8 = vpop.permute.xlu0 %718 }
 0x985   :  { %vm720_vm10 = vcmp.eq.s32.totalorder %v719_v8, 1 }
 0x9e8   :  { %v706_v4 = vpop.permute.xlu1 %705 }
 0x9e9   :  { %v708_v5 = vadd.f32 %v706_v4, %v698_v3 }
 0x9eb   :  { %5015 = vtanh.f32 %v708_v5  ;;  %v722_v27 = vsel %vm720_vm10, %v708_v5, %v613_v2 }
 0x9f5   :  { %v5016_v6 = vpop.eup %5015 }
 0x9f6   :  { %711 = vrot.lane.b32.xlu1 %v5016_v6, %s5394_s8 }
 0xa68   :  { %v712_v10 = vpop.permute.xlu1 %711 }
 0xa69   :  { %v714_v11 = vmul.f32 %v5014_v62, %v712_v10  ;;  %v941_v62 = vld [vmem:[#allocation2 + $0xa] sm:$0x3] }
 0xa6b   :  { %v721_v12 = vsel %vm720_vm10, %v714_v11, %v612_v51 }
 0xa6c   :  { %725 = vrot.lane.b32.xlu0 %v721_v12, %s5395_s2 }
 0xade   :  { %v726_v13 = vpop.permute.xlu0 %725 }
 0xadf   :  { %4320 = vmatmul.mubr.msk.f32.vlgmr.msra.gmra.mrb[6].mxu1 %vm252_vm3, %v726_v13 }
 0xae0   :  { %4690 = vmatpush3.bf16.msra.mxu1 %v5650_v31  ;;  %4341 = vmatprep.mubr.msk.f32.mxu1 %vm5393_vm4, %v5391_v9 }
 0xae1   :  { %4691 = vmatprep.subr.bf16.mxu1 %v5392_v30 }
 0xae4   :  { %4693 = vmatpush3.bf16.msra.mxu1 %v5659_v33 }
 0xae5   :  { %4700 = vmatprep.subr.bf16.mxu1 %v5392_v30 }
 0xbb2   :  { %v795_v16 = vpop.f32.mrb[6].mxu1 }
 0xbb3   :  { %v799_v17 = vadd.f32 %v795_v16, %v723_v15  ;;  %v4321_v18 = vpop.f32.mrb[7].mxu1 }
 0xbb5   :  { %5017 = vtanh.f32 %v799_v17  ;;  %v4005_v21 = vmul.f32 -1.442695, %v799_v17 }
 0xbb7   :  { %5019 = vpow2.f32 %v4005_v21 }
 0xbbf   :  { %v5018_v19 = vpop.eup %5017 }
 0xbc0   :  { %809 = vrot.lane.b32.xlu1 %v5018_v19, %s5394_s8 }
 0xbc1   :  { %v5020_v22 = vpop.eup %5019 }
 0xbc2   :  { %v803_v23 = vadd.f32 1.0, %v5020_v22  ;;  %v1050_v22 = vld [vmem:[#allocation2 + $0xc] sm:$0x3] }
 0xbc4   :  { %827 = vperm.xlu1 %4988, %v825_v20   ;;  %5021 = vrcp.f32 %v803_v23 }
 0xbce   :  { %v5022_v24 = vpop.eup %5021 }
 0xbcf   :  { %v807_v28 = vmul.f32 %v5022_v24, %v722_v27 }
 0xc32   :  { %v810_v25 = vpop.permute.xlu1 %809 }
 0xc33   :  { %v812_v26 = vmul.f32 %v5022_v24, %v810_v25 }
 0xc35   :  { %814 = vrot.lane.b32.xlu0 %v812_v26, %s5395_s2 }
 0xc43   :  { %v828_v35 = vpop.permute.xlu1 %827 }
 0xc44   :  { %vm829_vm12 = vcmp.eq.s32.totalorder %v828_v35, 1 }
 0xca7   :  { %v815_v29 = vpop.permute.xlu0 %814 }
 0xca8   :  { %v817_v32 = vadd.f32 %v815_v29, %v807_v28 }
 0xcaa   :  { %5023 = vtanh.f32 %v817_v32  ;;  %v831_v52 = vsel %vm829_vm12, %v817_v32, %v722_v27  ;;  %v1152_v27 = vsel %vm1151_vm2, 1, %v5390_v1 }
 0xcb4   :  { %v5024_v34 = vpop.eup %5023 }
 0xcb5   :  { %820 = vrot.lane.b32.xlu0 %v5024_v34, %s5394_s8 }
 0xd27   :  { %v821_v36 = vpop.permute.xlu0 %820 }
 0xd28   :  { %v823_v37 = vmul.f32 %v5022_v24, %v821_v36 }
 0xd2a   :  { %v830_v38 = vsel %vm829_vm12, %v823_v37, %v721_v12 }
 0xd2b   :  { %834 = vrot.lane.b32.xlu1 %v830_v38, %s5395_s2 }
 0xd9d   :  { %v835_v39 = vpop.permute.xlu1 %834 }
 0xd9e   :  { %4331 = vmatmul.mubr.msk.f32.vlgmr.msra.gmra.mrb[4].mxu0 %vm252_vm3, %v835_v39 }
 0xd9f   :  { %4696 = vmatpush3.bf16.msra.mxu0 %v5650_v31  ;;  %4352 = vmatprep.mubr.msk.f32.mxu0 %vm5393_vm4, %v5391_v9 }
 0xda0   :  { %4697 = vmatprep.subr.bf16.mxu0 %v5392_v30 }
 0xda3   :  { %4699 = vmatpush3.bf16.msra.mxu0 %v5659_v33 }
 0xda4   :  { %4706 = vmatprep.subr.bf16.mxu0 %v5392_v30 }
 0xe71   :  { %v904_v41 = vpop.f32.mrb[4].mxu0 }
 0xe72   :  { %v908_v42 = vadd.f32 %v904_v41, %v832_v40  ;;  %v4332_v43 = vpop.f32.mrb[5].mxu0  ;;  %v146_v41 = vld [vmem:[%s6267_s10] sm:$0xff] }
 0xe74   :  { %5025 = vtanh.f32 %v908_v42  ;;  %v4007_v46 = vmul.f32 -1.442695, %v908_v42  ;;  %v147_v42 = vld [vmem:[%s6267_s10 + $0x8] sm:$0xff] }
 0xe75   :  { %v5782_v43 = vpack.c.bf16 %v147_v42, %v146_v41  ;;  %v5873_v42 = vld [vmem:[%s6269_s12] ss:$0 sm:$0xff] }
 0xe76   :  { %5027 = vpow2.f32 %v4007_v46 }
 0xe7e   :  { %v5026_v44 = vpop.eup %5025 }
 0xe7f   :  { %918 = vrot.lane.b32.xlu0 %v5026_v44, %s5394_s8 }
 0xe80   :  { %v5028_v47 = vpop.eup %5027 }
 0xe81   :  { %v912_v48 = vadd.f32 1.0, %v5028_v47 }
 0xe83   :  { %936 = vperm.xlu0 %4987, %v934_v45   ;;  %5029 = vrcp.f32 %v912_v48  ;;  %v1268_v45 = vld [vmem:[%s6260_s3] sm:$0x3] }
 0xe8d   :  { %v5030_v49 = vpop.eup %5029 }
 0xe8e   :  { %v916_v53 = vmul.f32 %v5030_v49, %v831_v52 }
 0xef1   :  { %v919_v50 = vpop.permute.xlu0 %918 }
 0xef2   :  { %v921_v51 = vmul.f32 %v5030_v49, %v919_v50 }
 0xef4   :  { %923 = vrot.lane.b32.xlu1 %v921_v51, %s5395_s2 }
 0xf02   :  { %v937_v57 = vpop.permute.xlu0 %936 }
 0xf03   :  { %vm938_vm14 = vcmp.eq.s32.totalorder %v937_v57, 1  ;;  %v1159_v57 = vld [vmem:[#allocation2 + $0xe] sm:$0x3] }
 0xf66   :  { %v924_v54 = vpop.permute.xlu1 %923 }
 0xf67   :  { %v926_v55 = vadd.f32 %v924_v54, %v916_v53 }
 0xf69   :  { %5031 = vtanh.f32 %v926_v55  ;;  %v940_v11 = vsel %vm938_vm14, %v926_v55, %v831_v52 }
 0xf73   :  { %v5032_v56 = vpop.eup %5031 }
 0xf74   :  { %929 = vrot.lane.b32.xlu1 %v5032_v56, %s5394_s8 }
 0xfe6   :  { %v930_v58 = vpop.permute.xlu1 %929 }
 0xfe7   :  { %v932_v59 = vmul.f32 %v5030_v49, %v930_v58 }
 0xfe9   :  { %v939_v60 = vsel %vm938_vm14, %v932_v59, %v830_v38 }
 0xfea   :  { %943 = vrot.lane.b32.xlu0 %v939_v60, %s5395_s2 }
0x105c   :  { %v944_v61 = vpop.permute.xlu0 %943 }
0x105d   :  { %4342 = vmatmul.mubr.msk.f32.vlgmr.msra.gmra.mrb[8].mxu1 %vm252_vm3, %v944_v61 }
0x105e   :  { %4702 = vmatpush3.bf16.msra.mxu1 %v5650_v31  ;;  %4363 = vmatprep.mubr.msk.f32.mxu1 %vm5393_vm4, %v5391_v9  ;;  %v1043_v31 = vsel %vm1042_vm15, 1, %v5390_v1 }
0x105f   :  { %4703 = vmatprep.subr.bf16.mxu1 %v5392_v30 }
0x1062   :  { %4705 = vmatpush3.bf16.msra.mxu1 %v5659_v33 }
0x1063   :  { %4715 = vmatprep.subr.bf16.mxu1 %v5392_v30 }
0x1130   :  { %v1013_v63 = vpop.f32.mrb[8].mxu1 }
0x1131   :  { %v1017_v0 = vadd.f32 %v1013_v63, %v941_v62  ;;  %v4343_v2 = vpop.f32.mrb[9].mxu1  ;;  %v1261_v62 = vsel %vm1260_vm8, 1, %v5390_v1 }
0x1133   :  { %5033 = vtanh.f32 %v1017_v0  ;;  %v4009_v4 = vmul.f32 -1.442695, %v1017_v0 }
0x1135   :  { %5035 = vpow2.f32 %v4009_v4 }
0x113d   :  { %v5034_v3 = vpop.eup %5033 }
0x113e   :  { %1027 = vrot.lane.b32.xlu1 %v5034_v3, %s5394_s8 }
0x113f   :  { %v5036_v5 = vpop.eup %5035 }
0x1140   :  { %v1021_v6 = vadd.f32 1.0, %v5036_v5 }
0x1142   :  { %1045 = vperm.xlu1 %4988, %v1043_v31   ;;  %5037 = vrcp.f32 %v1021_v6 }
0x114c   :  { %v5038_v33 = vpop.eup %5037 }
0x114d   :  { %v1025_v12 = vmul.f32 %v5038_v33, %v940_v11 }
0x11b0   :  { %v1028_v8 = vpop.permute.xlu1 %1027 }
0x11b1   :  { %v1030_v10 = vmul.f32 %v5038_v33, %v1028_v8 }
0x11b3   :  { %1032 = vrot.lane.b32.xlu0 %v1030_v10, %s5395_s2  ;;  %v1383_v10 = vld [vmem:[%s6270_s13] sm:$0xff] }
0x11c1   :  { %v1046_v17 = vpop.permute.xlu1 %1045 }
0x11c2   :  { %vm1047_vm1 = vcmp.eq.s32.totalorder %v1046_v17, 1  ;;  %v1275_v17 = vld [vmem:[%s6271_s14] sm:$0xff] }
0x1225   :  { %v1033_v13 = vpop.permute.xlu0 %1032 }
0x1226   :  { %v1035_v15 = vadd.f32 %v1033_v13, %v1025_v12  ;;  %v1385_v13 = vld [vmem:[%s6270_s13 + $0x10] sm:$0xff] }
0x1228   :  { %5039 = vtanh.f32 %v1035_v15  ;;  %v1049_v37 = vsel %vm1047_vm1, %v1035_v15, %v940_v11  ;;  %v1384_v11 = vld [vmem:[%s6270_s13 + $0x8] sm:$0xff]  ;;  %v1386_v15 = vld [vmem:[%s6270_s13 + $0x18] sm:$0xff] }
0x1229   :  { %v5828_v12 = vpack.c.bf16 %v1384_v11, %v1383_v10  ;;  %v4025_v11 = vld [vmem:[%s6260_s3 + $0x2] sm:$0x3] }
0x1232   :  { %v5040_v16 = vpop.eup %5039 }
0x1233   :  { %1038 = vrot.lane.b32.xlu0 %v5040_v16, %s5394_s8  ;;  %v5837_v16 = vpack.c.bf16 %v1386_v15, %v1385_v13  ;;  %v5920_v13 = vld [vmem:[#allocation13] ss:$0 sm:$0xff] }
0x12a5   :  { %v1039_v18 = vpop.permute.xlu0 %1038 }
0x12a6   :  { %v1041_v19 = vmul.f32 %v5038_v33, %v1039_v18  ;;  %v1276_v18 = vld [vmem:[%s6271_s14 + $0x8] sm:$0xff] }
0x12a8   :  { %v1048_v20 = vsel %vm1047_vm1, %v1041_v19, %v939_v60  ;;  %v1277_v19 = vld [vmem:[%s6271_s14 + $0x10] sm:$0xff] }
0x12a9   :  { %1052 = vrot.lane.b32.xlu1 %v1048_v20, %s5395_s2 }
0x131b   :  { %v1053_v21 = vpop.permute.xlu1 %1052 }
0x131c   :  { %4353 = vmatmul.mubr.msk.f32.vlgmr.msra.gmra.mrb[6].mxu0 %vm252_vm3, %v1053_v21  ;;  %v1278_v21 = vld [vmem:[%s6271_s14 + $0x18] sm:$0xff] }
0x131d   :  { %4370 = vmatprep.mubr.msk.f32.mxu0 %vm5393_vm4, %v5391_v9  ;;  %4708 = vmatpush3.bf16.msra.mxu0 %v5782_v43 }
0x131e   :  { %4709 = vmatprep.subr.bf16.mxu0 %v5392_v30 }
0x13ef   :  { %v1122_v23 = vpop.f32.mrb[6].mxu0 }
0x13f0   :  { %v1126_v24 = vadd.f32 %v1122_v23, %v1050_v22  ;;  %v4354_v25 = vpop.f32.mrb[7].mxu0  ;;  %v5857_v22 = vpack.c.bf16 %v1278_v21, %v1277_v19  ;;  %v5333_v19 = vmov 0  }
0x13f2   :  { %5041 = vtanh.f32 %v1126_v24  ;;  %v4011_v28 = vmul.f32 -1.442695, %v1126_v24 }
0x13f4   :  { %5043 = vpow2.f32 %v4011_v28 }
0x13fc   :  { %v5042_v26 = vpop.eup %5041 }
0x13fd   :  { %1136 = vrot.lane.b32.xlu0 %v5042_v26, %s5394_s8 }
0x13fe   :  { %v5044_v29 = vpop.eup %5043 }
0x13ff   :  { %v1130_v32 = vadd.f32 1.0, %v5044_v29 }
0x1401   :  { %1154 = vperm.xlu0 %4987, %v1152_v27   ;;  %5045 = vrcp.f32 %v1130_v32 }
0x140b   :  { %v5046_v34 = vpop.eup %5045 }
0x140c   :  { %v1134_v38 = vmul.f32 %v5046_v34, %v1049_v37 }
0x146f   :  { %v1137_v35 = vpop.permute.xlu0 %1136 }
0x1470   :  { %v1139_v36 = vmul.f32 %v5046_v34, %v1137_v35 }
0x1472   :  { %1141 = vrot.lane.b32.xlu1 %v1139_v36, %s5395_s2 }
0x1480   :  { %v1155_v46 = vpop.permute.xlu0 %1154 }
0x1481   :  { %vm1156_vm5 = vcmp.eq.s32.totalorder %v1155_v46, 1 }
0x14e4   :  { %v1142_v39 = vpop.permute.xlu1 %1141 }
0x14e5   :  { %v1144_v40 = vadd.f32 %v1142_v39, %v1134_v38 }
0x14e7   :  { %5047 = vtanh.f32 %v1144_v40  ;;  %v5815_v14 = vsel %vm1156_vm5, %v1144_v40, %v1049_v37  ;;  %v5868_v40 = vld [vmem:[%s6268_s11] ss:$0 sm:$0xff] }
0x14f1   :  { %v5048_v44 = vpop.eup %5047 }
0x14f2   :  { %1147 = vrot.lane.b32.xlu1 %v5048_v44, %s5394_s8 }
0x14f6   :  { %1270 = vperm.xlu1 %4988, %v1268_v45  }
0x1564   :  { %v1148_v47 = vpop.permute.xlu1 %1147 }
0x1565   :  { %v1150_v48 = vmul.f32 %v5046_v34, %v1148_v47 }
0x1567   :  { %v5791_v49 = vsel %vm1156_vm5, %v1150_v48, %v1048_v20  ;;  %v5851_v20 = vpack.c.bf16 %v1276_v18, %v1275_v17 }
0x1568   :  { %1161 = vrot.lane.b32.xlu0 %v5791_v49, %s5395_s2 }
0x1575   :  { %v1271_v50 = vpop.permute.xlu1 %1270 }
0x1576   :  { %vm1272_vm6 = vcmp.eq.s32.totalorder %v5606_v7, %v1271_v50 }
0x1577   :  { %v4014_v51 = vsel %vm1272_vm6, 1.0, %v5391_v9 }
0x1578   :  { %4371 = vmatmul.mubr.msk.f32.vlgmr.msra.gmra.mrb[8].mxu0 %vm170_vm0, %v4014_v51 }
0x1579   :  { %4381 = vmatprep.mubr.msk.f32.mxu0 %vm5393_vm4, %v5391_v9  ;;  %4711 = vmatpush3.bf16.msra.mxu0 %v5828_v12 }
0x157a   :  { %4712 = vmatprep.subr.bf16.mxu0 %v5392_v30 }
0x157d   :  { %4714 = vmatpush3.bf16.msra.mxu0 %v5837_v16 }
0x157e   :  { %4721 = vmatprep.subr.bf16.mxu0 %v5392_v30 }
0x15da   :  { %v1162_v52 = vpop.permute.xlu0 %1161 }
0x15db   :  { %4364 = vmatmul.mubr.msk.f32.vlgmr.msra.gmra.mrb[10].mxu1 %vm252_vm3, %v1162_v52 }
0x15dc   :  { %4392 = vmatprep.mubr.msk.f32.mxu1 %vm5393_vm4, %v5391_v9  ;;  %4717 = vmatpush3.bf16.msra.mxu1 %v5851_v20 }
0x15dd   :  { %4718 = vmatprep.subr.bf16.mxu1 %v5392_v30 }
0x15e0   :  { %4720 = vmatpush3.bf16.msra.mxu1 %v5857_v22 }
0x164b   :  { %v5803_v53 = vpop.f32.mrb[8].mxu0 }
0x164c   :  { %v4372_v54 = vpop.f32.mrb[9].mxu0  ;;  %v1356_v55 = vmul.f32 %v5803_v53, %v5803_v53  ;;  %v1353_v63 = vsel %vm1352_vm7, %v5803_v53, 0.0 }
0x164e   :  { %v1357_v56 = vsel %vm1352_vm7, %v1356_v55, 0.0 }
0x16ae   :  { %v1231_v58 = vpop.f32.mrb[10].mxu1 }
0x16af   :  { %v1235_v59 = vadd.f32 %v1231_v58, %v1159_v57  ;;  %v4365_v60 = vpop.f32.mrb[11].mxu1 }
0x16b1   :  { %5049 = vtanh.f32 %v1235_v59  ;;  %v4013_v0 = vmul.f32 -1.442695, %v1235_v59 }
0x16b3   :  { %5051 = vpow2.f32 %v4013_v0 }
0x16bb   :  { %v5050_v61 = vpop.eup %5049 }
0x16bc   :  { %1245 = vrot.lane.b32.xlu0 %v5050_v61, %s5394_s8 }
0x16bd   :  { %v5052_v2 = vpop.eup %5051 }
0x16be   :  { %v1239_v3 = vadd.f32 1.0, %v5052_v2  ;;  %v1571_v2 = vld [vmem:[%s6273_s16] sm:$0xff] }
0x16c0   :  { %1263 = vperm.xlu0 %4987, %v1261_v62   ;;  %5053 = vrcp.f32 %v1239_v3  ;;  %v1572_v3 = vld [vmem:[%s6273_s16 + $0x8] sm:$0xff] }
0x16ca   :  { %v5054_v31 = vpop.eup %5053 }
0x16cb   :  { %v1243_v1 = vmul.f32 %v5054_v31, %v5815_v14 }
0x16df   :  { %1354 = vadd.xlane.f32.xlu0 %v1353_v63 }
0x172e   :  { %v1246_v4 = vpop.permute.xlu0 %1245 }
0x172f   :  { %v1248_v5 = vmul.f32 %v5054_v31, %v1246_v4  ;;  %v5901_v4 = vpack.c.bf16 %v1572_v3, %v1571_v2 }
0x1731   :  { %1250 = vrot.lane.b32.xlu1 %v1248_v5, %s5395_s2  ;;  %v1574_v5 = vld [vmem:[%s6273_s16 + $0x18] sm:$0xff] }
0x173f   :  { %v1264_v23 = vpop.permute.xlu0 %1263 }
0x1740   :  { %vm1265_vm9 = vcmp.eq.s32.totalorder %v1264_v23, 1 }
0x176c   :  { %v1355_v27 = vpop.xlane.xlu0 %1354 }
0x176d   :  { %v1360_v28 = vmul.f32 0.03125, %v1355_v27 }
0x176f   :  { %v1362_v32 = vmul.f32 %v1360_v28, %v1360_v28  ;;  %v1365_v38 = vsub.f32 %v5803_v53, %v1360_v28 }
0x17a3   :  { %v1251_v6 = vpop.permute.xlu1 %1250 }
0x17a4   :  { %v5818_v33 = vadd.f32 %v1251_v6, %v1243_v1 }
0x17a6   :  { %5055 = vtanh.f32 %v5818_v33  ;;  %v1267_v61 = vsel %vm1265_vm9, %v5818_v33, %v5815_v14 }
0x17b0   :  { %v5056_v8 = vpop.eup %5055 }
0x17b1   :  { %1256 = vrot.lane.b32.xlu1 %v5056_v8, %s5394_s8 }
0x17d5   :  { %1358 = vadd.xlane.f32.xlu1 %v1357_v56 }
0x1823   :  { %v1257_v24 = vpop.permute.xlu1 %1256 }
0x1824   :  { %v1259_v25 = vmul.f32 %v5054_v31, %v1257_v24  ;;  %v1573_v31 = vld [vmem:[%s6273_s16 + $0x10] sm:$0xff]  ;;  %s4024_s16 = sld [smem:[#allocation3 + $0x1]] }
0x1825   :  { %v5907_v14 = vpack.c.bf16 %v1574_v5, %v1573_v31 }
0x1826   :  { %v1266_v26 = vsel %vm1265_vm9, %v1259_v25, %v5791_v49  ;;  %v5881_v49 = vld [vmem:[#allocation12] ss:$0 sm:$0xff] }
0x1827   :  { %1461 = vrot.lane.b32.xlu0 %v1266_v26, %s5395_s2 }
0x182a   :  { %p1657_p9 = scmp.eq.s32.totalorder %s4024_s16, 1  ;;  %p4026_p10 = scmp.ne.s32.totalorder %s4024_s16, 1 }
0x182b   :  { %v5396_v21 = vmov (!%p4026_p10), 0   ;;  %v5397_v24 = vmov (!%p4026_p10), 0.0  }
0x182c   :  { %5067 = vset.pattern.permute.xlu0 (!%p4026_p10), %v5396_v21 }
0x1862   :  { %v1359_v29 = vpop.xlane.xlu1 %1358 }
0x1863   :  { %v1361_v34 = vmul.f32 0.03125, %v1359_v29 }
0x1865   :  { %v1363_v35 = vsub.f32 %v1361_v34, %v1362_v32 }
0x1867   :  { %v1364_v36 = vmax.f32 %v1363_v35, 0.0 }
0x1869   :  { %v1366_v37 = vadd.f32 1e-05, %v1364_v36 }
0x186b   :  { %5057 = vrsqrt.f32 %v1366_v37 }
0x1875   :  { %v5058_v39 = vpop.eup %5057 }
0x1876   :  { %v1368_v41 = vmul.f32 %v5058_v39, %v1365_v38 }
0x1878   :  { %v1375_v44 = vmul.f32 %v5868_v40, %v1368_v41 }
0x187a   :  { %v1382_v45 = vadd.f32 %v5873_v42, %v1375_v44 }
0x187c   :  { %4382 = vmatmul.mubr.msk.f32.vlgmr.msra.gmra.mrb[10].mxu0 %vm252_vm3, %v1382_v45 }
0x187d   :  { %4403 = vmatprep.mubr.msk.f32.mxu0 %vm5393_vm4, %v5391_v9  ;;  %4723 = vmatpush3.bf16.msra.mxu0 %v5901_v4 }
0x187e   :  { %4724 = vmatprep.subr.bf16.mxu0 %v5392_v30 }
0x1881   :  { %4726 = vmatpush3.bf16.msra.mxu0 %v5907_v14 }
0x1899   :  { %v1462_v46 = vpop.permute.xlu0 %1461 }
0x189a   :  { %4393 = vmatmul.mubr.msk.f32.vlgmr.msra.gmra.mrb[12].mxu1 %vm252_vm3, %v1462_v46 }
0x194f   :  { %v1456_v47 = vpop.f32.mrb[10].mxu0 }
0x1950   :  { %v4383_v48 = vpop.f32.mrb[11].mxu0 }
0x196d   :  { %v1531_v50 = vpop.f32.mrb[12].mxu1 }
0x196e   :  { %v1532_v51 = vadd.f32 %v1531_v50, %v1456_v47  ;;  %v4394_v52 = vpop.f32.mrb[13].mxu1 }
0x1970   :  { %v1541_v53 = vadd.f32 %v5881_v49, %v1532_v51 }
0x1972   :  { %5059 = vtanh.f32 %v1541_v53  ;;  %v4021_v55 = vmul.f32 -1.442695, %v1541_v53 }
0x1974   :  { %5061 = vpow2.f32 %v4021_v55 }
0x197c   :  { %v5060_v54 = vpop.eup %5059 }
0x197d   :  { %1551 = vrot.lane.b32.xlu1 %v5060_v54, %s5394_s8 }
0x197e   :  { %v5062_v56 = vpop.eup %5061 }
0x197f   :  { %v1545_v57 = vadd.f32 1.0, %v5062_v56 }
0x1981   :  { %5063 = vrcp.f32 %v1545_v57 }
0x198b   :  { %v5064_v58 = vpop.eup %5063 }
0x198c   :  { %v1549_v62 = vmul.f32 %v5064_v58, %v1267_v61 }
0x19ef   :  { %v1552_v59 = vpop.permute.xlu1 %1551 }
0x19f0   :  { %v1554_v60 = vmul.f32 %v5064_v58, %v1552_v59 }
0x19f2   :  { %1556 = vrot.lane.b32.xlu0 %v1554_v60, %s5395_s2 }
0x1a64   :  { %v1557_v63 = vpop.permute.xlu0 %1556 }
0x1a65   :  { %v5889_v0 = vadd.f32 %v1557_v63, %v1549_v62 }
0x1a67   :  { %5065 = vtanh.f32 %v5889_v0 }
0x1a71   :  { %v5066_v1 = vpop.eup %5065 }
0x1a72   :  { %1562 = vrot.lane.b32.xlu1 %v5066_v1, %s5394_s8 }
0x1ae4   :  { %v1563_v6 = vpop.permute.xlu1 %1562 }
0x1ae5   :  { %v1565_v33 = vmul.f32 %v5064_v58, %v1563_v6 }
0x1ae7   :  { %1567 = vrot.lane.b32.xlu0 %v1565_v33, %s5395_s2 }
0x1aeb   :  { %1662 = vperm.xlu0 (!%p4026_p10), %5067, %v4025_v11  }
0x1b59   :  { %v5913_v8 = vpop.permute.xlu0 %1567 }
0x1b5a   :  { %v1570_v10 = vadd.f32 %v5913_v8, %v1382_v45 }
0x1b5c   :  { %4404 = vmatmul.mubr.msk.f32.vlgmr.msra.gmra.mrb[12].mxu0 %vm252_vm3, %v1570_v10 }
0x1b6a   :  { %v1663_v23 = vpop.permute.xlu0 (!%p4026_p10), %1662 }
0x1b6b   :  { %vm1664_vm10 = vcmp.eq.s32.totalorder (!%p4026_p10), %v5606_v7, %v1663_v23 }
0x1b6c   :  { %v4027_v19 = vsel (!%p4026_p10), %vm1664_vm10, 1.0, %v5397_v24  }
0x1c2a   :  { %1660 = sbr.rel (%p4026_p10) target bundleno = 7217 (0x1c31), region = 105 }
0x1c2f   :  { %v1650_v15 = vpop.f32.mrb[12].mxu0 }
0x1c30   :  { %v5923_v17 = vadd.f32 %v5920_v13, %v1650_v15  ;;  %v4405_v18 = vpop.f32.mrb[13].mxu0 }
0x1c31 PF:  { %v5337_v25 = vmov %v5335_v19   ;;  %1670 = sbr.rel (%p1657_p9) target bundleno = 7660 (0x1dec), region = 109  ;;  %vm1671_vm11 = vcmask (!%p1657_p9), 123904   ;;  %v5398_v47 = vmov (!%p1657_p9), 0.0   ;;  %v5335_v19 = vphi %v5333_v19, %v4027_v19  }
0x1c32   :  { %v1672_v26 = vsel (!%p1657_p9), %vm1671_vm11, %v5923_v17, -inf }
0x1c33   :  { %1673 = vmax.xlane.f32.xlu0 (!%p1657_p9), %v1672_v26 }
0x1cc0   :  { %v1674_v27 = vpop.xlane.xlu0 %1673 }
0x1cc1   :  { %vm1675_vm12 = vcmp.eq.f32.partialorder %v5923_v17, %v1674_v27 }
0x1cc2   :  { %v1676_v28 = vsel %vm1675_vm12, %v5606_v7, 16 }
0x1cc3   :  { %v1677_v29 = vsel %vm1671_vm11, %v1676_v28, 2147483647 }
0x1cc4   :  { %v1679_v32 = vshra.s32 %v1677_v29, 16  ;;  %v1678_v35 = vand.u32 65535, %v1677_v29 }
0x1cc6   :  { %v1681_v34 = vcvt.s32.f32 %v1679_v32  ;;  %v1680_v37 = vcvt.s32.f32 %v1678_v35 }
0x1cc8   :  { %1682 = vmin.xlane.f32.xlu0 %v1681_v34 }
0x1d55   :  { %v1683_v36 = vpop.xlane.xlu0 %1682 }
0x1d56   :  { %vm1684_vm13 = vcmp.eq.f32.partialorder %v1681_v34, %v1683_v36  ;;  %v1689_v39 = vcvt.f32.s32 %v1683_v36 }
0x1d57   :  { %v1685_v38 = vsel %vm1684_vm13, %v1680_v37, inf }
0x1d58   :  { %1686 = vmin.xlane.f32.xlu1 %v1685_v38  ;;  %v1690_v44 = vshll.u32 %v1689_v39, 16 }
0x1de5   :  { %v1687_v41 = vpop.xlane.xlu1 %1686 }
0x1de6   :  { %v1688_v45 = vcvt.f32.s32 %v1687_v41 }
0x1de8   :  { %v1691_v46 = vadd.s32 %v1690_v44, %v1688_v45 }
0x1dea   :  { %vm1692_vm14 = vcmp.eq.s32.totalorder %v5606_v7, %v1691_v46 }
0x1deb   :  { %v4028_v25 = vsel %vm1692_vm14, 1.0, %v5398_v47  }
0x1dec PF:  { %4727 = vmatprep.subr.bf16.mxu1 %v5392_v30  ;;  %4410 = vmatprep.mubr.msk.f32.mxu1 %vm5393_vm4, %v5391_v9  ;;  %s4034_s30 = sld [smem:[#allocation3 + $0x2]]  ;;  %v5341_v39 = vmov 0   ;;  %v5339_v25 = vphi %v5337_v25, %v4028_v25  }
0x1ded   :  { %4729 = vmatpush3.bf16.msra.mxu1 %v5782_v43  ;;  %4736 = vmatprep.subr.bf16.mxu0 %v5392_v30 }
0x1dee   :  { %4730 = vmatprep.subr.bf16.mxu1 %v5392_v30  ;;  %4738 = vmatpush3.bf16.msra.mxu0 %v5851_v20 }
0x1def   :  { %4739 = vmatprep.subr.bf16.mxu0 %v5392_v30  ;;  %4432 = vmatprep.mubr.msk.f32.mxu0 %vm5393_vm4, %v5391_v9 }
0x1df0   :  { %4411 = vmatmul.mubr.msk.f32.vlgmr.msra.gmra.mrb[14].mxu1 %vm170_vm0, %v5339_v25 }
0x1df1   :  { %4732 = vmatpush3.bf16.msra.mxu1 %v5828_v12  ;;  %4421 = vmatprep.mubr.msk.f32.mxu1 %vm5393_vm4, %v5391_v9 }
0x1df2   :  { %4733 = vmatprep.subr.bf16.mxu1 %v5392_v30  ;;  %4741 = vmatpush3.bf16.msra.mxu0 %v5857_v22  ;;  %p2038_p11 = scmp.eq.s32.totalorder %s4034_s30, 1  ;;  %p4036_p12 = scmp.ne.s32.totalorder %s4034_s30, 1 }
0x1df3   :  { %v5399_v41 = vmov (!%p4036_p12), 0   ;;  %v5400_v45 = vmov (!%p4036_p12), 0.0  }
0x1df4   :  { %5078 = vset.pattern.permute.xlu0 (!%p4036_p12), %v5399_v41 }
0x1df5   :  { %4735 = vmatpush3.bf16.msra.mxu1 %v5837_v16  ;;  %4433 = vmatmul.mubr.msk.f32.vlgmr.msra.gmra.mrb[14].mxu0 %vm252_vm3, %v5913_v8 }
0x1df6   :  { %4742 = vmatprep.subr.bf16.mxu1 %v5392_v30 }
0x1ec3   :  { %v1765_v48 = vpop.f32.mrb[14].mxu1 }
0x1ec4   :  { %v4412_v50 = vpop.f32.mrb[15].mxu1  ;;  %v1769_v51 = vsel %vm1352_vm7, %v1765_v48, 0.0  ;;  %v1772_v52 = vmul.f32 %v1765_v48, %v1765_v48 }
0x1ec5   :  { %1770 = vadd.xlane.f32.xlu0 %v1769_v51 }
0x1ec6   :  { %v1773_v53 = vsel %vm1352_vm7, %v1772_v52, 0.0 }
0x1ec8   :  { %v1928_v54 = vpop.f32.mrb[14].mxu0 }
0x1ec9   :  { %1774 = vadd.xlane.f32.xlu0 %v1773_v53  ;;  %v4434_v55 = vpop.f32.mrb[15].mxu0 }
0x1f52   :  { %v1771_v56 = vpop.xlane.xlu0 %1770 }
0x1f53   :  { %v1776_v57 = vmul.f32 0.03125, %v1771_v56 }
0x1f55   :  { %v1778_v59 = vmul.f32 %v1776_v57, %v1776_v57  ;;  %v1781_v2 = vsub.f32 %v1765_v48, %v1776_v57 }
0x1f56   :  { %v1775_v58 = vpop.xlane.xlu0 %1774 }
0x1f57   :  { %v1777_v60 = vmul.f32 0.03125, %v1775_v58 }
0x1f59   :  { %v1779_v61 = vsub.f32 %v1777_v60, %v1778_v59 }
0x1f5b   :  { %v1780_v62 = vmax.f32 %v1779_v61, 0.0 }
0x1f5d   :  { %v1782_v63 = vadd.f32 1e-05, %v1780_v62 }
0x1f5f   :  { %5068 = vrsqrt.f32 %v1782_v63 }
0x1f69   :  { %v5069_v3 = vpop.eup %5068 }
0x1f6a   :  { %v1784_v31 = vmul.f32 %v5069_v3, %v1781_v2 }
0x1f6c   :  { %v1785_v5 = vmul.f32 %v5868_v40, %v1784_v31 }
0x1f6e   :  { %v1786_v1 = vadd.f32 %v5873_v42, %v1785_v5 }
0x1f70   :  { %4422 = vmatmul.mubr.msk.f32.vlgmr.msra.gmra.mrb[16].mxu1 %vm252_vm3, %v1786_v1 }
0x1f71   :  { %4744 = vmatpush3.bf16.msra.mxu1 %v5901_v4  ;;  %4443 = vmatprep.mubr.msk.f32.mxu1 %vm5393_vm4, %v5391_v9 }
0x1f72   :  { %4745 = vmatprep.subr.bf16.mxu1 %v5392_v30 }
0x1f75   :  { %4747 = vmatpush3.bf16.msra.mxu1 %v5907_v14 }
0x2043   :  { %v1856_v6 = vpop.f32.mrb[16].mxu1 }
0x2044   :  { %v1929_v33 = vadd.f32 %v1928_v54, %v1856_v6  ;;  %v4423_v8 = vpop.f32.mrb[17].mxu1 }
0x2046   :  { %v1932_v10 = vadd.f32 %v5881_v49, %v1929_v33 }
0x2048   :  { %5070 = vtanh.f32 %v1932_v10  ;;  %v4032_v15 = vmul.f32 -1.442695, %v1932_v10 }
0x204a   :  { %5072 = vpow2.f32 %v4032_v15 }
0x2052   :  { %v5071_v11 = vpop.eup %5070 }
0x2053   :  { %1942 = vrot.lane.b32.xlu1 %v5071_v11, %s5394_s8 }
0x2054   :  { %v5073_v18 = vpop.eup %5072 }
0x2055   :  { %v1936_v19 = vadd.f32 1.0, %v5073_v18 }
0x2057   :  { %5074 = vrcp.f32 %v1936_v19 }
0x2061   :  { %v5075_v21 = vpop.eup %5074 }
0x2062   :  { %v1940_v25 = vmul.f32 %v5075_v21, %v5889_v0  ;;  %v4035_v0 = vld [vmem:[%s6260_s3 + $0x4] sm:$0x3] }
0x20c5   :  { %v1943_v23 = vpop.permute.xlu1 %1942 }
0x20c6   :  { %v1945_v24 = vmul.f32 %v5075_v21, %v1943_v23 }
0x20c8   :  { %1947 = vrot.lane.b32.xlu1 %v1945_v24, %s5395_s2 }
0x213a   :  { %v1948_v26 = vpop.permute.xlu1 %1947 }
0x213b   :  { %v5965_v27 = vadd.f32 %v1948_v26, %v1940_v25 }
0x213d   :  { %5076 = vtanh.f32 %v5965_v27 }
0x2147   :  { %v5077_v28 = vpop.eup %5076 }
0x2148   :  { %1953 = vrot.lane.b32.xlu0 %v5077_v28, %s5394_s8 }
0x214c   :  { %2043 = vperm.xlu0 (!%p4036_p12), %5078, %v4035_v0  }
0x21ba   :  { %v1954_v29 = vpop.permute.xlu0 %1953 }
0x21bb   :  { %v1956_v32 = vmul.f32 %v5075_v21, %v1954_v29 }
0x21bd   :  { %1958 = vrot.lane.b32.xlu1 %v1956_v32, %s5395_s2 }
0x21cb   :  { %v2044_v44 = vpop.permute.xlu0 (!%p4036_p12), %2043 }
0x21cc   :  { %vm2045_vm15 = vcmp.eq.s32.totalorder (!%p4036_p12), %v5606_v7, %v2044_v44 }
0x21cd   :  { %v4037_v39 = vsel (!%p4036_p12), %vm2045_vm15, 1.0, %v5400_v45  }
0x222f   :  { %v5970_v34 = vpop.permute.xlu1 %1958 }
0x2230   :  { %v1961_v35 = vadd.f32 %v5970_v34, %v1786_v1 }
0x2232   :  { %4444 = vmatmul.mubr.msk.f32.vlgmr.msra.gmra.mrb[18].mxu1 %vm252_vm3, %v1961_v35 }
0x2300   :  { %2041 = sbr.rel (%p4036_p12) target bundleno = 8967 (0x2307), region = 113 }
0x2305   :  { %v2031_v36 = vpop.f32.mrb[18].mxu1 }
0x2306   :  { %v5978_v37 = vadd.f32 %v5920_v13, %v2031_v36  ;;  %v4445_v38 = vpop.f32.mrb[19].mxu1 }
0x2307 PF:  { %v5345_v46 = vmov %v5343_v39   ;;  %2051 = sbr.rel (%p2038_p11) target bundleno = 9410 (0x24c2), region = 117  ;;  %vm2052_vm1 = vcmask (!%p2038_p11), 123904   ;;  %v5401_v63 = vmov (!%p2038_p11), 0.0   ;;  %v5343_v39 = vphi %v5341_v39, %v4037_v39  }
0x2308   :  { %v2053_v47 = vsel (!%p2038_p11), %vm2052_vm1, %v5978_v37, -inf }
0x2309   :  { %2054 = vmax.xlane.f32.xlu0 (!%p2038_p11), %v2053_v47 }
0x2396   :  { %v2055_v48 = vpop.xlane.xlu0 %2054 }
0x2397   :  { %vm2056_vm2 = vcmp.eq.f32.partialorder %v5978_v37, %v2055_v48 }
0x2398   :  { %v2057_v50 = vsel %vm2056_vm2, %v5606_v7, 16 }
0x2399   :  { %v2058_v51 = vsel %vm2052_vm1, %v2057_v50, 2147483647 }
0x239a   :  { %v2060_v52 = vshra.s32 %v2058_v51, 16  ;;  %v2059_v54 = vand.u32 65535, %v2058_v51 }
0x239c   :  { %v2062_v53 = vcvt.s32.f32 %v2060_v52  ;;  %v2061_v56 = vcvt.s32.f32 %v2059_v54 }
0x239e   :  { %2063 = vmin.xlane.f32.xlu0 %v2062_v53 }
0x242b   :  { %v2064_v55 = vpop.xlane.xlu0 %2063 }
0x242c   :  { %vm2065_vm5 = vcmp.eq.f32.partialorder %v2062_v53, %v2064_v55  ;;  %v2070_v58 = vcvt.f32.s32 %v2064_v55 }
0x242d   :  { %v2066_v57 = vsel %vm2065_vm5, %v2061_v56, inf }
0x242e   :  { %2067 = vmin.xlane.f32.xlu1 %v2066_v57  ;;  %v2071_v60 = vshll.u32 %v2070_v58, 16 }
0x24bb   :  { %v2068_v59 = vpop.xlane.xlu1 %2067 }
0x24bc   :  { %v2069_v61 = vcvt.f32.s32 %v2068_v59 }
0x24be   :  { %v2072_v62 = vadd.s32 %v2071_v60, %v2069_v61 }
0x24c0   :  { %vm2073_vm6 = vcmp.eq.s32.totalorder %v5606_v7, %v2072_v62 }
0x24c1   :  { %v4038_v46 = vsel %vm2073_vm6, 1.0, %v5401_v63  }
0x24c2 PF:  { %4748 = vmatprep.subr.bf16.mxu0 %v5392_v30  ;;  %4450 = vmatprep.mubr.msk.f32.mxu0 %vm5393_vm4, %v5391_v9  ;;  %s4044_s29 = sld [smem:[#allocation3 + $0x3]]  ;;  %v5349_v59 = vmov 0   ;;  %v5347_v46 = vphi %v5345_v46, %v4038_v46  }
0x24c3   :  { %4750 = vmatpush3.bf16.msra.mxu0 %v5782_v43  ;;  %4757 = vmatprep.subr.bf16.mxu1 %v5392_v30 }
0x24c4   :  { %4751 = vmatprep.subr.bf16.mxu0 %v5392_v30  ;;  %4759 = vmatpush3.bf16.msra.mxu1 %v5851_v20 }
0x24c5   :  { %4760 = vmatprep.subr.bf16.mxu1 %v5392_v30  ;;  %4472 = vmatprep.mubr.msk.f32.mxu1 %vm5393_vm4, %v5391_v9 }
0x24c6   :  { %4451 = vmatmul.mubr.msk.f32.vlgmr.msra.gmra.mrb[16].mxu0 %vm170_vm0, %v5347_v46 }
0x24c7   :  { %4753 = vmatpush3.bf16.msra.mxu0 %v5828_v12  ;;  %4461 = vmatprep.mubr.msk.f32.mxu0 %vm5393_vm4, %v5391_v9 }
0x24c8   :  { %4754 = vmatprep.subr.bf16.mxu0 %v5392_v30  ;;  %4762 = vmatpush3.bf16.msra.mxu1 %v5857_v22  ;;  %p2419_p13 = scmp.eq.s32.totalorder %s4044_s29, 1  ;;  %p4046_p0 = scmp.ne.s32.totalorder %s4044_s29, 1 }
0x24c9   :  { %v5402_v60 = vmov (!%p4046_p0), 0   ;;  %v5403_v62 = vmov (!%p4046_p0), 0.0  }
0x24ca   :  { %5089 = vset.pattern.permute.xlu0 (!%p4046_p0), %v5402_v60 }
0x24cb   :  { %4756 = vmatpush3.bf16.msra.mxu0 %v5837_v16  ;;  %4473 = vmatmul.mubr.msk.f32.vlgmr.msra.gmra.mrb[20].mxu1 %vm252_vm3, %v5970_v34 }
0x24cc   :  { %4763 = vmatprep.subr.bf16.mxu0 %v5392_v30 }
0x2599   :  { %v2146_v2 = vpop.f32.mrb[16].mxu0 }
0x259a   :  { %v4452_v3 = vpop.f32.mrb[17].mxu0  ;;  %v2150_v31 = vsel %vm1352_vm7, %v2146_v2, 0.0  ;;  %v2153_v5 = vmul.f32 %v2146_v2, %v2146_v2 }
0x259b   :  { %2151 = vadd.xlane.f32.xlu0 %v2150_v31 }
0x259c   :  { %v2154_v1 = vsel %vm1352_vm7, %v2153_v5, 0.0 }
0x259e   :  { %v2309_v6 = vpop.f32.mrb[20].mxu1 }
0x259f   :  { %2155 = vadd.xlane.f32.xlu0 %v2154_v1  ;;  %v4474_v33 = vpop.f32.mrb[21].mxu1 }
0x2628   :  { %v2152_v8 = vpop.xlane.xlu0 %2151 }
0x2629   :  { %v2157_v10 = vmul.f32 0.03125, %v2152_v8 }
0x262b   :  { %v2159_v15 = vmul.f32 %v2157_v10, %v2157_v10  ;;  %v2162_v24 = vsub.f32 %v2146_v2, %v2157_v10 }
0x262c   :  { %v2156_v11 = vpop.xlane.xlu0 %2155 }
0x262d   :  { %v2158_v18 = vmul.f32 0.03125, %v2156_v11 }
0x262f   :  { %v2160_v19 = vsub.f32 %v2158_v18, %v2159_v15 }
0x2631   :  { %v2161_v21 = vmax.f32 %v2160_v19, 0.0 }
0x2633   :  { %v2163_v23 = vadd.f32 1e-05, %v2161_v21 }
0x2635   :  { %5079 = vrsqrt.f32 %v2163_v23 }
0x263f   :  { %v5080_v25 = vpop.eup %5079 }
0x2640   :  { %v2165_v26 = vmul.f32 %v5080_v25, %v2162_v24 }
0x2642   :  { %v2166_v28 = vmul.f32 %v5868_v40, %v2165_v26 }
0x2644   :  { %v2167_v29 = vadd.f32 %v5873_v42, %v2166_v28 }
0x2646   :  { %4462 = vmatmul.mubr.msk.f32.vlgmr.msra.gmra.mrb[18].mxu0 %vm252_vm3, %v2167_v29 }
0x2647   :  { %4765 = vmatpush3.bf16.msra.mxu0 %v5901_v4  ;;  %4483 = vmatprep.mubr.msk.f32.mxu0 %vm5393_vm4, %v5391_v9 }
0x2648   :  { %4766 = vmatprep.subr.bf16.mxu0 %v5392_v30 }
0x264b   :  { %4768 = vmatpush3.bf16.msra.mxu0 %v5907_v14 }
0x2719   :  { %v2237_v32 = vpop.f32.mrb[18].mxu0 }
0x271a   :  { %v2310_v34 = vadd.f32 %v2309_v6, %v2237_v32  ;;  %v4463_v35 = vpop.f32.mrb[19].mxu0 }
0x271c   :  { %v2313_v0 = vadd.f32 %v5881_v49, %v2310_v34 }
0x271e   :  { %5081 = vtanh.f32 %v2313_v0  ;;  %v4042_v38 = vmul.f32 -1.442695, %v2313_v0 }
0x2720   :  { %5083 = vpow2.f32 %v4042_v38 }
0x2728   :  { %v5082_v36 = vpop.eup %5081 }
0x2729   :  { %2323 = vrot.lane.b32.xlu1 %v5082_v36, %s5394_s8 }
0x272a   :  { %v5084_v39 = vpop.eup %5083 }
0x272b   :  { %v2317_v41 = vadd.f32 1.0, %v5084_v39 }
0x272d   :  { %5085 = vrcp.f32 %v2317_v41 }
0x2737   :  { %v5086_v44 = vpop.eup %5085 }
0x2738   :  { %v2321_v47 = vmul.f32 %v5086_v44, %v5965_v27  ;;  %v4045_v27 = vld [vmem:[%s6260_s3 + $0x6] sm:$0x3] }
0x279b   :  { %v2324_v45 = vpop.permute.xlu1 %2323 }
0x279c   :  { %v2326_v46 = vmul.f32 %v5086_v44, %v2324_v45 }
0x279e   :  { %2328 = vrot.lane.b32.xlu1 %v2326_v46, %s5395_s2 }
0x2810   :  { %v2329_v48 = vpop.permute.xlu1 %2328 }
0x2811   :  { %v6020_v50 = vadd.f32 %v2329_v48, %v2321_v47 }
0x2813   :  { %5087 = vtanh.f32 %v6020_v50 }
0x281d   :  { %v5088_v51 = vpop.eup %5087 }
0x281e   :  { %2334 = vrot.lane.b32.xlu0 %v5088_v51, %s5394_s8 }
0x2822   :  { %2424 = vperm.xlu0 (!%p4046_p0), %5089, %v4045_v27  }
0x2890   :  { %v2335_v52 = vpop.permute.xlu0 %2334 }
0x2891   :  { %v2337_v53 = vmul.f32 %v5086_v44, %v2335_v52 }
0x2893   :  { %2339 = vrot.lane.b32.xlu1 %v2337_v53, %s5395_s2 }
0x28a1   :  { %v2425_v61 = vpop.permute.xlu0 (!%p4046_p0), %2424 }
0x28a2   :  { %vm2426_vm8 = vcmp.eq.s32.totalorder (!%p4046_p0), %v5606_v7, %v2425_v61 }
0x28a3   :  { %v4047_v59 = vsel (!%p4046_p0), %vm2426_vm8, 1.0, %v5403_v62  }
0x2905   :  { %v6025_v54 = vpop.permute.xlu1 %2339 }
0x2906   :  { %v2342_v55 = vadd.f32 %v6025_v54, %v2167_v29 }
0x2908   :  { %4484 = vmatmul.mubr.msk.f32.vlgmr.msra.gmra.mrb[20].mxu0 %vm252_vm3, %v2342_v55 }
0x29d6   :  { %2422 = sbr.rel (%p4046_p0) target bundleno = 10717 (0x29dd), region = 121 }
0x29db   :  { %v2412_v56 = vpop.f32.mrb[20].mxu0 }
0x29dc   :  { %v6033_v57 = vadd.f32 %v5920_v13, %v2412_v56  ;;  %v4485_v58 = vpop.f32.mrb[21].mxu0 }
0x29dd PF:  { %v5353_v63 = vmov %v5351_v59   ;;  %2432 = sbr.rel (%p2419_p13) target bundleno = 11160 (0x2b98), region = 125  ;;  %vm2433_vm9 = vcmask (!%p2419_p13), 123904   ;;  %v5404_v24 = vmov (!%p2419_p13), 0.0   ;;  %v5351_v59 = vphi %v5349_v59, %v4047_v59  }
0x29de   :  { %v2434_v2 = vsel (!%p2419_p13), %vm2433_vm9, %v6033_v57, -inf }
0x29df   :  { %2435 = vmax.xlane.f32.xlu0 (!%p2419_p13), %v2434_v2 }
0x2a6c   :  { %v2436_v3 = vpop.xlane.xlu0 %2435 }
0x2a6d   :  { %vm2437_vm10 = vcmp.eq.f32.partialorder %v6033_v57, %v2436_v3 }
0x2a6e   :  { %v2438_v31 = vsel %vm2437_vm10, %v5606_v7, 16 }
0x2a6f   :  { %v2439_v5 = vsel %vm2433_vm9, %v2438_v31, 2147483647 }
0x2a70   :  { %v2441_v1 = vshra.s32 %v2439_v5, 16  ;;  %v2440_v33 = vand.u32 65535, %v2439_v5 }
0x2a72   :  { %v2443_v6 = vcvt.s32.f32 %v2441_v1  ;;  %v2442_v10 = vcvt.s32.f32 %v2440_v33 }
0x2a74   :  { %2444 = vmin.xlane.f32.xlu0 %v2443_v6 }
0x2b01   :  { %v2445_v8 = vpop.xlane.xlu0 %2444 }
0x2b02   :  { %vm2446_vm11 = vcmp.eq.f32.partialorder %v2443_v6, %v2445_v8  ;;  %v2451_v15 = vcvt.f32.s32 %v2445_v8 }
0x2b03   :  { %v2447_v11 = vsel %vm2446_vm11, %v2442_v10, inf }
0x2b04   :  { %2448 = vmin.xlane.f32.xlu1 %v2447_v11  ;;  %v2452_v19 = vshll.u32 %v2451_v15, 16 }
0x2b91   :  { %v2449_v18 = vpop.xlane.xlu1 %2448 }
0x2b92   :  { %v2450_v21 = vcvt.f32.s32 %v2449_v18 }
0x2b94   :  { %v2453_v23 = vadd.s32 %v2452_v19, %v2450_v21 }
0x2b96   :  { %vm2454_vm12 = vcmp.eq.s32.totalorder %v5606_v7, %v2453_v23 }
0x2b97   :  { %v4048_v63 = vsel %vm2454_vm12, 1.0, %v5404_v24  }
0x2b98 PF:  { %4769 = vmatprep.subr.bf16.mxu1 %v5392_v30  ;;  %4490 = vmatprep.mubr.msk.f32.mxu1 %vm5393_vm4, %v5391_v9  ;;  %s4054_s15 = sld [smem:[#allocation3 + $0x4]]  ;;  %v5357_v19 = vmov 0   ;;  %v5355_v63 = vphi %v5353_v63, %v4048_v63  }
0x2b99   :  { %4771 = vmatpush3.bf16.msra.mxu1 %v5782_v43  ;;  %4778 = vmatprep.subr.bf16.mxu0 %v5392_v30 }
0x2b9a   :  { %4772 = vmatprep.subr.bf16.mxu1 %v5392_v30  ;;  %4780 = vmatpush3.bf16.msra.mxu0 %v5851_v20 }
0x2b9b   :  { %4781 = vmatprep.subr.bf16.mxu0 %v5392_v30  ;;  %4512 = vmatprep.mubr.msk.f32.mxu0 %vm5393_vm4, %v5391_v9 }
0x2b9c   :  { %4491 = vmatmul.mubr.msk.f32.vlgmr.msra.gmra.mrb[22].mxu1 %vm170_vm0, %v5355_v63 }
0x2b9d   :  { %4774 = vmatpush3.bf16.msra.mxu1 %v5828_v12  ;;  %4501 = vmatprep.mubr.msk.f32.mxu1 %vm5393_vm4, %v5391_v9 }
0x2b9e   :  { %4775 = vmatprep.subr.bf16.mxu1 %v5392_v30  ;;  %4783 = vmatpush3.bf16.msra.mxu0 %v5857_v22  ;;  %p2800_p1 = scmp.eq.s32.totalorder %s4054_s15, 1  ;;  %p4056_p2 = scmp.ne.s32.totalorder %s4054_s15, 1 }
0x2b9f   :  { %v5405_v21 = vmov (!%p4056_p2), 0   ;;  %v5406_v24 = vmov (!%p4056_p2), 0.0  }
0x2ba0   :  { %5100 = vset.pattern.permute.xlu0 (!%p4056_p2), %v5405_v21 }
0x2ba1   :  { %4777 = vmatpush3.bf16.msra.mxu1 %v5837_v16  ;;  %4513 = vmatmul.mubr.msk.f32.vlgmr.msra.gmra.mrb[22].mxu0 %vm252_vm3, %v6025_v54 }
0x2ba2   :  { %4784 = vmatprep.subr.bf16.mxu1 %v5392_v30 }
0x2c6f   :  { %v2527_v25 = vpop.f32.mrb[22].mxu1 }
0x2c70   :  { %v4492_v26 = vpop.f32.mrb[23].mxu1  ;;  %v2531_v28 = vsel %vm1352_vm7, %v2527_v25, 0.0  ;;  %v2534_v29 = vmul.f32 %v2527_v25, %v2527_v25 }
0x2c71   :  { %2532 = vadd.xlane.f32.xlu0 %v2531_v28 }
0x2c72   :  { %v2535_v32 = vsel %vm1352_vm7, %v2534_v29, 0.0 }
0x2c74   :  { %v2690_v34 = vpop.f32.mrb[22].mxu0 }
0x2c75   :  { %2536 = vadd.xlane.f32.xlu0 %v2535_v32  ;;  %v4514_v35 = vpop.f32.mrb[23].mxu0 }
0x2cfe   :  { %v2533_v0 = vpop.xlane.xlu0 %2532 }
0x2cff   :  { %v2538_v36 = vmul.f32 0.03125, %v2533_v0 }
0x2d01   :  { %v2540_v39 = vmul.f32 %v2538_v36, %v2538_v36  ;;  %v2543_v47 = vsub.f32 %v2527_v25, %v2538_v36 }
0x2d02   :  { %v2537_v38 = vpop.xlane.xlu0 %2536 }
0x2d03   :  { %v2539_v41 = vmul.f32 0.03125, %v2537_v38 }
0x2d05   :  { %v2541_v44 = vsub.f32 %v2539_v41, %v2540_v39 }
0x2d07   :  { %v2542_v45 = vmax.f32 %v2541_v44, 0.0 }
0x2d09   :  { %v2544_v46 = vadd.f32 1e-05, %v2542_v45 }
0x2d0b   :  { %5090 = vrsqrt.f32 %v2544_v46 }
0x2d15   :  { %v5091_v48 = vpop.eup %5090 }
0x2d16   :  { %v2546_v51 = vmul.f32 %v5091_v48, %v2543_v47 }
0x2d18   :  { %v2547_v52 = vmul.f32 %v5868_v40, %v2546_v51 }
0x2d1a   :  { %v2548_v53 = vadd.f32 %v5873_v42, %v2547_v52 }
0x2d1c   :  { %4502 = vmatmul.mubr.msk.f32.vlgmr.msra.gmra.mrb[24].mxu1 %vm252_vm3, %v2548_v53 }
0x2d1d   :  { %4786 = vmatpush3.bf16.msra.mxu1 %v5901_v4  ;;  %4523 = vmatprep.mubr.msk.f32.mxu1 %vm5393_vm4, %v5391_v9 }
0x2d1e   :  { %4787 = vmatprep.subr.bf16.mxu1 %v5392_v30 }
0x2d21   :  { %4789 = vmatpush3.bf16.msra.mxu1 %v5907_v14 }
0x2def   :  { %v2618_v54 = vpop.f32.mrb[24].mxu1 }
0x2df0   :  { %v2691_v55 = vadd.f32 %v2690_v34, %v2618_v54  ;;  %v4503_v27 = vpop.f32.mrb[25].mxu1 }
0x2df2   :  { %v2694_v56 = vadd.f32 %v5881_v49, %v2691_v55 }
0x2df4   :  { %5092 = vtanh.f32 %v2694_v56  ;;  %v4052_v59 = vmul.f32 -1.442695, %v2694_v56 }
0x2df6   :  { %5094 = vpow2.f32 %v4052_v59 }
0x2dfe   :  { %v5093_v58 = vpop.eup %5092 }
0x2dff   :  { %2704 = vrot.lane.b32.xlu1 %v5093_v58, %s5394_s8 }
0x2e00   :  { %v5095_v60 = vpop.eup %5094 }
0x2e01   :  { %v2698_v61 = vadd.f32 1.0, %v5095_v60 }
0x2e03   :  { %5096 = vrcp.f32 %v2698_v61 }
0x2e0d   :  { %v5097_v62 = vpop.eup %5096 }
0x2e0e   :  { %v2702_v3 = vmul.f32 %v5097_v62, %v6020_v50  ;;  %v4055_v50 = vld [vmem:[%s6260_s3 + $0x8] sm:$0x3] }
0x2e71   :  { %v2705_v63 = vpop.permute.xlu1 %2704 }
0x2e72   :  { %v2707_v2 = vmul.f32 %v5097_v62, %v2705_v63 }
0x2e74   :  { %2709 = vrot.lane.b32.xlu1 %v2707_v2, %s5395_s2 }
0x2ee6   :  { %v2710_v31 = vpop.permute.xlu1 %2709 }
0x2ee7   :  { %v6075_v5 = vadd.f32 %v2710_v31, %v2702_v3 }
0x2ee9   :  { %5098 = vtanh.f32 %v6075_v5 }
0x2ef3   :  { %v5099_v1 = vpop.eup %5098 }
0x2ef4   :  { %2715 = vrot.lane.b32.xlu0 %v5099_v1, %s5394_s8 }
0x2ef8   :  { %2805 = vperm.xlu0 (!%p4056_p2), %5100, %v4055_v50  }
0x2f66   :  { %v2716_v6 = vpop.permute.xlu0 %2715 }
0x2f67   :  { %v2718_v33 = vmul.f32 %v5097_v62, %v2716_v6 }
0x2f69   :  { %2720 = vrot.lane.b32.xlu1 %v2718_v33, %s5395_s2 }
0x2f77   :  { %v2806_v23 = vpop.permute.xlu0 (!%p4056_p2), %2805 }
0x2f78   :  { %vm2807_vm13 = vcmp.eq.s32.totalorder (!%p4056_p2), %v5606_v7, %v2806_v23 }
0x2f79   :  { %v4057_v19 = vsel (!%p4056_p2), %vm2807_vm13, 1.0, %v5406_v24  }
0x2fdb   :  { %v6080_v8 = vpop.permute.xlu1 %2720 }
0x2fdc   :  { %v2723_v10 = vadd.f32 %v6080_v8, %v2548_v53 }
0x2fde   :  { %4524 = vmatmul.mubr.msk.f32.vlgmr.msra.gmra.mrb[26].mxu1 %vm252_vm3, %v2723_v10 }
0x30ac   :  { %2803 = sbr.rel (%p4056_p2) target bundleno = 12467 (0x30b3), region = 129 }
0x30b1   :  { %v2793_v11 = vpop.f32.mrb[26].mxu1 }
0x30b2   :  { %v6088_v15 = vadd.f32 %v5920_v13, %v2793_v11  ;;  %v4525_v18 = vpop.f32.mrb[27].mxu1 }
0x30b3 PF:  { %v5361_v25 = vmov %v5359_v19   ;;  %2813 = sbr.rel (%p2800_p1) target bundleno = 12910 (0x326e), region = 133  ;;  %vm2814_vm14 = vcmask (!%p2800_p1), 123904   ;;  %v5407_v48 = vmov (!%p2800_p1), 0.0   ;;  %v5359_v19 = vphi %v5357_v19, %v4057_v19  }
0x30b4   :  { %v2815_v26 = vsel (!%p2800_p1), %vm2814_vm14, %v6088_v15, -inf }
0x30b5   :  { %2816 = vmax.xlane.f32.xlu0 (!%p2800_p1), %v2815_v26 }
0x3142   :  { %v2817_v28 = vpop.xlane.xlu0 %2816 }
0x3143   :  { %vm2818_vm15 = vcmp.eq.f32.partialorder %v6088_v15, %v2817_v28 }
0x3144   :  { %v2819_v29 = vsel %vm2818_vm15, %v5606_v7, 16 }
0x3145   :  { %v2820_v32 = vsel %vm2814_vm14, %v2819_v29, 2147483647 }
0x3146   :  { %v2822_v34 = vshra.s32 %v2820_v32, 16  ;;  %v2821_v0 = vand.u32 65535, %v2820_v32 }
0x3148   :  { %v2824_v35 = vcvt.s32.f32 %v2822_v34  ;;  %v2823_v38 = vcvt.s32.f32 %v2821_v0 }
0x314a   :  { %2825 = vmin.xlane.f32.xlu0 %v2824_v35 }
0x31d7   :  { %v2826_v36 = vpop.xlane.xlu0 %2825 }
0x31d8   :  { %vm2827_vm1 = vcmp.eq.f32.partialorder %v2824_v35, %v2826_v36  ;;  %v2832_v41 = vcvt.f32.s32 %v2826_v36 }
0x31d9   :  { %v2828_v39 = vsel %vm2827_vm1, %v2823_v38, inf }
0x31da   :  { %2829 = vmin.xlane.f32.xlu1 %v2828_v39  ;;  %v2833_v45 = vshll.u32 %v2832_v41, 16 }
0x3267   :  { %v2830_v44 = vpop.xlane.xlu1 %2829 }
0x3268   :  { %v2831_v46 = vcvt.f32.s32 %v2830_v44 }
0x326a   :  { %v2834_v47 = vadd.s32 %v2833_v45, %v2831_v46 }
0x326c   :  { %vm2835_vm2 = vcmp.eq.s32.totalorder %v5606_v7, %v2834_v47 }
0x326d   :  { %v4058_v25 = vsel %vm2835_vm2, 1.0, %v5407_v48  }
0x326e PF:  { %4790 = vmatprep.subr.bf16.mxu0 %v5392_v30  ;;  %4530 = vmatprep.mubr.msk.f32.mxu0 %vm5393_vm4, %v5391_v9  ;;  %s4064_s1 = sld [smem:[#allocation3 + $0x5]]  ;;  %v5365_v46 = vmov 0   ;;  %v5363_v25 = vphi %v5361_v25, %v4058_v25  }
0x326f   :  { %4792 = vmatpush3.bf16.msra.mxu0 %v5782_v43  ;;  %4799 = vmatprep.subr.bf16.mxu1 %v5392_v30 }
0x3270   :  { %4793 = vmatprep.subr.bf16.mxu0 %v5392_v30  ;;  %4801 = vmatpush3.bf16.msra.mxu1 %v5851_v20 }
0x3271   :  { %4802 = vmatprep.subr.bf16.mxu1 %v5392_v30  ;;  %4552 = vmatprep.mubr.msk.f32.mxu1 %vm5393_vm4, %v5391_v9 }
0x3272   :  { %4531 = vmatmul.mubr.msk.f32.vlgmr.msra.gmra.mrb[24].mxu0 %vm170_vm0, %v5363_v25 }
0x3273   :  { %4795 = vmatpush3.bf16.msra.mxu0 %v5828_v12  ;;  %4541 = vmatprep.mubr.msk.f32.mxu0 %vm5393_vm4, %v5391_v9 }
0x3274   :  { %4796 = vmatprep.subr.bf16.mxu0 %v5392_v30  ;;  %4804 = vmatpush3.bf16.msra.mxu1 %v5857_v22  ;;  %p3181_p3 = scmp.eq.s32.totalorder %s4064_s1, 1  ;;  %p4066_p4 = scmp.ne.s32.totalorder %s4064_s1, 1 }
0x3275   :  { %v5408_v47 = vmov (!%p4066_p4), 0  }
0x3276   :  { %5111 = vset.pattern.permute.xlu0 (!%p4066_p4), %v5408_v47 }
0x3277   :  { %4798 = vmatpush3.bf16.msra.mxu0 %v5837_v16  ;;  %4553 = vmatmul.mubr.msk.f32.vlgmr.msra.gmra.mrb[28].mxu1 %vm252_vm3, %v6080_v8 }
0x3278   :  { %4805 = vmatprep.subr.bf16.mxu0 %v5392_v30 }
0x3345   :  { %v2908_v51 = vpop.f32.mrb[24].mxu0 }
0x3346   :  { %v4532_v52 = vpop.f32.mrb[25].mxu0  ;;  %v2912_v53 = vsel %vm1352_vm7, %v2908_v51, 0.0  ;;  %v2915_v54 = vmul.f32 %v2908_v51, %v2908_v51 }
0x3347   :  { %2913 = vadd.xlane.f32.xlu0 %v2912_v53 }
0x3348   :  { %v2916_v55 = vsel %vm1352_vm7, %v2915_v54, 0.0 }
0x334a   :  { %v3071_v27 = vpop.f32.mrb[28].mxu1 }
0x334b   :  { %2917 = vadd.xlane.f32.xlu0 %v2916_v55  ;;  %v4554_v56 = vpop.f32.mrb[29].mxu1 }
0x33d4   :  { %v2914_v58 = vpop.xlane.xlu0 %2913 }
0x33d5   :  { %v2919_v59 = vmul.f32 0.03125, %v2914_v58 }
0x33d7   :  { %v2921_v61 = vmul.f32 %v2919_v59, %v2919_v59  ;;  %v2924_v31 = vsub.f32 %v2908_v51, %v2919_v59  ;;  %v5409_v51 = vmov (!%p4066_p4), 0.0  }
0x33d8   :  { %v2918_v60 = vpop.xlane.xlu0 %2917 }
0x33d9   :  { %v2920_v62 = vmul.f32 0.03125, %v2918_v60 }
0x33db   :  { %v2922_v63 = vsub.f32 %v2920_v62, %v2921_v61 }
0x33dd   :  { %v2923_v2 = vmax.f32 %v2922_v63, 0.0 }
0x33df   :  { %v2925_v3 = vadd.f32 1e-05, %v2923_v2 }
0x33e1   :  { %5101 = vrsqrt.f32 %v2925_v3 }
0x33eb   :  { %v5102_v1 = vpop.eup %5101 }
0x33ec   :  { %v2927_v6 = vmul.f32 %v5102_v1, %v2924_v31 }
0x33ee   :  { %v2928_v33 = vmul.f32 %v5868_v40, %v2927_v6 }
0x33f0   :  { %v2929_v8 = vadd.f32 %v5873_v42, %v2928_v33 }
0x33f2   :  { %4542 = vmatmul.mubr.msk.f32.vlgmr.msra.gmra.mrb[26].mxu0 %vm252_vm3, %v2929_v8 }
0x33f3   :  { %4807 = vmatpush3.bf16.msra.mxu0 %v5901_v4  ;;  %4563 = vmatprep.mubr.msk.f32.mxu0 %vm5393_vm4, %v5391_v9 }
0x33f4   :  { %4808 = vmatprep.subr.bf16.mxu0 %v5392_v30 }
0x33f7   :  { %4810 = vmatpush3.bf16.msra.mxu0 %v5907_v14 }
0x34c5   :  { %v2999_v10 = vpop.f32.mrb[26].mxu0 }
0x34c6   :  { %v3072_v50 = vadd.f32 %v3071_v27, %v2999_v10  ;;  %v4543_v11 = vpop.f32.mrb[27].mxu0 }
0x34c8   :  { %v3075_v18 = vadd.f32 %v5881_v49, %v3072_v50 }
0x34ca   :  { %5103 = vtanh.f32 %v3075_v18  ;;  %v4062_v21 = vmul.f32 -1.442695, %v3075_v18 }
0x34cc   :  { %5105 = vpow2.f32 %v4062_v21 }
0x34d4   :  { %v5104_v19 = vpop.eup %5103 }
0x34d5   :  { %3085 = vrot.lane.b32.xlu1 %v5104_v19, %s5394_s8 }
0x34d6   :  { %v5106_v23 = vpop.eup %5105 }
0x34d7   :  { %v3079_v24 = vadd.f32 1.0, %v5106_v23 }
0x34d9   :  { %5107 = vrcp.f32 %v3079_v24 }
0x34e3   :  { %v5108_v25 = vpop.eup %5107 }
0x34e4   :  { %v3083_v29 = vmul.f32 %v5108_v25, %v6075_v5  ;;  %v4065_v5 = vld [vmem:[%s6260_s3 + $0xa] sm:$0x3] }
0x3547   :  { %v3086_v26 = vpop.permute.xlu1 %3085 }
0x3548   :  { %v3088_v28 = vmul.f32 %v5108_v25, %v3086_v26 }
0x354a   :  { %3090 = vrot.lane.b32.xlu1 %v3088_v28, %s5395_s2 }
0x35bc   :  { %v3091_v32 = vpop.permute.xlu1 %3090 }
0x35bd   :  { %v6130_v34 = vadd.f32 %v3091_v32, %v3083_v29 }
0x35bf   :  { %5109 = vtanh.f32 %v6130_v34 }
0x35c9   :  { %v5110_v35 = vpop.eup %5109 }
0x35ca   :  { %3096 = vrot.lane.b32.xlu0 %v5110_v35, %s5394_s8 }
0x35ce   :  { %3186 = vperm.xlu0 (!%p4066_p4), %5111, %v4065_v5  }
0x363c   :  { %v3097_v0 = vpop.permute.xlu0 %3096 }
0x363d   :  { %v3099_v36 = vmul.f32 %v5108_v25, %v3097_v0 }
0x363f   :  { %3101 = vrot.lane.b32.xlu1 %v3099_v36, %s5395_s2 }
0x364d   :  { %v3187_v48 = vpop.permute.xlu0 (!%p4066_p4), %3186 }
0x364e   :  { %vm3188_vm5 = vcmp.eq.s32.totalorder (!%p4066_p4), %v5606_v7, %v3187_v48 }
0x364f   :  { %v4067_v46 = vsel (!%p4066_p4), %vm3188_vm5, 1.0, %v5409_v51  }
0x36b1   :  { %v6135_v38 = vpop.permute.xlu1 %3101 }
0x36b2   :  { %v3104_v39 = vadd.f32 %v6135_v38, %v2929_v8 }
0x36b4   :  { %4564 = vmatmul.mubr.msk.f32.vlgmr.msra.gmra.mrb[28].mxu0 %vm252_vm3, %v3104_v39 }
0x3782   :  { %3184 = sbr.rel (%p4066_p4) target bundleno = 14217 (0x3789), region = 137 }
0x3787   :  { %v3174_v41 = vpop.f32.mrb[28].mxu0 }
0x3788   :  { %v6143_v44 = vadd.f32 %v5920_v13, %v3174_v41  ;;  %v4565_v45 = vpop.f32.mrb[29].mxu0 }
0x3789 PF:  { %v5369_v52 = vmov %v5367_v46   ;;  %3194 = sbr.rel (%p3181_p3) target bundleno = 14660 (0x3944), region = 141  ;;  %vm3195_vm6 = vcmask (!%p3181_p3), 123904   ;;  %v5410_v6 = vmov (!%p3181_p3), 0.0   ;;  %v5367_v46 = vphi %v5365_v46, %v4067_v46  }
0x378a   :  { %v3196_v53 = vsel (!%p3181_p3), %vm3195_vm6, %v6143_v44, -inf }
0x378b   :  { %3197 = vmax.xlane.f32.xlu0 (!%p3181_p3), %v3196_v53 }
0x3818   :  { %v3198_v54 = vpop.xlane.xlu0 %3197 }
0x3819   :  { %vm3199_vm8 = vcmp.eq.f32.partialorder %v6143_v44, %v3198_v54 }
0x381a   :  { %v3200_v55 = vsel %vm3199_vm8, %v5606_v7, 16 }
0x381b   :  { %v3201_v27 = vsel %vm3195_vm6, %v3200_v55, 2147483647 }
0x381c   :  { %v3203_v56 = vshra.s32 %v3201_v27, 16  ;;  %v3202_v59 = vand.u32 65535, %v3201_v27 }
0x381e   :  { %v3205_v58 = vcvt.s32.f32 %v3203_v56  ;;  %v3204_v61 = vcvt.s32.f32 %v3202_v59 }
0x3820   :  { %3206 = vmin.xlane.f32.xlu0 %v3205_v58 }
0x38ad   :  { %v3207_v60 = vpop.xlane.xlu0 %3206 }
0x38ae   :  { %vm3208_vm9 = vcmp.eq.f32.partialorder %v3205_v58, %v3207_v60  ;;  %v3213_v63 = vcvt.f32.s32 %v3207_v60 }
0x38af   :  { %v3209_v62 = vsel %vm3208_vm9, %v3204_v61, inf }
0x38b0   :  { %3210 = vmin.xlane.f32.xlu1 %v3209_v62  ;;  %v3214_v3 = vshll.u32 %v3213_v63, 16 }
0x393d   :  { %v3211_v2 = vpop.xlane.xlu1 %3210 }
0x393e   :  { %v3212_v31 = vcvt.f32.s32 %v3211_v2 }
0x3940   :  { %v3215_v1 = vadd.s32 %v3214_v3, %v3212_v31 }
0x3942   :  { %vm3216_vm10 = vcmp.eq.s32.totalorder %v5606_v7, %v3215_v1 }
0x3943   :  { %v4068_v52 = vsel %vm3216_vm10, 1.0, %v5410_v6  }
0x3944 PF:  { %4811 = vmatprep.subr.bf16.mxu1 %v5392_v30  ;;  %4570 = vmatprep.mubr.msk.f32.mxu1 %vm5393_vm4, %v5391_v9  ;;  %s4074_s14 = sld [smem:[#allocation3 + $0x6]]  ;;  %v5373_v1 = vmov 0   ;;  %v5371_v52 = vphi %v5369_v52, %v4068_v52  }
0x3945   :  { %4813 = vmatpush3.bf16.msra.mxu1 %v5782_v43  ;;  %4820 = vmatprep.subr.bf16.mxu0 %v5392_v30 }
0x3946   :  { %4814 = vmatprep.subr.bf16.mxu1 %v5392_v30  ;;  %4822 = vmatpush3.bf16.msra.mxu0 %v5851_v20 }
0x3947   :  { %4823 = vmatprep.subr.bf16.mxu0 %v5392_v30  ;;  %4592 = vmatprep.mubr.msk.f32.mxu0 %vm5393_vm4, %v5391_v9 }
0x3948   :  { %4571 = vmatmul.mubr.msk.f32.vlgmr.msra.gmra.mrb[30].mxu1 %vm170_vm0, %v5371_v52 }
0x3949   :  { %4816 = vmatpush3.bf16.msra.mxu1 %v5828_v12  ;;  %4581 = vmatprep.mubr.msk.f32.mxu1 %vm5393_vm4, %v5391_v9 }
0x394a   :  { %4817 = vmatprep.subr.bf16.mxu1 %v5392_v30  ;;  %4825 = vmatpush3.bf16.msra.mxu0 %v5857_v22  ;;  %p3562_p5 = scmp.eq.s32.totalorder %s4074_s14, 1  ;;  %p4076_p6 = scmp.ne.s32.totalorder %s4074_s14, 1 }
0x394b   :  { %v5411_v6 = vmov (!%p4076_p6), 0  }
0x394c   :  { %5122 = vset.pattern.permute.xlu0 (!%p4076_p6), %v5411_v6 }
0x394d   :  { %4819 = vmatpush3.bf16.msra.mxu1 %v5837_v16  ;;  %4593 = vmatmul.mubr.msk.f32.vlgmr.msra.gmra.mrb[30].mxu0 %vm252_vm3, %v6135_v38 }
0x394e   :  { %4826 = vmatprep.subr.bf16.mxu1 %v5392_v30 }
0x3a1b   :  { %v3289_v33 = vpop.f32.mrb[30].mxu1 }
0x3a1c   :  { %v4572_v8 = vpop.f32.mrb[31].mxu1  ;;  %v3293_v10 = vsel %vm1352_vm7, %v3289_v33, 0.0  ;;  %v3296_v50 = vmul.f32 %v3289_v33, %v3289_v33 }
0x3a1d   :  { %3294 = vadd.xlane.f32.xlu0 %v3293_v10  ;;  %v5412_v8 = vmov (!%p4076_p6), 0.0  }
0x3a1e   :  { %v3297_v11 = vsel %vm1352_vm7, %v3296_v50, 0.0 }
0x3a20   :  { %v3452_v18 = vpop.f32.mrb[30].mxu0 }
0x3a21   :  { %3298 = vadd.xlane.f32.xlu0 %v3297_v11  ;;  %v4594_v19 = vpop.f32.mrb[31].mxu0 }
0x3aaa   :  { %v3295_v21 = vpop.xlane.xlu0 %3294 }
0x3aab   :  { %v3300_v23 = vmul.f32 0.03125, %v3295_v21 }
0x3aad   :  { %v3302_v25 = vmul.f32 %v3300_v23, %v3300_v23  ;;  %v3305_v35 = vsub.f32 %v3289_v33, %v3300_v23 }
0x3aae   :  { %v3299_v24 = vpop.xlane.xlu0 %3298 }
0x3aaf   :  { %v3301_v26 = vmul.f32 0.03125, %v3299_v24 }
0x3ab1   :  { %v3303_v28 = vsub.f32 %v3301_v26, %v3302_v25 }
0x3ab3   :  { %v3304_v29 = vmax.f32 %v3303_v28, 0.0 }
0x3ab5   :  { %v3306_v32 = vadd.f32 1e-05, %v3304_v29 }
0x3ab7   :  { %5112 = vrsqrt.f32 %v3306_v32 }
0x3ac1   :  { %v5113_v0 = vpop.eup %5112 }
0x3ac2   :  { %v3308_v36 = vmul.f32 %v5113_v0, %v3305_v35 }
0x3ac4   :  { %v3309_v38 = vmul.f32 %v5868_v40, %v3308_v36 }
0x3ac6   :  { %v3310_v39 = vadd.f32 %v5873_v42, %v3309_v38 }
0x3ac8   :  { %4582 = vmatmul.mubr.msk.f32.vlgmr.msra.gmra.mrb[32].mxu1 %vm252_vm3, %v3310_v39 }
0x3ac9   :  { %4828 = vmatpush3.bf16.msra.mxu1 %v5901_v4  ;;  %4603 = vmatprep.mubr.msk.f32.mxu1 %vm5393_vm4, %v5391_v9 }
0x3aca   :  { %4829 = vmatprep.subr.bf16.mxu1 %v5392_v30 }
0x3acd   :  { %4831 = vmatpush3.bf16.msra.mxu1 %v5907_v14 }
0x3b9b   :  { %v3380_v5 = vpop.f32.mrb[32].mxu1 }
0x3b9c   :  { %v3453_v41 = vadd.f32 %v3452_v18, %v3380_v5  ;;  %v4583_v45 = vpop.f32.mrb[33].mxu1 }
0x3b9e   :  { %v3456_v46 = vadd.f32 %v5881_v49, %v3453_v41 }
0x3ba0   :  { %5114 = vtanh.f32 %v3456_v46  ;;  %v4072_v48 = vmul.f32 -1.442695, %v3456_v46 }
0x3ba2   :  { %5116 = vpow2.f32 %v4072_v48 }
0x3baa   :  { %v5115_v47 = vpop.eup %5114 }
0x3bab   :  { %3466 = vrot.lane.b32.xlu1 %v5115_v47, %s5394_s8 }
0x3bac   :  { %v5117_v51 = vpop.eup %5116 }
0x3bad   :  { %v3460_v52 = vadd.f32 1.0, %v5117_v51 }
0x3baf   :  { %5118 = vrcp.f32 %v3460_v52 }
0x3bb9   :  { %v5119_v53 = vpop.eup %5118 }
0x3bba   :  { %v3464_v27 = vmul.f32 %v5119_v53, %v6130_v34  ;;  %v4075_v34 = vld [vmem:[%s6260_s3 + $0xc] sm:$0x3] }
0x3c1d   :  { %v3467_v54 = vpop.permute.xlu1 %3466 }
0x3c1e   :  { %v3469_v55 = vmul.f32 %v5119_v53, %v3467_v54 }
0x3c20   :  { %3471 = vrot.lane.b32.xlu1 %v3469_v55, %s5395_s2 }
0x3c92   :  { %v3472_v56 = vpop.permute.xlu1 %3471 }
0x3c93   :  { %v6185_v58 = vadd.f32 %v3472_v56, %v3464_v27 }
0x3c95   :  { %5120 = vtanh.f32 %v6185_v58 }
0x3c9f   :  { %v5121_v59 = vpop.eup %5120 }
0x3ca0   :  { %3477 = vrot.lane.b32.xlu0 %v5121_v59, %s5394_s8 }
0x3ca4   :  { %3567 = vperm.xlu0 (!%p4076_p6), %5122, %v4075_v34  }
0x3d12   :  { %v3478_v60 = vpop.permute.xlu0 %3477 }
0x3d13   :  { %v3480_v61 = vmul.f32 %v5119_v53, %v3478_v60 }
0x3d15   :  { %3482 = vrot.lane.b32.xlu1 %v3480_v61, %s5395_s2 }
0x3d23   :  { %v3568_v33 = vpop.permute.xlu0 (!%p4076_p6), %3567 }
0x3d24   :  { %vm3569_vm11 = vcmp.eq.s32.totalorder (!%p4076_p6), %v5606_v7, %v3568_v33 }
0x3d25   :  { %v4077_v1 = vsel (!%p4076_p6), %vm3569_vm11, 1.0, %v5412_v8  }
0x3d87   :  { %v6190_v62 = vpop.permute.xlu1 %3482 }
0x3d88   :  { %v3485_v63 = vadd.f32 %v6190_v62, %v3310_v39 }
0x3d8a   :  { %4604 = vmatmul.mubr.msk.f32.vlgmr.msra.gmra.mrb[34].mxu1 %vm252_vm3, %v3485_v63 }
0x3e58   :  { %3565 = sbr.rel (%p4076_p6) target bundleno = 15967 (0x3e5f), region = 145 }
0x3e5d   :  { %v3555_v2 = vpop.f32.mrb[34].mxu1 }
0x3e5e   :  { %v6198_v3 = vadd.f32 %v5920_v13, %v3555_v2  ;;  %v4605_v31 = vpop.f32.mrb[35].mxu1 }
0x3e5f PF:  { %v5377_v10 = vmov %v5375_v1   ;;  %3575 = sbr.rel (%p3562_p5) target bundleno = 16410 (0x401a), region = 149  ;;  %vm3576_vm12 = vcmask (!%p3562_p5), 123904   ;;  %v5413_v38 = vmov (!%p3562_p5), 0.0   ;;  %v5375_v1 = vphi %v5373_v1, %v4077_v1  }
0x3e60   :  { %v3577_v50 = vsel (!%p3562_p5), %vm3576_vm12, %v6198_v3, -inf }
0x3e61   :  { %3578 = vmax.xlane.f32.xlu0 (!%p3562_p5), %v3577_v50 }
0x3eee   :  { %v3579_v11 = vpop.xlane.xlu0 %3578 }
0x3eef   :  { %vm3580_vm13 = vcmp.eq.f32.partialorder %v6198_v3, %v3579_v11 }
0x3ef0   :  { %v3581_v18 = vsel %vm3580_vm13, %v5606_v7, 16 }
0x3ef1   :  { %v3582_v19 = vsel %vm3576_vm12, %v3581_v18, 2147483647 }
0x3ef2   :  { %v3584_v21 = vshra.s32 %v3582_v19, 16  ;;  %v3583_v24 = vand.u32 65535, %v3582_v19 }
0x3ef4   :  { %v3586_v23 = vcvt.s32.f32 %v3584_v21  ;;  %v3585_v26 = vcvt.s32.f32 %v3583_v24 }
0x3ef6   :  { %3587 = vmin.xlane.f32.xlu0 %v3586_v23 }
0x3f83   :  { %v3588_v25 = vpop.xlane.xlu0 %3587 }
0x3f84   :  { %vm3589_vm14 = vcmp.eq.f32.partialorder %v3586_v23, %v3588_v25  ;;  %v3594_v29 = vcvt.f32.s32 %v3588_v25 }
0x3f85   :  { %v3590_v28 = vsel %vm3589_vm14, %v3585_v26, inf }
0x3f86   :  { %3591 = vmin.xlane.f32.xlu1 %v3590_v28  ;;  %v3595_v35 = vshll.u32 %v3594_v29, 16 }
0x4013   :  { %v3592_v32 = vpop.xlane.xlu1 %3591 }
0x4014   :  { %v3593_v0 = vcvt.f32.s32 %v3592_v32 }
0x4016   :  { %v3596_v36 = vadd.s32 %v3595_v35, %v3593_v0 }
0x4018   :  { %vm3597_vm15 = vcmp.eq.s32.totalorder %v5606_v7, %v3596_v36 }
0x4019   :  { %v4078_v10 = vsel %vm3597_vm15, 1.0, %v5413_v38  }
0x401a PF:  { %4832 = vmatprep.subr.bf16.mxu0 %v5392_v30  ;;  %4610 = vmatprep.mubr.msk.f32.mxu0 %vm5393_vm4, %v5391_v9  ;;  %s5414_s3 = smov 96   ;;  %s5415_s5 = smov 16   ;;  %vm3974_vm1 = vcmask 654336   ;;  %vm3976_vm2 = vcmask 785408   ;;  %vm3978_vm5 = vcmask 916480   ;;  %v5379_v10 = vphi %v5377_v10, %v4078_v10  }
0x401b   :  { %4834 = vmatpush3.bf16.msra.mxu0 %v5782_v43  ;;  %4841 = vmatprep.subr.bf16.mxu1 %v5392_v30  ;;  %s5416_s11 = smov 48   ;;  %s5417_s12 = smov 80  }
0x401c   :  { %4835 = vmatprep.subr.bf16.mxu0 %v5392_v30  ;;  %4843 = vmatpush3.bf16.msra.mxu1 %v5851_v20  ;;  %s5418_s28 = smov 112  }
0x401d   :  { %4844 = vmatprep.subr.bf16.mxu1 %v5392_v30  ;;  %4632 = vmatprep.mubr.msk.f32.mxu1 %vm5393_vm4, %v5391_v9 }
0x401e   :  { %4611 = vmatmul.mubr.msk.f32.vlgmr.msra.gmra.mrb[32].mxu0 %vm170_vm0, %v5379_v10 }
0x401f   :  { %4837 = vmatpush3.bf16.msra.mxu0 %v5828_v12  ;;  %4621 = vmatprep.mubr.msk.f32.mxu0 %vm5393_vm4, %v5391_v9 }
0x4020   :  { %4838 = vmatprep.subr.bf16.mxu0 %v5392_v30  ;;  %4846 = vmatpush3.bf16.msra.mxu1 %v5857_v22 }
0x4023   :  { %4840 = vmatpush3.bf16.msra.mxu0 %v5837_v16  ;;  %4633 = vmatmul.mubr.msk.f32.vlgmr.msra.gmra.mrb[36].mxu1 %vm252_vm3, %v6190_v62 }
0x4024   :  { %4847 = vmatprep.subr.bf16.mxu0 %v5392_v30 }
0x40f1   :  { %v3670_v7 = vpop.f32.mrb[32].mxu0 }
0x40f2   :  { %v4612_v43 = vpop.f32.mrb[33].mxu0  ;;  %v3674_v20 = vsel %vm1352_vm7, %v3670_v7, 0.0  ;;  %v3677_v39 = vmul.f32 %v3670_v7, %v3670_v7 }
0x40f3   :  { %3675 = vadd.xlane.f32.xlu0 %v3674_v20 }
0x40f4   :  { %v3678_v12 = vsel %vm1352_vm7, %v3677_v39, 0.0  ;;  %vm3972_vm7 = vcmask 523264  }
0x40f6   :  { %v3833_v5 = vpop.f32.mrb[36].mxu1 }
0x40f7   :  { %3679 = vadd.xlane.f32.xlu0 %v3678_v12  ;;  %v4634_v41 = vpop.f32.mrb[37].mxu1 }
0x4180   :  { %v3676_v45 = vpop.xlane.xlu0 %3675 }
0x4181   :  { %v3681_v22 = vmul.f32 0.03125, %v3676_v45 }
0x4183   :  { %v3683_v16 = vmul.f32 %v3681_v22, %v3681_v22  ;;  %v3686_v53 = vsub.f32 %v3670_v7, %v3681_v22 }
0x4184   :  { %v3680_v46 = vpop.xlane.xlu0 %3679 }
0x4185   :  { %v3682_v47 = vmul.f32 0.03125, %v3680_v46 }
0x4187   :  { %v3684_v48 = vsub.f32 %v3682_v47, %v3683_v16 }
0x4189   :  { %v3685_v51 = vmax.f32 %v3684_v48, 0.0 }
0x418b   :  { %v3687_v52 = vadd.f32 1e-05, %v3685_v51 }
0x418d   :  { %5123 = vrsqrt.f32 %v3687_v52 }
0x4197   :  { %v5124_v54 = vpop.eup %5123 }
0x4198   :  { %v3689_v55 = vmul.f32 %v5124_v54, %v3686_v53 }
0x419a   :  { %v3690_v27 = vmul.f32 %v5868_v40, %v3689_v55 }
0x419c   :  { %v3691_v56 = vadd.f32 %v5873_v42, %v3690_v27 }
0x419e   :  { %4622 = vmatmul.mubr.msk.f32.vlgmr.msra.gmra.mrb[34].mxu0 %vm252_vm3, %v3691_v56 }
0x419f   :  { %4849 = vmatpush3.bf16.msra.mxu0 %v5901_v4  ;;  %4643 = vmatprep.mubr.msk.f32.mxu0 %vm5393_vm4, %v5391_v9  ;;  %vm3970_vm4 = vcmask 392192  }
0x41a0   :  { %4850 = vmatprep.subr.bf16.mxu0 %v5392_v30 }
0x41a3   :  { %4852 = vmatpush3.bf16.msra.mxu0 %v5907_v14 }
0x4271   :  { %v3761_v59 = vpop.f32.mrb[34].mxu0 }
0x4272   :  { %v3834_v60 = vadd.f32 %v3833_v5, %v3761_v59  ;;  %v4623_v61 = vpop.f32.mrb[35].mxu0 }
0x4274   :  { %v3837_v62 = vadd.f32 %v5881_v49, %v3834_v60 }
0x4276   :  { %5125 = vtanh.f32 %v3837_v62  ;;  %v4082_v42 = vmul.f32 -1.442695, %v3837_v62 }
0x4278   :  { %5127 = vpow2.f32 %v4082_v42 }
0x4280   :  { %v5126_v40 = vpop.eup %5125 }
0x4281   :  { %3847 = vrot.lane.b32.xlu1 %v5126_v40, %s5394_s8 }
0x4282   :  { %v5128_v63 = vpop.eup %5127 }
0x4283   :  { %v3841_v4 = vadd.f32 1.0, %v5128_v63 }
0x4285   :  { %5129 = vrcp.f32 %v3841_v4 }
0x428f   :  { %v5130_v34 = vpop.eup %5129 }
0x4290   :  { %v3845_v30 = vmul.f32 %v5130_v34, %v6185_v58 }
0x42f3   :  { %v3848_v9 = vpop.permute.xlu1 %3847 }
0x42f4   :  { %v3850_v2 = vmul.f32 %v5130_v34, %v3848_v9 }
0x42f6   :  { %3852 = vrot.lane.b32.xlu1 %v3850_v2, %s5395_s2 }
0x4368   :  { %v3853_v14 = vpop.permute.xlu1 %3852 }
0x4369   :  { %v3855_v31 = vadd.f32 %v3853_v14, %v3845_v30 }
0x436b   :  { %5131 = vtanh.f32 %v3855_v31 }
0x4375   :  { %v5132_v49 = vpop.eup %5131 }
0x4376   :  { %3858 = vrot.lane.b32.xlu0 %v5132_v49, %s5394_s8 }
0x437a   :  { %3961 = vrot.lane.b32.xlu0 %v6198_v3, %s5414_s3 }
0x43e8   :  { %v3859_v1 = vpop.permute.xlu0 %3858 }
0x43e9   :  { %v3861_v6 = vmul.f32 %v5130_v34, %v3859_v1 }
0x43eb   :  { %3863 = vrot.lane.b32.xlu1 %v3861_v6, %s5395_s2 }
0x43ef   :  { %3941 = vrot.lane.b32.xlu1 %v5923_v17, %s5415_s5 }
0x43f3   :  { %3945 = vrot.lane.b32.xlu1 %v5978_v37, %s5395_s2 }
0x43f7   :  { %3949 = vrot.lane.b32.xlu1 %v6033_v57, %s5416_s11 }
0x43fb   :  { %3953 = vrot.lane.b32.xlu1 %v6088_v15, %s5394_s8 }
0x43ff   :  { %3957 = vrot.lane.b32.xlu1 %v6143_v44, %s5417_s12 }
0x445d   :  { %v3864_v58 = vpop.permute.xlu1 %3863 }
0x445e   :  { %v3866_v3 = vadd.f32 %v3864_v58, %v3691_v56 }
0x4460   :  { %4644 = vmatmul.mubr.msk.f32.vlgmr.msra.gmra.mrb[36].mxu0 %vm252_vm3, %v3866_v3 }
0x4461   :  { %v3942_v37 = vpop.permute.xlu1 %3941 }
0x4462   :  { %v3968_v57 = vsel %vm170_vm0, 0.0, %v3942_v37 }
0x4465   :  { %v3946_v10 = vpop.permute.xlu1 %3945 }
0x4466   :  { %v3969_v15 = vsel %vm252_vm3, %v3968_v57, %v3946_v10 }
0x4469   :  { %v3950_v50 = vpop.permute.xlu1 %3949 }
0x446a   :  { %v3971_v44 = vsel %vm3970_vm4, %v3969_v15, %v3950_v50 }
0x446d   :  { %v3954_v11 = vpop.permute.xlu1 %3953 }
0x446e   :  { %v3973_v18 = vsel %vm3972_vm7, %v3971_v44, %v3954_v11 }
0x4471   :  { %v3958_v19 = vpop.permute.xlu1 %3957 }
0x4472   :  { %v3975_v21 = vsel %vm3974_vm1, %v3973_v18, %v3958_v19 }
0x4533   :  { %v3936_v33 = vpop.f32.mrb[36].mxu0 }
0x4534   :  { %v3937_v8 = vadd.f32 %v5920_v13, %v3936_v33  ;;  %v4645_v17 = vpop.f32.mrb[37].mxu0  ;;  %v3962_v13 = vpop.permute.xlu0 %3961 }
0x4535   :  { %v3977_v23 = vsel %vm3976_vm2, %v3975_v21, %v3962_v13 }
0x4536   :  { %3965 = vrot.lane.b32.xlu1 %v3937_v8, %s5418_s28 }
0x45a8   :  { %v3966_v24 = vpop.permute.xlu1 %3965 }
0x45a9   :  { %v3979_v25 = vsel %vm3978_vm5, %v3977_v23, %v3966_v24 }
0x45aa   :  { %3980 = vst [vmem:[%s6275_s18] sm:$0x3] %v3979_v25 }
0x45ab   :  { %3985 = vsyncpa [#allocation4], 1 }
0x45ac   :  { %3986 = vsyncpa [#allocation8], 1 }
0x45ad   :  { %3987 = vsyncpa [#allocation11], 1 }
0x45ae   :  { %3988 = vsyncpa [#allocation14], 1 }
0x45af   :  { %3989 = vsyncpa [#allocation5], 1 }

</bundles_post_ra>
